<compile_context>
chip_gen: v7x
topology: tpu7x:2x2x1
jax: 0.10.0
libtpu: 0.0.40
codegen_flags: <defaults>
</compile_context>

<pallas_src>
import numpy as np
import jax
import jax.numpy as jnp
from jax import lax
from jax.experimental import pallas as pl
from jax.experimental.pallas import tpu as pltpu


def _round_up(v, m):
    return (v + m - 1) // m * m


def _dot(a, b):
    # 1-pass MXU matmul (bf16 operands, or bf16-truncated f32 operands) with
    # f32 accumulation.
    return jnp.dot(a, b, precision=lax.Precision.DEFAULT,
                   preferred_element_type=jnp.float32)


def _silu(v):
    return v * jax.nn.sigmoid(v)


# ---------------------------------------------------------------------------
# Pallas kernel: one grid step = (layer l, edge tile e)
# ---------------------------------------------------------------------------
def _egnn_kernel(h0_ref, x0_ref, invc_ref, cmask_ref, ea_ref,
                 srow_ref, scol_ref, srowt_ref,
                 embw_ref, embb_ref,
                 ew1s_ref, ew1d_ref, ew1r_ref, ew1e_ref, eb1_ref, ew2_ref, eb2_ref,
                 nw1h_ref, nw1a_ref, nw1n_ref, nb1_ref, nw2_ref, nb2_ref,
                 cw1_ref, cb1_ref, cw2_ref,
                 out_ref, agg_sc):
    l = pl.program_id(0)
    e = pl.program_id(1)
    n_e = pl.num_programs(1)

    # ---- one-time init: node embedding + coords packed into lanes H..H+2 ----
    @pl.when((l == 0) & (e == 0))
    def _():
        out_ref[...] = (x0_ref[...] + _dot(h0_ref[...], embw_ref[...])
                        + embb_ref[...])

    # ---- per-layer init of the fused scatter accumulator [agg_m | agg_x] ----
    @pl.when(e == 0)
    def _():
        agg_sc[...] = jnp.zeros_like(agg_sc)

    cmask = cmask_ref[...]                            # (1, HP): 1 on coord lanes
    state_b = out_ref[...].astype(jnp.bfloat16)       # single cheap (NP,HP) cast

    # fused gathers: one (TE,NP)@(NP,HP) bf16 matmul per side
    g_row = _dot(srow_ref[...], state_b)              # [h_row | x_row]
    g_col = _dot(scol_ref[...], state_b)              # [h_col | x_col]

    d = (g_row - g_col) * cmask                       # coord_diff (coord lanes only)
    radial = jnp.sum(d * d, axis=1, keepdims=True)    # (TE, 1)

    # edge MLP (split W1; zero-padded weight rows on coord lanes make slicing
    # of g_row/g_col unnecessary)
    pre_e = (_dot(g_row, ew1s_ref[...]) + _dot(g_col, ew1d_ref[...])
             + radial * ew1r_ref[...] + _dot(ea_ref[...], ew1e_ref[...])
             + eb1_ref[...])
    m = _silu(_dot(_silu(pre_e), ew2_ref[...]) + eb2_ref[...])          # (TE, HP)

    # coord MLP -> per-edge scalar; translation occupies coord lanes only
    c = _dot(_silu(_dot(m, cw1_ref[...]) + cb1_ref[...]), cw2_ref[...])  # (TE, 1)
    msg = m + d * c                                   # disjoint-lane add (no concat)

    # fused scatter-add over edges via the pre-transposed one-hot (pure MXU;
    # zero columns for padded edges kill their contribution exactly)
    agg_sc[...] += _dot(srowt_ref[...], msg.astype(jnp.bfloat16))

    # ---- layer finalize: segment-mean coord update + recurrent node update ----
    @pl.when(e == n_e - 1)
    def _():
        state = out_ref[...]
        agg = agg_sc[...]
        pre_n = (_dot(state, nw1h_ref[...]) + _dot(agg, nw1a_ref[...])
                 + _dot(h0_ref[...], nw1n_ref[...]) + nb1_ref[...])
        dh = _dot(_silu(pre_n), nw2_ref[...]) + nb2_ref[...]   # zero on coord lanes
        # invc already contains coords_weight / max(count, 1)
        out_ref[...] = state + dh + agg * invc_ref[...] * cmask


# ---------------------------------------------------------------------------
# Wrapper: pad to lane-dense shapes, build bf16 one-hots, split weights, call
# ---------------------------------------------------------------------------
def egnn_pallas(h0, x, edge_index, edge_attr, params, coords_weight=1.0,
                tile_e=512):
    N, in_node_nf = h0.shape
    E = edge_index.shape[1]
    enf = edge_attr.shape[1]
    H = params["emb_w"].shape[1]
    L = params["edge_w1"].shape[0]

    HP = _round_up(H + 3, 128)        # hidden padded so 3 coord lanes fit in the slab
    NP = _round_up(N, 8)
    TE = _round_up(min(tile_e, E), 128)
    EP = _round_up(E, TE)
    n_et = EP // TE

    row, col = edge_index[0], edge_index[1]
    node_ids = jnp.arange(NP, dtype=row.dtype)
    # one-hot gather/scatter matrices in bf16 (0/1 exact); padded edges -> zero rows/cols
    srow = jnp.pad((row[:, None] == node_ids[None, :]).astype(jnp.bfloat16),
                   ((0, EP - E), (0, 0)))
    scol = jnp.pad((col[:, None] == node_ids[None, :]).astype(jnp.bfloat16),
                   ((0, EP - E), (0, 0)))
    srowt = jnp.pad((node_ids[:, None] == row[None, :]).astype(jnp.bfloat16),
                    ((0, 0), (0, EP - E)))
    ea = jnp.pad(edge_attr.astype(jnp.float32), ((0, EP - E), (0, 0)))

    cnt = jnp.zeros((NP,), jnp.float32).at[row].add(1.0)
    invc = (coords_weight / jnp.maximum(cnt, 1.0))[:, None]      # (NP, 1)

    h0_p = jnp.pad(h0.astype(jnp.float32), ((0, NP - N), (0, 0)))
    x0_slab = jnp.zeros((NP, HP), jnp.float32).at[:N, H:H + 3].set(
        x.astype(jnp.float32))
    cmask = jnp.zeros((1, HP), jnp.float32).at[0, H:H + 3].set(1.0)

    def pad2(w, rr, cc):
        pr, pc = rr - w.shape[-2], cc - w.shape[-1]
        return jnp.pad(w, [(0, 0)] * (w.ndim - 2) + [(0, pr), (0, pc)])

    ew1 = params["edge_w1"]                       # (L, 2H+1+enf, H)
    nw1 = params["node_w1"]                       # (L, 2H+in_node_nf, H)
    W = dict(
        embw=pad2(params["emb_w"], in_node_nf, HP),
        embb=pad2(params["emb_b"], 1, HP),
        ew1s=pad2(ew1[:, :H, :], HP, HP),
        ew1d=pad2(ew1[:, H:2 * H, :], HP, HP),
        ew1r=pad2(ew1[:, 2 * H:2 * H + 1, :], 1, HP),
        ew1e=pad2(ew1[:, 2 * H + 1:, :], enf, HP),
        eb1=pad2(params["edge_b1"], 1, HP),
        ew2=pad2(params["edge_w2"], HP, HP),
        eb2=pad2(params["edge_b2"], 1, HP),
        nw1h=pad2(nw1[:, :H, :], HP, HP),
        nw1a=pad2(nw1[:, H:2 * H, :], HP, HP),
        nw1n=pad2(nw1[:, 2 * H:, :], in_node_nf, HP),
        nb1=pad2(params["node_b1"], 1, HP),
        nw2=pad2(params["node_w2"], HP, HP),
        nb2=pad2(params["node_b2"], 1, HP),
        cw1=pad2(params["coord_w1"], HP, HP),
        cb1=pad2(params["coord_b1"], 1, HP),
        cw2=pad2(params["coord_w2"], HP, 1),
    )

    def const2(shape):
        return pl.BlockSpec(shape, lambda l, e: (0, 0))

    def edge2(shape):
        return pl.BlockSpec(shape, lambda l, e: (e, 0))

    def layer3(shape):
        return pl.BlockSpec((None,) + shape, lambda l, e: (l, 0, 0))

    in_specs = [
        const2((NP, in_node_nf)),     # h0
        const2((NP, HP)),             # x0 slab (coords on lanes H..H+2)
        const2((NP, 1)),              # coords_weight / max(count, 1)
        const2((1, HP)),              # coord-lane mask
        edge2((TE, enf)),             # edge_attr tile
        edge2((TE, NP)),              # srow tile (bf16)
        edge2((TE, NP)),              # scol tile (bf16)
        pl.BlockSpec((NP, TE), lambda l, e: (0, e)),   # srow^T tile (bf16)
        const2((in_node_nf, HP)),     # emb_w
        const2((1, HP)),              # emb_b
        layer3((HP, HP)),             # ew1s
        layer3((HP, HP)),             # ew1d
        layer3((1, HP)),              # ew1r
        layer3((enf, HP)),            # ew1e
        layer3((1, HP)),              # eb1
        layer3((HP, HP)),             # ew2
        layer3((1, HP)),              # eb2
        layer3((HP, HP)),             # nw1h
        layer3((HP, HP)),             # nw1a
        layer3((in_node_nf, HP)),     # nw1n
        layer3((1, HP)),              # nb1
        layer3((HP, HP)),             # nw2
        layer3((1, HP)),              # nb2
        layer3((HP, HP)),             # cw1
        layer3((1, HP)),              # cb1
        layer3((HP, 1)),              # cw2
    ]

    inputs = (
        h0_p, x0_slab, invc, cmask, ea, srow, scol, srowt,
        W["embw"], W["embb"],
        W["ew1s"], W["ew1d"], W["ew1r"], W["ew1e"], W["eb1"], W["ew2"], W["eb2"],
        W["nw1h"], W["nw1a"], W["nw1n"], W["nb1"], W["nw2"], W["nb2"],
        W["cw1"], W["cb1"], W["cw2"],
    )

    # --- scoped-VMEM budget from the resident set, clamped per generation ---
    def _pb(r, c, itemsize):
        return _round_up(r, 8) * _round_up(c, 128) * itemsize

    per_layer_w = (7 * _pb(HP, HP, 4) + 6 * _pb(1, HP, 4) + _pb(enf, HP, 4)
                   + _pb(in_node_nf, HP, 4) + _pb(HP, 1, 4))
    edge_stream = 2 * (2 * _pb(TE, NP, 2) + _pb(NP, TE, 2) + _pb(TE, enf, 4))
    const_in = (_pb(NP, in_node_nf, 4) + _pb(NP, HP, 4) + _pb(NP, 1, 4)
                + 2 * _pb(1, HP, 4) + _pb(in_node_nf, HP, 4))
    resident = edge_stream + const_in + 2 * per_layer_w + 2 * _pb(NP, HP, 4)
    temps = 12 * _pb(TE, HP, 4) + 2 * _pb(NP, HP, 4) + _pb(TE, NP, 2)
    try:
        cap = (int(pltpu.get_tpu_info().vmem_capacity_bytes)
               if hasattr(pltpu, "get_tpu_info") else (64 << 20))
    except Exception:  # pragma: no cover - robust fallback off-TPU / older jax
        cap = 64 << 20
    usable = max(32 << 20, int(cap * 0.9))
    vmem_limit = int(min(max(resident + temps + (4 << 20), 32 << 20), usable))

    out = pl.pallas_call(
        _egnn_kernel,
        out_shape=jax.ShapeDtypeStruct((NP, HP), jnp.float32),
        grid_spec=pltpu.PrefetchScalarGridSpec(
            num_scalar_prefetch=0,
            grid=(L, n_et),
            in_specs=in_specs,
            # constant index map => the [h|x] state slab stays VMEM-resident
            # for the whole grid and doubles as the node-state buffer.
            out_specs=pl.BlockSpec((NP, HP), lambda l, e: (0, 0)),
            scratch_shapes=[pltpu.VMEM((NP, HP), jnp.float32)],  # scatter accum
        ),
        compiler_params=pltpu.CompilerParams(
            dimension_semantics=("arbitrary", "arbitrary"),
            vmem_limit_bytes=vmem_limit),
    )(*inputs)

    return out[:N, :H], out[:N, H:H + 3]


# ---------------------------------------------------------------------------
# Deterministic parameter init (PyTorch-Linear-style uniform; coord_mlp final
# layer xavier_uniform with gain=0.001, no bias)
# ---------------------------------------------------------------------------
def init_params(key, in_node_nf, in_edge_nf, hidden_nf, n_layers):
    def linear(k, fan_in, fan_out, bias=True, xavier_gain=None):
        kw, kb = jax.random.split(k)
        if xavier_gain is None:
            bound = 1.0 / np.sqrt(fan_in)
        else:
            bound = xavier_gain * np.sqrt(6.0 / (fan_in + fan_out))
        w = jax.random.uniform(kw, (fan_in, fan_out), jnp.float32, -bound, bound)
        if not bias:
            return w, None
        bb = 1.0 / np.sqrt(fan_in)
        b = jax.random.uniform(kb, (1, fan_out), jnp.float32, -bb, bb)
        return w, b

    H = hidden_nf
    edge_in = 2 * H + 1 + in_edge_nf
    node_in = 2 * H + in_node_nf          # node_attr = h0 (in_node_nf)

    keys = jax.random.split(key, 2 + 8 * n_layers)
    emb_w, emb_b = linear(keys[0], in_node_nf, H)

    p = {"emb_w": emb_w, "emb_b": emb_b}
    names = [("edge_w1", "edge_b1"), ("edge_w2", "edge_b2"),
             ("node_w1", "node_b1"), ("node_w2", "node_b2"),
             ("coord_w1", "coord_b1")]
    acc = {n: [] for pair in names for n in pair}
    acc["coord_w2"] = []
    ki = 2
    for _ in range(n_layers):
        w, b = linear(keys[ki], edge_in, H); ki += 1
        acc["edge_w1"].append(w); acc["edge_b1"].append(b)
        w, b = linear(keys[ki], H, H); ki += 1
        acc["edge_w2"].append(w); acc["edge_b2"].append(b)
        w, b = linear(keys[ki], node_in, H); ki += 1
        acc["node_w1"].append(w); acc["node_b1"].append(b)
        w, b = linear(keys[ki], H, H); ki += 1
        acc["node_w2"].append(w); acc["node_b2"].append(b)
        w, b = linear(keys[ki], H, H); ki += 1
        acc["coord_w1"].append(w); acc["coord_b1"].append(b)
        w, _ = linear(keys[ki], H, 1, bias=False, xavier_gain=0.001); ki += 1
        acc["coord_w2"].append(w)
    for k_, v in acc.items():
        p[k_] = jnp.stack(v, axis=0)
    return p


# ---------------------------------------------------------------------------
# Pure-JAX reference (mirrors the PyTorch EGNN/E_GCL forward), f32 ground truth
# ---------------------------------------------------------------------------
def egnn_reference(h0, x, edge_index, edge_attr, params, coords_weight=1.0):
    def rdot(a, b):
        return jnp.dot(a, b, precision=lax.Precision.HIGHEST)

    row, col = edge_index[0], edge_index[1]
    N = h0.shape[0]
    h = rdot(h0, params["emb_w"]) + params["emb_b"]
    L = params["edge_w1"].shape[0]
    for l in range(L):
        coord_diff = x[row] - x[col]
        radial = jnp.sum(coord_diff ** 2, axis=1, keepdims=True)
        edge_in = jnp.concatenate([h[row], h[col], radial, edge_attr], axis=1)
        m = jax.nn.silu(rdot(edge_in, params["edge_w1"][l]) + params["edge_b1"][l])
        m = jax.nn.silu(rdot(m, params["edge_w2"][l]) + params["edge_b2"][l])
        c = rdot(jax.nn.silu(rdot(m, params["coord_w1"][l]) + params["coord_b1"][l]),
                 params["coord_w2"][l])
        trans = coord_diff * c
        agg = jnp.zeros((N, 3), jnp.float32).at[row].add(trans)
        cnt = jnp.zeros((N, 1), jnp.float32).at[row].add(1.0)
        x = x + (agg / jnp.maximum(cnt, 1.0)) * coords_weight
        agg_m = jnp.zeros((N, h.shape[1]), jnp.float32).at[row].add(m)
        node_in = jnp.concatenate([h, agg_m, h0], axis=1)
        h = h + (rdot(jax.nn.silu(rdot(node_in, params["node_w1"][l])
                                  + params["node_b1"][l]),
                      params["node_w2"][l]) + params["node_b2"][l])
    return h, x


if __name__ == "__main__":
    key = jax.random.PRNGKey(0)
    N, in_node_nf, in_edge_nf, hidden_nf, n_layers = 8, 8, 4, 32, 4

    k1, k2, k3, kp = jax.random.split(key, 4)
    h0 = jax.random.normal(k1, (N, in_node_nf), jnp.float32)
    x = jax.random.normal(k2, (N, 3), jnp.float32)

    rows, cols = [], []
    for i in range(N):
        for j in range(N):
            if i != j:
                rows.append(i)
                cols.append(j)
    edge_index = jnp.array([rows, cols], dtype=jnp.int32)   # (2, E)
    E = edge_index.shape[1]
    edge_attr = jax.random.normal(k3, (E, in_edge_nf), jnp.float32)

    params = init_params(kp, in_node_nf, in_edge_nf, hidden_nf, n_layers)

    h_out, x_out = egnn_pallas(h0, x, edge_index, edge_attr, params)
    jax.block_until_ready((h_out, x_out))

    h_ref, x_ref = egnn_reference(h0, x, edge_index, edge_attr, params)
    # Tolerance sized for 1-pass bf16 MXU operand rounding accumulated over
    # n_layers (kernel runs at Precision.DEFAULT; reference is f32 HIGHEST).
    np.testing.assert_allclose(np.asarray(h_out), np.asarray(h_ref),
                               rtol=3e-2, atol=3e-2)
    np.testing.assert_allclose(np.asarray(x_out), np.asarray(x_ref),
                               rtol=3e-2, atol=3e-2)

    print("KERNEL_OK")
</pallas_src>

<mosaic_0001>
module attributes {stable_mosaic.version = 11 : i64} {
  func.func @_egnn_kernel(%arg0: i32, %arg1: i32, %arg2: memref<8x8xf32, #tpu.memory_space<vmem>>, %arg3: memref<8x128xf32, #tpu.memory_space<vmem>>, %arg4: memref<8x1xf32, #tpu.memory_space<vmem>>, %arg5: memref<1x128xf32, #tpu.memory_space<vmem>>, %arg6: memref<128x4xf32, #tpu.memory_space<vmem>>, %arg7: memref<128x8xbf16, #tpu.memory_space<vmem>>, %arg8: memref<128x8xbf16, #tpu.memory_space<vmem>>, %arg9: memref<8x128xbf16, #tpu.memory_space<vmem>>, %arg10: memref<8x128xf32, #tpu.memory_space<vmem>>, %arg11: memref<1x128xf32, #tpu.memory_space<vmem>>, %arg12: memref<1x128x128xf32, #tpu.memory_space<vmem>>, %arg13: memref<1x128x128xf32, #tpu.memory_space<vmem>>, %arg14: memref<1x1x128xf32, #tpu.memory_space<vmem>>, %arg15: memref<1x4x128xf32, #tpu.memory_space<vmem>>, %arg16: memref<1x1x128xf32, #tpu.memory_space<vmem>>, %arg17: memref<1x128x128xf32, #tpu.memory_space<vmem>>, %arg18: memref<1x1x128xf32, #tpu.memory_space<vmem>>, %arg19: memref<1x128x128xf32, #tpu.memory_space<vmem>>, %arg20: memref<1x128x128xf32, #tpu.memory_space<vmem>>, %arg21: memref<1x8x128xf32, #tpu.memory_space<vmem>>, %arg22: memref<1x1x128xf32, #tpu.memory_space<vmem>>, %arg23: memref<1x128x128xf32, #tpu.memory_space<vmem>>, %arg24: memref<1x1x128xf32, #tpu.memory_space<vmem>>, %arg25: memref<1x128x128xf32, #tpu.memory_space<vmem>>, %arg26: memref<1x1x128xf32, #tpu.memory_space<vmem>>, %arg27: memref<1x128x1xf32, #tpu.memory_space<vmem>>, %arg28: memref<8x128xf32, #tpu.memory_space<vmem>>, %arg29: memref<8x128xf32, #tpu.memory_space<vmem>>) attributes {dimension_semantics = [#tpu.dimension_semantics<arbitrary>, #tpu.dimension_semantics<arbitrary>], iteration_bounds = array<i64: 4, 1>, scalar_prefetch = 0 : i64, scratch_operands = 1 : i64, tpu.core_type = #tpu.core_type<tc>, window_params = [{pipeline_mode = #tpu.pipeline_mode<synchronous>, transform_indices = @transform_0, window_bounds = array<i64: 8, 8>}, {pipeline_mode = #tpu.pipeline_mode<synchronous>, transform_indices = @transform_1, window_bounds = array<i64: 8, 128>}, {pipeline_mode = #tpu.pipeline_mode<synchronous>, transform_indices = @transform_2, window_bounds = array<i64: 8, 1>}, {pipeline_mode = #tpu.pipeline_mode<synchronous>, transform_indices = @transform_3, window_bounds = array<i64: 1, 128>}, {transform_indices = @transform_4, window_bounds = array<i64: 128, 4>}, {transform_indices = @transform_5, window_bounds = array<i64: 128, 8>}, {transform_indices = @transform_6, window_bounds = array<i64: 128, 8>}, {transform_indices = @transform_7, window_bounds = array<i64: 8, 128>}, {pipeline_mode = #tpu.pipeline_mode<synchronous>, transform_indices = @transform_8, window_bounds = array<i64: 8, 128>}, {pipeline_mode = #tpu.pipeline_mode<synchronous>, transform_indices = @transform_9, window_bounds = array<i64: 1, 128>}, {transform_indices = @transform_10, window_bounds = array<i64: 1, 128, 128>}, {transform_indices = @transform_11, window_bounds = array<i64: 1, 128, 128>}, {transform_indices = @transform_12, window_bounds = array<i64: 1, 1, 128>}, {transform_indices = @transform_13, window_bounds = array<i64: 1, 4, 128>}, {transform_indices = @transform_14, window_bounds = array<i64: 1, 1, 128>}, {transform_indices = @transform_15, window_bounds = array<i64: 1, 128, 128>}, {transform_indices = @transform_16, window_bounds = array<i64: 1, 1, 128>}, {transform_indices = @transform_17, window_bounds = array<i64: 1, 128, 128>}, {transform_indices = @transform_18, window_bounds = array<i64: 1, 128, 128>}, {transform_indices = @transform_19, window_bounds = array<i64: 1, 8, 128>}, {transform_indices = @transform_20, window_bounds = array<i64: 1, 1, 128>}, {transform_indices = @transform_21, window_bounds = array<i64: 1, 128, 128>}, {transform_indices = @transform_22, window_bounds = array<i64: 1, 1, 128>}, {transform_indices = @transform_23, window_bounds = array<i64: 1, 128, 128>}, {transform_indices = @transform_24, window_bounds = array<i64: 1, 1, 128>}, {transform_indices = @transform_25, window_bounds = array<i64: 1, 128, 1>}, {pipeline_mode = #tpu.pipeline_mode<synchronous>, transform_indices = @transform_26, window_bounds = array<i64: 8, 128>}]} {
    %c0_i32 = arith.constant 0 : i32
    %0 = arith.cmpi eq, %arg0, %c0_i32 : i32
    %c0_i32_0 = arith.constant 0 : i32
    %1 = arith.cmpi eq, %arg1, %c0_i32_0 : i32
    %2 = arith.andi %0, %1 : i1
    %3 = arith.extui %2 : i1 to i32
    %c0_i32_1 = arith.constant 0 : i32
    %4 = arith.cmpi ne, %3, %c0_i32_1 : i32
    scf.if %4 {
      %c0_63 = arith.constant 0 : index
      %c0_64 = arith.constant 0 : index
      %90 = vector.load %arg3[%c0_63, %c0_64] : memref<8x128xf32, #tpu.memory_space<vmem>>, vector<8x128xf32>
      %c0_65 = arith.constant 0 : index
      %c0_66 = arith.constant 0 : index
      %91 = vector.load %arg2[%c0_65, %c0_66] : memref<8x8xf32, #tpu.memory_space<vmem>>, vector<8x8xf32>
      %c0_67 = arith.constant 0 : index
      %c0_68 = arith.constant 0 : index
      %92 = vector.load %arg10[%c0_67, %c0_68] : memref<8x128xf32, #tpu.memory_space<vmem>>, vector<8x128xf32>
      %cst_69 = arith.constant dense<0.000000e+00> : vector<8x128xf32>
      %93 = tpu.matmul %91, %92, %cst_69 {dimension_numbers = #tpu.dot_dimension_numbers<[1], [0], [0], [1], [0, 0, 1, 1], [], []>} : vector<8x8xf32>, vector<8x128xf32>, vector<8x128xf32> -> vector<8x128xf32>
      %94 = arith.addf %90, %93 : vector<8x128xf32>
      %c0_70 = arith.constant 0 : index
      %c0_71 = arith.constant 0 : index
      %95 = vector.load %arg11[%c0_70, %c0_71] : memref<1x128xf32, #tpu.memory_space<vmem>>, vector<1x128xf32>
      %96 = vector.broadcast %95 : vector<1x128xf32> to vector<8x128xf32>
      %97 = arith.addf %94, %96 : vector<8x128xf32>
      %c0_72 = arith.constant 0 : index
      %c0_73 = arith.constant 0 : index
      %98 = vector.load %arg28[%c0_72, %c0_73] : memref<8x128xf32, #tpu.memory_space<vmem>>, vector<8x128xf32>
      tpu.vector_store %arg28[%c0_72, %c0_73], %97 {strides = array<i32>} : memref<8x128xf32, #tpu.memory_space<vmem>>, vector<8x128xf32>,
    } else {
    }
    %c0_i32_2 = arith.constant 0 : i32
    %5 = arith.cmpi eq, %arg1, %c0_i32_2 : i32
    %6 = arith.extui %5 : i1 to i32
    %c0_i32_3 = arith.constant 0 : i32
    %7 = arith.cmpi ne, %6, %c0_i32_3 : i32
    scf.if %7 {
      %cst_63 = arith.constant 0.000000e+00 : f32
      %90 = vector.broadcast %cst_63 : f32 to vector<8x128xf32>
      %c0_64 = arith.constant 0 : index
      %c0_65 = arith.constant 0 : index
      %91 = vector.load %arg29[%c0_64, %c0_65] : memref<8x128xf32, #tpu.memory_space<vmem>>, vector<8x128xf32>
      tpu.vector_store %arg29[%c0_64, %c0_65], %90 {strides = array<i32>} : memref<8x128xf32, #tpu.memory_space<vmem>>, vector<8x128xf32>,
    } else {
    }
    %c0 = arith.constant 0 : index
    %c0_4 = arith.constant 0 : index
    %8 = vector.load %arg5[%c0, %c0_4] : memref<1x128xf32, #tpu.memory_space<vmem>>, vector<1x128xf32>
    %c0_5 = arith.constant 0 : index
    %c0_6 = arith.constant 0 : index
    %9 = vector.load %arg28[%c0_5, %c0_6] : memref<8x128xf32, #tpu.memory_space<vmem>>, vector<8x128xf32>
    %10 = arith.truncf %9 : vector<8x128xf32> to vector<8x128xbf16>
    %c0_7 = arith.constant 0 : index
    %c0_8 = arith.constant 0 : index
    %11 = vector.load %arg7[%c0_7, %c0_8] : memref<128x8xbf16, #tpu.memory_space<vmem>>, vector<128x8xbf16>
    %cst = arith.constant dense<0.000000e+00> : vector<128x128xf32>
    %12 = tpu.matmul %11, %10, %cst {dimension_numbers = #tpu.dot_dimension_numbers<[1], [0], [0], [1], [0, 0, 1, 1], [], []>} : vector<128x8xbf16>, vector<8x128xbf16>, vector<128x128xf32> -> vector<128x128xf32>
    %c0_9 = arith.constant 0 : index
    %c0_10 = arith.constant 0 : index
    %13 = vector.load %arg8[%c0_9, %c0_10] : memref<128x8xbf16, #tpu.memory_space<vmem>>, vector<128x8xbf16>
    %cst_11 = arith.constant dense<0.000000e+00> : vector<128x128xf32>
    %14 = tpu.matmul %13, %10, %cst_11 {dimension_numbers = #tpu.dot_dimension_numbers<[1], [0], [0], [1], [0, 0, 1, 1], [], []>} : vector<128x8xbf16>, vector<8x128xbf16>, vector<128x128xf32> -> vector<128x128xf32>
    %15 = arith.subf %12, %14 : vector<128x128xf32>
    %16 = vector.broadcast %8 : vector<1x128xf32> to vector<128x128xf32>
    %17 = arith.mulf %15, %16 : vector<128x128xf32>
    %18 = arith.mulf %17, %17 : vector<128x128xf32>
    %cst_12 = arith.constant dense<0.000000e+00> : vector<128xf32>
    %19 = vector.multi_reduction <add>, %18, %cst_12 [1] : vector<128x128xf32> to vector<128xf32>
    %20 = vector.shape_cast %19 : vector<128xf32> to vector<128x1xf32>
    %c0_13 = arith.constant 0 : index
    %c0_14 = arith.constant 0 : index
    %c0_15 = arith.constant 0 : index
    %21 = vector.load %arg12[%c0_13, %c0_14, %c0_15] : memref<1x128x128xf32, #tpu.memory_space<vmem>>, vector<1x128x128xf32>
    %22 = vector.shape_cast %21 : vector<1x128x128xf32> to vector<128x128xf32>
    %cst_16 = arith.constant dense<0.000000e+00> : vector<128x128xf32>
    %23 = tpu.matmul %12, %22, %cst_16 {dimension_numbers = #tpu.dot_dimension_numbers<[1], [0], [0], [1], [0, 0, 1, 1], [], []>} : vector<128x128xf32>, vector<128x128xf32>, vector<128x128xf32> -> vector<128x128xf32>
    %c0_17 = arith.constant 0 : index
    %c0_18 = arith.constant 0 : index
    %c0_19 = arith.constant 0 : index
    %24 = vector.load %arg13[%c0_17, %c0_18, %c0_19] : memref<1x128x128xf32, #tpu.memory_space<vmem>>, vector<1x128x128xf32>
    %25 = vector.shape_cast %24 : vector<1x128x128xf32> to vector<128x128xf32>
    %cst_20 = arith.constant dense<0.000000e+00> : vector<128x128xf32>
    %26 = tpu.matmul %14, %25, %cst_20 {dimension_numbers = #tpu.dot_dimension_numbers<[1], [0], [0], [1], [0, 0, 1, 1], [], []>} : vector<128x128xf32>, vector<128x128xf32>, vector<128x128xf32> -> vector<128x128xf32>
    %27 = arith.addf %23, %26 : vector<128x128xf32>
    %c0_21 = arith.constant 0 : index
    %c0_22 = arith.constant 0 : index
    %c0_23 = arith.constant 0 : index
    %28 = vector.load %arg14[%c0_21, %c0_22, %c0_23] : memref<1x1x128xf32, #tpu.memory_space<vmem>>, vector<1x1x128xf32>
    %29 = vector.shape_cast %28 : vector<1x1x128xf32> to vector<1x128xf32>
    %30 = vector.broadcast %20 : vector<128x1xf32> to vector<128x128xf32>
    %31 = vector.broadcast %29 : vector<1x128xf32> to vector<128x128xf32>
    %32 = arith.mulf %30, %31 : vector<128x128xf32>
    %33 = arith.addf %27, %32 : vector<128x128xf32>
    %c0_24 = arith.constant 0 : index
    %c0_25 = arith.constant 0 : index
    %34 = vector.load %arg6[%c0_24, %c0_25] : memref<128x4xf32, #tpu.memory_space<vmem>>, vector<128x4xf32>
    %c0_26 = arith.constant 0 : index
    %c0_27 = arith.constant 0 : index
    %c0_28 = arith.constant 0 : index
    %35 = vector.load %arg15[%c0_26, %c0_27, %c0_28] : memref<1x4x128xf32, #tpu.memory_space<vmem>>, vector<1x4x128xf32>
    %36 = vector.shape_cast %35 : vector<1x4x128xf32> to vector<4x128xf32>
    %cst_29 = arith.constant dense<0.000000e+00> : vector<128x128xf32>
    %37 = tpu.matmul %34, %36, %cst_29 {dimension_numbers = #tpu.dot_dimension_numbers<[1], [0], [0], [1], [0, 0, 1, 1], [], []>} : vector<128x4xf32>, vector<4x128xf32>, vector<128x128xf32> -> vector<128x128xf32>
    %38 = arith.addf %33, %37 : vector<128x128xf32>
    %c0_30 = arith.constant 0 : index
    %c0_31 = arith.constant 0 : index
    %c0_32 = arith.constant 0 : index
    %39 = vector.load %arg16[%c0_30, %c0_31, %c0_32] : memref<1x1x128xf32, #tpu.memory_space<vmem>>, vector<1x1x128xf32>
    %40 = vector.shape_cast %39 : vector<1x1x128xf32> to vector<1x128xf32>
    %41 = vector.broadcast %40 : vector<1x128xf32> to vector<128x128xf32>
    %42 = arith.addf %38, %41 : vector<128x128xf32>
    %43 = arith.negf %42 : vector<128x128xf32>
    %44 = math.exp %43 : vector<128x128xf32>
    %cst_33 = arith.constant 1.000000e+00 : f32
    %45 = vector.broadcast %cst_33 : f32 to vector<128x128xf32>
    %46 = arith.addf %45, %44 : vector<128x128xf32>
    %47 = arith.divf %45, %46 : vector<128x128xf32>
    %48 = arith.mulf %42, %47 : vector<128x128xf32>
    %c0_34 = arith.constant 0 : index
    %c0_35 = arith.constant 0 : index
    %c0_36 = arith.constant 0 : index
    %49 = vector.load %arg17[%c0_34, %c0_35, %c0_36] : memref<1x128x128xf32, #tpu.memory_space<vmem>>, vector<1x128x128xf32>
    %50 = vector.shape_cast %49 : vector<1x128x128xf32> to vector<128x128xf32>
    %cst_37 = arith.constant dense<0.000000e+00> : vector<128x128xf32>
    %51 = tpu.matmul %48, %50, %cst_37 {dimension_numbers = #tpu.dot_dimension_numbers<[1], [0], [0], [1], [0, 0, 1, 1], [], []>} : vector<128x128xf32>, vector<128x128xf32>, vector<128x128xf32> -> vector<128x128xf32>
    %c0_38 = arith.constant 0 : index
    %c0_39 = arith.constant 0 : index
    %c0_40 = arith.constant 0 : index
    %52 = vector.load %arg18[%c0_38, %c0_39, %c0_40] : memref<1x1x128xf32, #tpu.memory_space<vmem>>, vector<1x1x128xf32>
    %53 = vector.shape_cast %52 : vector<1x1x128xf32> to vector<1x128xf32>
    %54 = vector.broadcast %53 : vector<1x128xf32> to vector<128x128xf32>
    %55 = arith.addf %51, %54 : vector<128x128xf32>
    %56 = arith.negf %55 : vector<128x128xf32>
    %57 = math.exp %56 : vector<128x128xf32>
    %cst_41 = arith.constant 1.000000e+00 : f32
    %58 = vector.broadcast %cst_41 : f32 to vector<128x128xf32>
    %59 = arith.addf %58, %57 : vector<128x128xf32>
    %60 = arith.divf %58, %59 : vector<128x128xf32>
    %61 = arith.mulf %55, %60 : vector<128x128xf32>
    %c0_42 = arith.constant 0 : index
    %c0_43 = arith.constant 0 : index
    %c0_44 = arith.constant 0 : index
    %62 = vector.load %arg25[%c0_42, %c0_43, %c0_44] : memref<1x128x128xf32, #tpu.memory_space<vmem>>, vector<1x128x128xf32>
    %63 = vector.shape_cast %62 : vector<1x128x128xf32> to vector<128x128xf32>
    %cst_45 = arith.constant dense<0.000000e+00> : vector<128x128xf32>
    %64 = tpu.matmul %61, %63, %cst_45 {dimension_numbers = #tpu.dot_dimension_numbers<[1], [0], [0], [1], [0, 0, 1, 1], [], []>} : vector<128x128xf32>, vector<128x128xf32>, vector<128x128xf32> -> vector<128x128xf32>
    %c0_46 = arith.constant 0 : index
    %c0_47 = arith.constant 0 : index
    %c0_48 = arith.constant 0 : index
    %65 = vector.load %arg26[%c0_46, %c0_47, %c0_48] : memref<1x1x128xf32, #tpu.memory_space<vmem>>, vector<1x1x128xf32>
    %66 = vector.shape_cast %65 : vector<1x1x128xf32> to vector<1x128xf32>
    %67 = vector.broadcast %66 : vector<1x128xf32> to vector<128x128xf32>
    %68 = arith.addf %64, %67 : vector<128x128xf32>
    %69 = arith.negf %68 : vector<128x128xf32>
    %70 = math.exp %69 : vector<128x128xf32>
    %cst_49 = arith.constant 1.000000e+00 : f32
    %71 = vector.broadcast %cst_49 : f32 to vector<128x128xf32>
    %72 = arith.addf %71, %70 : vector<128x128xf32>
    %73 = arith.divf %71, %72 : vector<128x128xf32>
    %74 = arith.mulf %68, %73 : vector<128x128xf32>
    %c0_50 = arith.constant 0 : index
    %c0_51 = arith.constant 0 : index
    %c0_52 = arith.constant 0 : index
    %75 = vector.load %arg27[%c0_50, %c0_51, %c0_52] : memref<1x128x1xf32, #tpu.memory_space<vmem>>, vector<1x128x1xf32>
    %76 = vector.shape_cast %75 : vector<1x128x1xf32> to vector<128x1xf32>
    %cst_53 = arith.constant dense<0.000000e+00> : vector<128x1xf32>
    %77 = tpu.matmul %74, %76, %cst_53 {dimension_numbers = #tpu.dot_dimension_numbers<[1], [0], [0], [1], [0, 0, 1, 1], [], []>} : vector<128x128xf32>, vector<128x1xf32>, vector<128x1xf32> -> vector<128x1xf32>
    %78 = vector.broadcast %77 : vector<128x1xf32> to vector<128x128xf32>
    %79 = arith.mulf %17, %78 : vector<128x128xf32>
    %80 = arith.addf %61, %79 : vector<128x128xf32>
    %c0_54 = arith.constant 0 : index
    %c0_55 = arith.constant 0 : index
    %81 = vector.load %arg29[%c0_54, %c0_55] : memref<8x128xf32, #tpu.memory_space<vmem>>, vector<8x128xf32>
    %c0_56 = arith.constant 0 : index
    %c0_57 = arith.constant 0 : index
    %82 = vector.load %arg9[%c0_56, %c0_57] : memref<8x128xbf16, #tpu.memory_space<vmem>>, vector<8x128xbf16>
    %83 = arith.truncf %80 : vector<128x128xf32> to vector<128x128xbf16>
    %cst_58 = arith.constant dense<0.000000e+00> : vector<8x128xf32>
    %84 = tpu.matmul %82, %83, %cst_58 {dimension_numbers = #tpu.dot_dimension_numbers<[1], [0], [0], [1], [0, 0, 1, 1], [], []>} : vector<8x128xbf16>, vector<128x128xbf16>, vector<8x128xf32> -> vector<8x128xf32>
    %85 = arith.addf %81, %84 : vector<8x128xf32>
    %c0_59 = arith.constant 0 : index
    %c0_60 = arith.constant 0 : index
    %86 = vector.load %arg29[%c0_59, %c0_60] : memref<8x128xf32, #tpu.memory_space<vmem>>, vector<8x128xf32>
    tpu.vector_store %arg29[%c0_59, %c0_60], %85 {strides = array<i32>} : memref<8x128xf32, #tpu.memory_space<vmem>>, vector<8x128xf32>,
    %c0_i32_61 = arith.constant 0 : i32
    %87 = arith.cmpi eq, %arg1, %c0_i32_61 : i32
    %88 = arith.extui %87 : i1 to i32
    %c0_i32_62 = arith.constant 0 : i32
    %89 = arith.cmpi ne, %88, %c0_i32_62 : i32
    scf.if %89 {
      %c0_63 = arith.constant 0 : index
      %c0_64 = arith.constant 0 : index
      %90 = vector.load %arg28[%c0_63, %c0_64] : memref<8x128xf32, #tpu.memory_space<vmem>>, vector<8x128xf32>
      %c0_65 = arith.constant 0 : index
      %c0_66 = arith.constant 0 : index
      %91 = vector.load %arg29[%c0_65, %c0_66] : memref<8x128xf32, #tpu.memory_space<vmem>>, vector<8x128xf32>
      %c0_67 = arith.constant 0 : index
      %c0_68 = arith.constant 0 : index
      %c0_69 = arith.constant 0 : index
      %92 = vector.load %arg19[%c0_67, %c0_68, %c0_69] : memref<1x128x128xf32, #tpu.memory_space<vmem>>, vector<1x128x128xf32>
      %93 = vector.shape_cast %92 : vector<1x128x128xf32> to vector<128x128xf32>
      %cst_70 = arith.constant dense<0.000000e+00> : vector<8x128xf32>
      %94 = tpu.matmul %90, %93, %cst_70 {dimension_numbers = #tpu.dot_dimension_numbers<[1], [0], [0], [1], [0, 0, 1, 1], [], []>} : vector<8x128xf32>, vector<128x128xf32>, vector<8x128xf32> -> vector<8x128xf32>
      %c0_71 = arith.constant 0 : index
      %c0_72 = arith.constant 0 : index
      %c0_73 = arith.constant 0 : index
      %95 = vector.load %arg20[%c0_71, %c0_72, %c0_73] : memref<1x128x128xf32, #tpu.memory_space<vmem>>, vector<1x128x128xf32>
      %96 = vector.shape_cast %95 : vector<1x128x128xf32> to vector<128x128xf32>
      %cst_74 = arith.constant dense<0.000000e+00> : vector<8x128xf32>
      %97 = tpu.matmul %91, %96, %cst_74 {dimension_numbers = #tpu.dot_dimension_numbers<[1], [0], [0], [1], [0, 0, 1, 1], [], []>} : vector<8x128xf32>, vector<128x128xf32>, vector<8x128xf32> -> vector<8x128xf32>
      %98 = arith.addf %94, %97 : vector<8x128xf32>
      %c0_75 = arith.constant 0 : index
      %c0_76 = arith.constant 0 : index
      %99 = vector.load %arg2[%c0_75, %c0_76] : memref<8x8xf32, #tpu.memory_space<vmem>>, vector<8x8xf32>
      %c0_77 = arith.constant 0 : index
      %c0_78 = arith.constant 0 : index
      %c0_79 = arith.constant 0 : index
      %100 = vector.load %arg21[%c0_77, %c0_78, %c0_79] : memref<1x8x128xf32, #tpu.memory_space<vmem>>, vector<1x8x128xf32>
      %101 = vector.shape_cast %100 : vector<1x8x128xf32> to vector<8x128xf32>
      %cst_80 = arith.constant dense<0.000000e+00> : vector<8x128xf32>
      %102 = tpu.matmul %99, %101, %cst_80 {dimension_numbers = #tpu.dot_dimension_numbers<[1], [0], [0], [1], [0, 0, 1, 1], [], []>} : vector<8x8xf32>, vector<8x128xf32>, vector<8x128xf32> -> vector<8x128xf32>
      %103 = arith.addf %98, %102 : vector<8x128xf32>
      %c0_81 = arith.constant 0 : index
      %c0_82 = arith.constant 0 : index
      %c0_83 = arith.constant 0 : index
      %104 = vector.load %arg22[%c0_81, %c0_82, %c0_83] : memref<1x1x128xf32, #tpu.memory_space<vmem>>, vector<1x1x128xf32>
      %105 = vector.shape_cast %104 : vector<1x1x128xf32> to vector<1x128xf32>
      %106 = vector.broadcast %105 : vector<1x128xf32> to vector<8x128xf32>
      %107 = arith.addf %103, %106 : vector<8x128xf32>
      %108 = arith.negf %107 : vector<8x128xf32>
      %109 = math.exp %108 : vector<8x128xf32>
      %cst_84 = arith.constant 1.000000e+00 : f32
      %110 = vector.broadcast %cst_84 : f32 to vector<8x128xf32>
      %111 = arith.addf %110, %109 : vector<8x128xf32>
      %112 = arith.divf %110, %111 : vector<8x128xf32>
      %113 = arith.mulf %107, %112 : vector<8x128xf32>
      %c0_85 = arith.constant 0 : index
      %c0_86 = arith.constant 0 : index
      %c0_87 = arith.constant 0 : index
      %114 = vector.load %arg23[%c0_85, %c0_86, %c0_87] : memref<1x128x128xf32, #tpu.memory_space<vmem>>, vector<1x128x128xf32>
      %115 = vector.shape_cast %114 : vector<1x128x128xf32> to vector<128x128xf32>
      %cst_88 = arith.constant dense<0.000000e+00> : vector<8x128xf32>
      %116 = tpu.matmul %113, %115, %cst_88 {dimension_numbers = #tpu.dot_dimension_numbers<[1], [0], [0], [1], [0, 0, 1, 1], [], []>} : vector<8x128xf32>, vector<128x128xf32>, vector<8x128xf32> -> vector<8x128xf32>
      %c0_89 = arith.constant 0 : index
      %c0_90 = arith.constant 0 : index
      %c0_91 = arith.constant 0 : index
      %117 = vector.load %arg24[%c0_89, %c0_90, %c0_91] : memref<1x1x128xf32, #tpu.memory_space<vmem>>, vector<1x1x128xf32>
      %118 = vector.shape_cast %117 : vector<1x1x128xf32> to vector<1x128xf32>
      %119 = vector.broadcast %118 : vector<1x128xf32> to vector<8x128xf32>
      %120 = arith.addf %116, %119 : vector<8x128xf32>
      %121 = arith.addf %90, %120 : vector<8x128xf32>
      %c0_92 = arith.constant 0 : index
      %c0_93 = arith.constant 0 : index
      %122 = vector.load %arg4[%c0_92, %c0_93] : memref<8x1xf32, #tpu.memory_space<vmem>>, vector<8x1xf32>
      %123 = vector.broadcast %122 : vector<8x1xf32> to vector<8x128xf32>
      %124 = arith.mulf %91, %123 : vector<8x128xf32>
      %125 = vector.broadcast %8 : vector<1x128xf32> to vector<8x128xf32>
      %126 = arith.mulf %124, %125 : vector<8x128xf32>
      %127 = arith.addf %121, %126 : vector<8x128xf32>
      %c0_94 = arith.constant 0 : index
      %c0_95 = arith.constant 0 : index
      %128 = vector.load %arg28[%c0_94, %c0_95] : memref<8x128xf32, #tpu.memory_space<vmem>>, vector<8x128xf32>
      tpu.vector_store %arg28[%c0_94, %c0_95], %127 {strides = array<i32>} : memref<8x128xf32, #tpu.memory_space<vmem>>, vector<8x128xf32>,
    } else {
    }
    return
  }
  func.func @transform_0(%arg0: i32, %arg1: i32) -> (i32, i32) {
    %c0_i32 = arith.constant 0 : i32
    %c0_i32_0 = arith.constant 0 : i32
    %c0_i32_1 = arith.constant 0 : i32
    return %c0_i32, %c0_i32_0 : i32, i32
  }
  func.func @transform_1(%arg0: i32, %arg1: i32) -> (i32, i32) {
    %c0_i32 = arith.constant 0 : i32
    %c0_i32_0 = arith.constant 0 : i32
    %c0_i32_1 = arith.constant 0 : i32
    return %c0_i32, %c0_i32_0 : i32, i32
  }
  func.func @transform_2(%arg0: i32, %arg1: i32) -> (i32, i32) {
    %c0_i32 = arith.constant 0 : i32
    %c0_i32_0 = arith.constant 0 : i32
    %c0_i32_1 = arith.constant 0 : i32
    return %c0_i32, %c0_i32_0 : i32, i32
  }
  func.func @transform_3(%arg0: i32, %arg1: i32) -> (i32, i32) {
    %c0_i32 = arith.constant 0 : i32
    %c0_i32_0 = arith.constant 0 : i32
    %c0_i32_1 = arith.constant 0 : i32
    return %c0_i32, %c0_i32_0 : i32, i32
  }
  func.func @transform_4(%arg0: i32, %arg1: i32) -> (i32, i32) {
    %c0_i32 = arith.constant 0 : i32
    %c0_i32_0 = arith.constant 0 : i32
    return %arg1, %c0_i32 : i32, i32
  }
  func.func @transform_5(%arg0: i32, %arg1: i32) -> (i32, i32) {
    %c0_i32 = arith.constant 0 : i32
    %c0_i32_0 = arith.constant 0 : i32
    return %arg1, %c0_i32 : i32, i32
  }
  func.func @transform_6(%arg0: i32, %arg1: i32) -> (i32, i32) {
    %c0_i32 = arith.constant 0 : i32
    %c0_i32_0 = arith.constant 0 : i32
    return %arg1, %c0_i32 : i32, i32
  }
  func.func @transform_7(%arg0: i32, %arg1: i32) -> (i32, i32) {
    %c0_i32 = arith.constant 0 : i32
    %c0_i32_0 = arith.constant 0 : i32
    return %c0_i32, %arg1 : i32, i32
  }
  func.func @transform_8(%arg0: i32, %arg1: i32) -> (i32, i32) {
    %c0_i32 = arith.constant 0 : i32
    %c0_i32_0 = arith.constant 0 : i32
    %c0_i32_1 = arith.constant 0 : i32
    return %c0_i32, %c0_i32_0 : i32, i32
  }
  func.func @transform_9(%arg0: i32, %arg1: i32) -> (i32, i32) {
    %c0_i32 = arith.constant 0 : i32
    %c0_i32_0 = arith.constant 0 : i32
    %c0_i32_1 = arith.constant 0 : i32
    return %c0_i32, %c0_i32_0 : i32, i32
  }
  func.func @transform_10(%arg0: i32, %arg1: i32) -> (i32, i32, i32) {
    %c0_i32 = arith.constant 0 : i32
    %c0_i32_0 = arith.constant 0 : i32
    %c0_i32_1 = arith.constant 0 : i32
    return %arg0, %c0_i32, %c0_i32_0 : i32, i32, i32
  }
  func.func @transform_11(%arg0: i32, %arg1: i32) -> (i32, i32, i32) {
    %c0_i32 = arith.constant 0 : i32
    %c0_i32_0 = arith.constant 0 : i32
    %c0_i32_1 = arith.constant 0 : i32
    return %arg0, %c0_i32, %c0_i32_0 : i32, i32, i32
  }
  func.func @transform_12(%arg0: i32, %arg1: i32) -> (i32, i32, i32) {
    %c0_i32 = arith.constant 0 : i32
    %c0_i32_0 = arith.constant 0 : i32
    %c0_i32_1 = arith.constant 0 : i32
    return %arg0, %c0_i32, %c0_i32_0 : i32, i32, i32
  }
  func.func @transform_13(%arg0: i32, %arg1: i32) -> (i32, i32, i32) {
    %c0_i32 = arith.constant 0 : i32
    %c0_i32_0 = arith.constant 0 : i32
    %c0_i32_1 = arith.constant 0 : i32
    return %arg0, %c0_i32, %c0_i32_0 : i32, i32, i32
  }
  func.func @transform_14(%arg0: i32, %arg1: i32) -> (i32, i32, i32) {
    %c0_i32 = arith.constant 0 : i32
    %c0_i32_0 = arith.constant 0 : i32
    %c0_i32_1 = arith.constant 0 : i32
    return %arg0, %c0_i32, %c0_i32_0 : i32, i32, i32
  }
  func.func @transform_15(%arg0: i32, %arg1: i32) -> (i32, i32, i32) {
    %c0_i32 = arith.constant 0 : i32
    %c0_i32_0 = arith.constant 0 : i32
    %c0_i32_1 = arith.constant 0 : i32
    return %arg0, %c0_i32, %c0_i32_0 : i32, i32, i32
  }
  func.func @transform_16(%arg0: i32, %arg1: i32) -> (i32, i32, i32) {
    %c0_i32 = arith.constant 0 : i32
    %c0_i32_0 = arith.constant 0 : i32
    %c0_i32_1 = arith.constant 0 : i32
    return %arg0, %c0_i32, %c0_i32_0 : i32, i32, i32
  }
  func.func @transform_17(%arg0: i32, %arg1: i32) -> (i32, i32, i32) {
    %c0_i32 = arith.constant 0 : i32
    %c0_i32_0 = arith.constant 0 : i32
    %c0_i32_1 = arith.constant 0 : i32
    return %arg0, %c0_i32, %c0_i32_0 : i32, i32, i32
  }
  func.func @transform_18(%arg0: i32, %arg1: i32) -> (i32, i32, i32) {
    %c0_i32 = arith.constant 0 : i32
    %c0_i32_0 = arith.constant 0 : i32
    %c0_i32_1 = arith.constant 0 : i32
    return %arg0, %c0_i32, %c0_i32_0 : i32, i32, i32
  }
  func.func @transform_19(%arg0: i32, %arg1: i32) -> (i32, i32, i32) {
    %c0_i32 = arith.constant 0 : i32
    %c0_i32_0 = arith.constant 0 : i32
    %c0_i32_1 = arith.constant 0 : i32
    return %arg0, %c0_i32, %c0_i32_0 : i32, i32, i32
  }
  func.func @transform_20(%arg0: i32, %arg1: i32) -> (i32, i32, i32) {
    %c0_i32 = arith.constant 0 : i32
    %c0_i32_0 = arith.constant 0 : i32
    %c0_i32_1 = arith.constant 0 : i32
    return %arg0, %c0_i32, %c0_i32_0 : i32, i32, i32
  }
  func.func @transform_21(%arg0: i32, %arg1: i32) -> (i32, i32, i32) {
    %c0_i32 = arith.constant 0 : i32
    %c0_i32_0 = arith.constant 0 : i32
    %c0_i32_1 = arith.constant 0 : i32
    return %arg0, %c0_i32, %c0_i32_0 : i32, i32, i32
  }
  func.func @transform_22(%arg0: i32, %arg1: i32) -> (i32, i32, i32) {
    %c0_i32 = arith.constant 0 : i32
    %c0_i32_0 = arith.constant 0 : i32
    %c0_i32_1 = arith.constant 0 : i32
    return %arg0, %c0_i32, %c0_i32_0 : i32, i32, i32
  }
  func.func @transform_23(%arg0: i32, %arg1: i32) -> (i32, i32, i32) {
    %c0_i32 = arith.constant 0 : i32
    %c0_i32_0 = arith.constant 0 : i32
    %c0_i32_1 = arith.constant 0 : i32
    return %arg0, %c0_i32, %c0_i32_0 : i32, i32, i32
  }
  func.func @transform_24(%arg0: i32, %arg1: i32) -> (i32, i32, i32) {
    %c0_i32 = arith.constant 0 : i32
    %c0_i32_0 = arith.constant 0 : i32
    %c0_i32_1 = arith.constant 0 : i32
    return %arg0, %c0_i32, %c0_i32_0 : i32, i32, i32
  }
  func.func @transform_25(%arg0: i32, %arg1: i32) -> (i32, i32, i32) {
    %c0_i32 = arith.constant 0 : i32
    %c0_i32_0 = arith.constant 0 : i32
    %c0_i32_1 = arith.constant 0 : i32
    return %arg0, %c0_i32, %c0_i32_0 : i32, i32, i32
  }
  func.func @transform_26(%arg0: i32, %arg1: i32) -> (i32, i32) {
    %c0_i32 = arith.constant 0 : i32
    %c0_i32_0 = arith.constant 0 : i32
    %c0_i32_1 = arith.constant 0 : i32
    return %c0_i32, %c0_i32_0 : i32, i32
  }
}

</mosaic_0001>

<bundles_post_ra>
// kernel: tpu_custom_call.1
= control target key start
LH: loop header
LB: loop body
LE: loop exit
PB: predicated region body
PF: predicated region fallthrough
CT: control target
= control target key end

     0   :  { %s7290_s0 = inlined_call_operand.vmem [shape: f32[8,8], index: 0, kind: input, shape index: {}]   ;;  %s7291_s1 = inlined_call_operand.vmem [shape: f32[8,128], index: 1, kind: input, shape index: {}]   ;;  %s7292_s2 = inlined_call_operand.vmem [shape: f32[8,1], index: 2, kind: input, shape index: {}]   ;;  %s7293_s3 = inlined_call_operand.vmem [shape: f32[1,128], index: 3, kind: input, shape index: {}]   ;;  %s7294_s4 = inlined_call_operand.vmem [shape: f32[128,4], index: 4, kind: input, shape index: {}]   ;;  %s7295_s5 = inlined_call_operand.vmem [shape: bf16[128,8], index: 5, kind: input, shape index: {}]   ;;  %s7296_s6 = inlined_call_operand.vmem [shape: bf16[128,8], index: 6, kind: input, shape index: {}]   ;;  %s7297_s7 = inlined_call_operand.vmem [shape: bf16[8,128], index: 7, kind: input, shape index: {}]   ;;  %s7298_s8 = inlined_call_operand.vmem [shape: f32[8,128], index: 8, kind: input, shape index: {}]   ;;  %s7299_s9 = inlined_call_operand.vmem [shape: f32[1,128], index: 9, kind: input, shape index: {}]   ;;  %s7300_s10 = inlined_call_operand.vmem [shape: f32[4,128,128], index: 10, kind: input, shape index: {}]   ;;  %s7301_s11 = inlined_call_operand.hbm [shape: f32[4,128,128], index: 11, kind: input, shape index: {}]   ;;  %s7302_s12 = inlined_call_operand.vmem [shape: f32[4,1,128], index: 12, kind: input, shape index: {}]   ;;  %s7303_s13 = inlined_call_operand.vmem [shape: f32[4,4,128], index: 13, kind: input, shape index: {}]   ;;  %s7304_s14 = inlined_call_operand.vmem [shape: f32[4,1,128], index: 14, kind: input, shape index: {}]   ;;  %s7305_s15 = inlined_call_operand.hbm [shape: f32[4,128,128], index: 15, kind: input, shape index: {}]   ;;  %s7306_s16 = inlined_call_operand.vmem [shape: f32[4,1,128], index: 16, kind: input, shape index: {}]   ;;  %s7307_s17 = inlined_call_operand.hbm [shape: f32[4,128,128], index: 17, kind: input, shape index: {}]   ;;  %s7308_s18 = inlined_call_operand.hbm [shape: f32[4,128,128], index: 18, kind: input, shape index: {}]   ;;  %s7309_s19 = inlined_call_operand.vmem [shape: f32[4,8,128], index: 19, kind: input, shape index: {}]   ;;  %s7310_s20 = inlined_call_operand.vmem [shape: f32[4,1,128], index: 20, kind: input, shape index: {}]   ;;  %s7311_s21 = inlined_call_operand.hbm [shape: f32[4,128,128], index: 21, kind: input, shape index: {}]   ;;  %s7312_s22 = inlined_call_operand.vmem [shape: f32[4,1,128], index: 22, kind: input, shape index: {}]   ;;  %s7313_s23 = inlined_call_operand.hbm [shape: f32[4,128,128], index: 23, kind: input, shape index: {}]   ;;  %s7314_s24 = inlined_call_operand.vmem [shape: f32[4,1,128], index: 24, kind: input, shape index: {}]   ;;  %s7315_s25 = inlined_call_operand.vmem [shape: f32[4,128,1], index: 25, kind: input, shape index: {}]   ;;  %s7316_s26 = inlined_call_operand.hbm [shape: f32[8,128], index: 26, kind: output, shape index: {}]  }
   0x1   :  { %7336 = sst [smem:[#allocation28_spill]] %s7290_s0 }
   0x2   :  { %7337 = sst [smem:[#allocation29_spill]] %s7291_s1 }
   0x3   :  { %7338 = sst [smem:[#allocation30_spill]] %s7292_s2 }
   0x4   :  { %7339 = sst [smem:[#allocation31_spill]] %s7293_s3 }
   0x5   :  { %7340 = sst [smem:[#allocation32_spill]] %s7294_s4 }
   0x6   :  { %7341 = sst [smem:[#allocation33_spill]] %s7295_s5 }
   0x7   :  { %7342 = sst [smem:[#allocation34_spill]] %s7296_s6 }
   0x8   :  { %7343 = sst [smem:[#allocation35_spill]] %s7297_s7 }
   0x9   :  { %7344 = sst [smem:[#allocation36_spill]] %s7298_s8 }
   0xa   :  { %7345 = sst [smem:[#allocation37_spill]] %s7299_s9 }
   0xb   :  { %7346 = sst [smem:[#allocation38_spill]] %s7300_s10 }
   0xc   :  { %7347 = sst [smem:[#allocation39_spill]] %s7301_s11 }
   0xd   :  { %7348 = sst [smem:[#allocation40_spill]] %s7302_s12 }
   0xe   :  { %7349 = sst [smem:[#allocation41_spill]] %s7303_s13 }
   0xf   :  { %7350 = sst [smem:[#allocation42_spill]] %s7304_s14 }
  0x10   :  { %7351 = sst [smem:[#allocation43_spill]] %s7305_s15 }
  0x11   :  { %7352 = sst [smem:[#allocation44_spill]] %s7306_s16 }
  0x12   :  { %7353 = sst [smem:[#allocation45_spill]] %s7307_s17 }
  0x13   :  { %7354 = sst [smem:[#allocation46_spill]] %s7308_s18 }
  0x14   :  { %7355 = sst [smem:[#allocation47_spill]] %s7309_s19 }
  0x15   :  { %7356 = sst [smem:[#allocation48_spill]] %s7310_s20 }
  0x16   :  { %7357 = sst [smem:[#allocation49_spill]] %s7311_s21 }
  0x17   :  { %7358 = sst [smem:[#allocation50_spill]] %s7312_s22 }
  0x18   :  { %7359 = sst [smem:[#allocation51_spill]] %s7313_s23 }
  0x19   :  { %7360 = sst [smem:[#allocation52_spill]] %s7314_s24 }
  0x1a   :  { %7361 = sst [smem:[#allocation53_spill]] %s7315_s25 }
  0x1b   :  { %7362 = sst [smem:[#allocation54_spill]] %s7316_s26 }
  0x1c   :  { %31 = vsyncpa [#allocation4], 0 }
  0x1d   :  { %33 = vsyncpa [#allocation4 + $0x1], 0 }
  0x1e   :  { %34 = vsyncpa [#allocation7], 0 }
  0x1f   :  { %36 = vsyncpa [#allocation7 + $0x1], 0 }
  0x20   :  { %37 = vsyncpa [#allocation10], 0 }
  0x21   :  { %39 = vsyncpa [#allocation10 + $0x1], 0 }
  0x22   :  { %40 = vsyncpa [#allocation13], 0 }
  0x23   :  { %42 = vsyncpa [#allocation13 + $0x1], 0 }
  0x24   :  { %43 = vsyncpa [#allocation5], 0  ;;  %s6023_s27 = smov 0   ;;  %s6025_s3 = smov 0  }
  0x25   :  { %s6027_s7 = smov 0   ;;  %s6029_s28 = smov 0  }
  0x26   :  { %s6031_s8 = smov 0   ;;  %s6033_s4 = smov 0  }
  0x27 LB: > { %7363 = sst [smem:[#allocation20_spill]] %s5855_s3  ;;  %s6052_s29 = sadd.s32 4294967295, %s5871_s4   ;;  %s5871_s4 = sphi %s6033_s4, %s49_s4   ;;  %s5867_s8 = sphi %s6031_s8, %s7425_s8   ;;  %s5863_s28 = sphi %s6029_s28, %s7424_s28   ;;  %s5859_s7 = sphi %s6027_s7, %s7423_s7   ;;  %s5855_s3 = sphi %s6025_s3, %s7422_s3   ;;  %s5851_s27 = sphi %s6023_s27, %s7421_s27  }
  0x28   : > { %7364 = sst [smem:[#allocation21_spill]] %s5859_s7  ;;  %s61_s0 = sadd.s32 1, %s5867_s8 }
  0x29   : > { %7365 = sst [smem:[#allocation22_spill]] %s5867_s8  ;;  %p63_p0 = scmp.ge.s32.totalorder %s61_s0, 4 }
  0x2a   : > { %7366 = sst [smem:[#allocation23_spill]] %s5871_s4  ;;  %s324_s9 = sadd.s32 1, %s5859_s7 }
  0x2b   : > { %7367 = sst [smem:[#allocation24_spill]] %s6052_s29  ;;  %p331_p1 = scmp.ne.s32.totalorder %s5859_s7, %s5855_s3 }
  0x2c   : > { %p332_p2 = scmp.eq.s32.totalorder %s5871_s4, 0  ;;  %s7427_s0 = smov (%p63_p0, %s61_s0), 0 }
  0x2d   : > { %7368 = sst [smem:[#allocation25_spill]] %s7427_s0  ;;  %p337_p4 = scmp.ne.s32.totalorder %s5855_s3, %s5851_s27 }
  0x2e   : > { %p333_p3 = por %p332_p2, %p331_p1  ;;  %s321_s30 = ssub.s32 %s5867_s8, %s7427_s0 }
  0x2f   : > { %p338_p5 = scmp.eq.s32.totalorder %s6052_s29, 0  ;;  %p322_p6 = scmp.eq.s32.totalorder %s321_s30, 0 }
  0x30   : > { %p5324_p8 = scmp.lt.s32.totalorder %s5871_s4, 4  ;;  %s6074_s10 = sand.u32 1, %s5859_s7  }
  0x31   : > { %p6065_p7 = por %p338_p5, %p337_p4  ;;  %s6077_s6 = sshll.u32 %s5867_s8, 11 }
  0x32   : > { %s6071_s5 = scalar_select %p322_p6, %s5859_s7, %s324_s9  }
  0x33   : > { %s7369_s2 = scalar_select %p6065_p7, 1, 0 }
  0x34   : > { %7370 = sst [smem:[#allocation26_spill]] %s6071_s5  ;;  %s6080_s1 = sshll.u32 %s6074_s10, 7 }
  0x35   : > { %p6082_p9 = pnand %p5324_p8, %p333_p3  ;;  %s7325_s30 = sand.u32 1, %s5871_s4  }
  0x36   : > { %s7372_s15 = sld [smem:[#allocation43_spill]]  ;;  %s850_s8 = scalar_lea.vmem [#allocation6], %s6080_s1 }
  0x37   : > { %s857_s5 = sshll.u32 %s850_s8, 4  ;;  %s6099_s7 = scalar_lea.sflag [#allocation7], %s7325_s30  ;;  %s6094_s5 = int_to_ptr.vmem [resolvable:$true] %s857_s5 }
  0x38   : > { %p6105_p12 = pneg %p6082_p9 }
  0x3c   : > { %s6091_s9 = scalar_lea.hbm %s7372_s15, %s6077_s6  ;;  %s5604_s8 = scalar_lea.hbm %s7372_s15, 8192 }
  0x3d   : > { %s5599_s25 = scalar_lea.hbm %s6091_s9, 2048  ;;  %p5605_p1 = scmp.lt.u32.totalorder %s6091_s9, %s7372_s15 }
  0x3e   : > { %p5600_p11 = scmp.ne.s32.totalorder %s6091_s9, %s5599_s25  ;;  %p5606_p2 = scmp.lt.u32.totalorder %s5604_s8, %s5599_s25 }
  0x3f   : > { %p5608_p4 = scmp.lt.u32.totalorder %s5599_s25, %s6091_s9 }
  0x40   : > { %p5602_p13 = pnand %p6105_p12, %p5600_p11  ;;  %p5607_p3 = por %p5606_p2, %p5605_p1 }
  0x42   : > { %p5603_p0 = pneg %p5602_p13  ;;  %p5609_p5 = por %p5608_p4, %p5607_p3 }
  0x44   : > { %p5610_p6 = pnand %p5609_p5, %p5603_p0 }
  0x46   : > { %5613 = shalt.err (!%p5610_p6)
}
  0x47   : > { %s5614_s30 = scalar_lea.vmem %s6094_s5, 2048  ;;  %s5873_s26 = smov [#allocation6]  }
  0x48   : > { %p5615_p8 = scmp.ne.s32.totalorder %s6094_s5, %s5614_s30  ;;  %s5619_s0 = sshll.u32 %s5873_s26, 4  ;;  %s5620_s0 = int_to_ptr.vmem [resolvable:$false] %s5619_s0 }
  0x49   : > { %s5621_s20 = scalar_lea.vmem %s5620_s0, 4096  ;;  %p5622_p10 = scmp.lt.s32.totalorder %s6094_s5, %s5620_s0 }
  0x4a   : > { %p5617_p11 = pnand %p5615_p8, %p6105_p12  ;;  %p5623_p7 = scmp.lt.s32.totalorder %s5621_s20, %s5614_s30 }
  0x4c   : > { %p5618_p13 = pneg %p5617_p11  ;;  %p5624_p1 = por %p5623_p7, %p5622_p10 }
  0x4e   : > { %p5625_p2 = pnand %p5624_p1, %p5618_p13 }
  0x50   : > { %5628 = shalt.err (!%p5625_p2)
}
  0x51   : > { %s7327_s22 = smov 128   ;;  %s7329_s25 = smov 8  }
  0x52   : > { %5311 = dma.hbm_to_vmem [thread:$0]  (!%p6082_p9), %s6091_s9, 2048, %s6094_s5, %s6099_s7, %s7327_s22, %s7327_s22, %s7329_s25  }
  0x53   : > { %p988_p7 = scmp.lt.s32.totalorder %s5871_s4, 5  ;;  %s7374_s18 = sld [smem:[#allocation46_spill]] }
  0x54   : > { %p7375_p10 = scmp.ge.s32.totalorder %s5871_s4, 1  ;;  %s898_s20 = scalar_lea.vmem [#allocation9], %s6080_s1 }
  0x55   : > { %s905_s15 = sshll.u32 %s898_s20, 4  ;;  %s7377_s5 = sand.u32 1, %s5871_s4   ;;  %s6146_s15 = int_to_ptr.vmem [resolvable:$true] %s905_s15 }
  0x56   : > { %p6141_p0 = pnand %p7375_p10, %p988_p7  ;;  %s6150_s9 = scalar_lea.sflag [#allocation10], %s7377_s5 }
  0x58   : > { %s7376_s0 = scalar_select %p6141_p0, 1, 0 }
  0x59   : > { %s6137_s26 = scalar_lea.hbm %s7374_s18, %s6077_s6  ;;  %s5634_s25 = scalar_lea.hbm %s7374_s18, 8192 }
  0x5a   : > { %s5629_s22 = scalar_lea.hbm %s6137_s26, 2048  ;;  %p5635_p6 = scmp.lt.u32.totalorder %s6137_s26, %s7374_s18 }
  0x5b   : > { %p5630_p3 = scmp.ne.s32.totalorder %s6137_s26, %s5629_s22  ;;  %p5636_p8 = scmp.lt.u32.totalorder %s5634_s25, %s5629_s22 }
  0x5c   : > { %p5638_p13 = scmp.lt.u32.totalorder %s5629_s22, %s6137_s26 }
  0x5d   : > { %p5632_p4 = pnand %p5630_p3, %p6105_p12  ;;  %p5637_p11 = por %p5636_p8, %p5635_p6 }
  0x5f   : > { %p5633_p5 = pneg %p5632_p4  ;;  %p5639_p1 = por %p5638_p13, %p5637_p11 }
  0x61   : > { %p5640_p2 = pnand %p5639_p1, %p5633_p5 }
  0x63   : > { %5643 = shalt.err (!%p5640_p2)
}
  0x64   : > { %s5644_s20 = scalar_lea.vmem %s6146_s15, 2048  ;;  %s5876_s5 = smov [#allocation9]  }
  0x65   : > { %p5645_p7 = scmp.ne.s32.totalorder %s6146_s15, %s5644_s20  ;;  %s5649_s30 = sshll.u32 %s5876_s5, 4  ;;  %s5650_s30 = int_to_ptr.vmem [resolvable:$false] %s5649_s30 }
  0x66   : > { %s5651_s16 = scalar_lea.vmem %s5650_s30, 4096  ;;  %p5652_p4 = scmp.lt.s32.totalorder %s6146_s15, %s5650_s30 }
  0x67   : > { %p5647_p10 = pnand %p5645_p7, %p6105_p12  ;;  %p5653_p0 = scmp.lt.s32.totalorder %s5651_s16, %s5644_s20 }
  0x69   : > { %p5648_p3 = pneg %p5647_p10  ;;  %p5654_p6 = por %p5653_p0, %p5652_p4 }
  0x6b   : > { %p5655_p8 = pnand %p5654_p6, %p5648_p3 }
  0x6d   : > { %5658 = shalt.err (!%p5655_p8)
}
  0x6e   : > { %s7378_s19 = smov 8   ;;  %s7379_s22 = smov 128  }
  0x6f   : > { %5317 = dma.hbm_to_vmem [thread:$0]  (!%p6082_p9), %s6137_s26, 2048, %s6146_s15, %s6150_s9, %s7379_s22, %s7379_s22, %s7378_s19  }
  0x70   : > { %s7380_s11 = sld [smem:[#allocation39_spill]]  ;;  %s810_s5 = scalar_lea.vmem [#allocation3], %s6080_s1 }
  0x71   : > { %s817_s30 = sshll.u32 %s810_s5, 4  ;;  %s7381_s17 = sld [smem:[#allocation45_spill]]  ;;  %s6184_s30 = int_to_ptr.vmem [resolvable:$true] %s817_s30 }
  0x72   : > { %s807_s14 = scalar_lea.sflag [#allocation4], %s6074_s10 }
  0x76   : > { %s6181_s20 = scalar_lea.hbm %s7380_s11, %s6077_s6  ;;  %s5664_s8 = scalar_lea.hbm %s7380_s11, 8192 }
  0x77   : > { %s6190_s4 = scalar_lea.hbm %s7381_s17, %s6077_s6  ;;  %s5659_s15 = scalar_lea.hbm %s6181_s20, 2048 }
  0x78   : > { %p5660_p0 = scmp.ne.s32.totalorder %s6181_s20, %s5659_s15  ;;  %p5665_p13 = scmp.lt.u32.totalorder %s6181_s20, %s7380_s11 }
  0x79   : > { %p5666_p1 = scmp.lt.u32.totalorder %s5664_s8, %s5659_s15  ;;  %p5668_p7 = scmp.lt.u32.totalorder %s5659_s15, %s6181_s20 }
  0x7a   : > { %p5662_p5 = pnand %p5660_p0, %p6105_p12 }
  0x7b   : > { %p5667_p2 = por %p5666_p1, %p5665_p13 }
  0x7c   : > { %p5663_p11 = pneg %p5662_p5 }
  0x7d   : > { %p5669_p10 = por %p5668_p7, %p5667_p2 }
  0x7f   : > { %p5670_p3 = pnand %p5669_p10, %p5663_p11 }
  0x81   : > { %5673 = shalt.err (!%p5670_p3)
}
  0x82   : > { %s5674_s18 = scalar_lea.vmem %s6184_s30, 2048  ;;  %s5877_s5 = smov [#allocation3]  }
  0x83   : > { %p5675_p4 = scmp.ne.s32.totalorder %s6184_s30, %s5674_s18  ;;  %s5679_s16 = sshll.u32 %s5877_s5, 4  ;;  %s5680_s16 = int_to_ptr.vmem [resolvable:$false] %s5679_s16 }
  0x84   : > { %s5681_s12 = scalar_lea.vmem %s5680_s16, 4096  ;;  %p5682_p0 = scmp.lt.s32.totalorder %s6184_s30, %s5680_s16 }
  0x85   : > { %p5677_p6 = pnand %p5675_p4, %p6105_p12  ;;  %p5683_p5 = scmp.lt.s32.totalorder %s5681_s12, %s5674_s18 }
  0x87   : > { %p5678_p8 = pneg %p5677_p6  ;;  %p5684_p13 = por %p5683_p5, %p5682_p0 }
  0x89   : > { %p5685_p1 = pnand %p5684_p13, %p5678_p8 }
  0x8b   : > { %5688 = shalt.err (!%p5685_p1)
}
  0x8c   : > { %5308 = dma.hbm_to_vmem [thread:$0]  (!%p6082_p9), %s6181_s20, 2048, %s6184_s30, %s807_s14, %s7379_s22, %s7379_s22, %s7378_s19  }
  0x8d   : > { %s877_s13 = scalar_lea.vmem [#allocation8], %s6080_s1  ;;  %s7382_s21 = sld [smem:[#allocation49_spill]] }
  0x8e   : > { %s884_s15 = sshll.u32 %s877_s13, 4  ;;  %s5689_s18 = scalar_lea.hbm %s6190_s4, 2048  ;;  %s6220_s15 = int_to_ptr.vmem [resolvable:$true] %s884_s15 }
  0x8f   : > { %p5690_p11 = scmp.ne.s32.totalorder %s6190_s4, %s5689_s18  ;;  %s5694_s12 = scalar_lea.hbm %s7381_s17, 8192 }
  0x90   : > { %p5695_p10 = scmp.lt.u32.totalorder %s6190_s4, %s7381_s17  ;;  %p5696_p3 = scmp.lt.u32.totalorder %s5694_s12, %s5689_s18 }
  0x91   : > { %p5692_p2 = pnand %p5690_p11, %p6105_p12  ;;  %p5698_p6 = scmp.lt.u32.totalorder %s5689_s18, %s6190_s4 }
  0x92   : > { %p5697_p4 = por %p5696_p3, %p5695_p10 }
  0x93   : > { %s6226_s8 = scalar_lea.hbm %s7382_s21, %s6077_s6  ;;  %p5693_p7 = pneg %p5692_p2 }
  0x94   : > { %p5699_p8 = por %p5698_p6, %p5697_p4 }
  0x96   : > { %p5700_p0 = pnand %p5699_p8, %p5693_p7 }
  0x98   : > { %5703 = shalt.err (!%p5700_p0)
}
  0x99   : > { %s5704_s20 = scalar_lea.vmem %s6220_s15, 2048  ;;  %s5878_s30 = smov [#allocation8]  }
  0x9a   : > { %p5705_p5 = scmp.ne.s32.totalorder %s6220_s15, %s5704_s20  ;;  %s5709_s13 = sshll.u32 %s5878_s30, 4  ;;  %s5710_s13 = int_to_ptr.vmem [resolvable:$false] %s5709_s13 }
  0x9b   : > { %s5711_s11 = scalar_lea.vmem %s5710_s13, 4096  ;;  %p5712_p11 = scmp.lt.s32.totalorder %s6220_s15, %s5710_s13 }
  0x9c   : > { %p5707_p13 = pnand %p5705_p5, %p6105_p12  ;;  %p5713_p2 = scmp.lt.s32.totalorder %s5711_s11, %s5704_s20 }
  0x9e   : > { %p5708_p1 = pneg %p5707_p13  ;;  %p5714_p10 = por %p5713_p2, %p5712_p11 }
  0xa0   : > { %p5715_p3 = pnand %p5714_p10, %p5708_p1 }
  0xa2   : > { %5718 = shalt.err (!%p5715_p3)
}
  0xa3   : > { %5314 = dma.hbm_to_vmem [thread:$0]  (!%p6082_p9), %s6190_s4, 2048, %s6220_s15, %s6099_s7, %s7379_s22, %s7379_s22, %s7378_s19  }
  0xa4   : > { %s932_s26 = scalar_lea.vmem [#allocation11], %s6080_s1  ;;  %s5719_s18 = scalar_lea.hbm %s6226_s8, 2048 }
  0xa5   : > { %s939_s25 = sshll.u32 %s932_s26, 4  ;;  %p5720_p7 = scmp.ne.s32.totalorder %s6226_s8, %s5719_s18  ;;  %s6254_s25 = int_to_ptr.vmem [resolvable:$true] %s939_s25 }
  0xa6   : > { %s5724_s12 = scalar_lea.hbm %s7382_s21, 8192  ;;  %p5725_p8 = scmp.lt.u32.totalorder %s6226_s8, %s7382_s21 }
  0xa7   : > { %p5722_p4 = pnand %p5720_p7, %p6105_p12  ;;  %p5726_p0 = scmp.lt.u32.totalorder %s5724_s12, %s5719_s18 }
  0xa8   : > { %p5728_p13 = scmp.lt.u32.totalorder %s5719_s18, %s6226_s8 }
  0xa9   : > { %p5723_p6 = pneg %p5722_p4  ;;  %p5727_p5 = por %p5726_p0, %p5725_p8 }
  0xab   : > { %p5729_p1 = por %p5728_p13, %p5727_p5 }
  0xad   : > { %p5730_p11 = pnand %p5729_p1, %p5723_p6 }
  0xaf   : > { %5733 = shalt.err (!%p5730_p11)
}
  0xb0   : > { %s5734_s7 = scalar_lea.vmem %s6254_s25, 2048  ;;  %s5879_s4 = smov [#allocation11]  }
  0xb1   : > { %p5735_p2 = scmp.ne.s32.totalorder %s6254_s25, %s5734_s7  ;;  %s5739_s15 = sshll.u32 %s5879_s4, 4  ;;  %s5740_s15 = int_to_ptr.vmem [resolvable:$false] %s5739_s15 }
  0xb2   : > { %s5741_s30 = scalar_lea.vmem %s5740_s15, 4096  ;;  %p5742_p7 = scmp.lt.s32.totalorder %s6254_s25, %s5740_s15 }
  0xb3   : > { %p5737_p10 = pnand %p5735_p2, %p6105_p12  ;;  %p5743_p4 = scmp.lt.s32.totalorder %s5741_s30, %s5734_s7 }
  0xb5   : > { %p5738_p3 = pneg %p5737_p10  ;;  %p5744_p8 = por %p5743_p4, %p5742_p7 }
  0xb7   : > { %p5745_p0 = pnand %p5744_p8, %p5738_p3 }
  0xb9   : > { %5748 = shalt.err (!%p5745_p0)
}
  0xba   : > { %5320 = dma.hbm_to_vmem [thread:$0]  (!%p6082_p9), %s6226_s8, 2048, %s6254_s25, %s6150_s9, %s7379_s22, %s7379_s22, %s7378_s19  }
  0xbb   : > { %s7383_s23 = sld [smem:[#allocation51_spill]]  ;;  %s959_s18 = scalar_lea.vmem [#allocation12], %s6080_s1 }
  0xbc   : > { %s966_s5 = sshll.u32 %s959_s18, 4  ;;  %s956_s16 = scalar_lea.sflag [#allocation13], %s6074_s10  ;;  %s6288_s5 = int_to_ptr.vmem [resolvable:$true] %s966_s5 }
  0xc1   : > { %s6285_s26 = scalar_lea.hbm %s7383_s23, %s6077_s6  ;;  %s5754_s25 = scalar_lea.hbm %s7383_s23, 8192 }
  0xc2   : > { %s5749_s12 = scalar_lea.hbm %s6285_s26, 2048  ;;  %p5755_p1 = scmp.lt.u32.totalorder %s6285_s26, %s7383_s23 }
  0xc3   : > { %p5750_p6 = scmp.ne.s32.totalorder %s6285_s26, %s5749_s12  ;;  %p5756_p11 = scmp.lt.u32.totalorder %s5754_s25, %s5749_s12 }
  0xc4   : > { %p5758_p10 = scmp.lt.u32.totalorder %s5749_s12, %s6285_s26 }
  0xc5   : > { %p5752_p5 = pnand %p5750_p6, %p6105_p12  ;;  %p5757_p2 = por %p5756_p11, %p5755_p1 }
  0xc7   : > { %p5753_p13 = pneg %p5752_p5  ;;  %p5759_p3 = por %p5758_p10, %p5757_p2 }
  0xc9   : > { %p5760_p7 = pnand %p5759_p3, %p5753_p13 }
  0xcb   : > { %5763 = shalt.err (!%p5760_p7)
}
  0xcc   : > { %s5764_s1 = scalar_lea.vmem %s6288_s5, 2048  ;;  %s5880_s20 = smov [#allocation12]  }
  0xcd   : > { %p5765_p4 = scmp.ne.s32.totalorder %s6288_s5, %s5764_s1  ;;  %s5769_s7 = sshll.u32 %s5880_s20, 4  ;;  %s5770_s7 = int_to_ptr.vmem [resolvable:$false] %s5769_s7 }
  0xce   : > { %s5771_s4 = scalar_lea.vmem %s5770_s7, 4096  ;;  %p5772_p6 = scmp.lt.s32.totalorder %s6288_s5, %s5770_s7 }
  0xcf   : > { %p5767_p8 = pnand %p5765_p4, %p6105_p12  ;;  %p5773_p5 = scmp.lt.s32.totalorder %s5771_s4, %s5764_s1 }
  0xd1   : > { %p5768_p0 = pneg %p5767_p8  ;;  %p5774_p1 = por %p5773_p5, %p5772_p6 }
  0xd3   : > { %p5775_p11 = pnand %p5774_p1, %p5768_p0 }
  0xd5   : > { %5778 = shalt.err (!%p5775_p11)
}
  0xd6   : > { %5323 = dma.hbm_to_vmem [thread:$0]  (!%p6082_p9), %s6285_s26, 2048, %s6288_s5, %s956_s16, %s7379_s22, %s7379_s22, %s7378_s19  }
  0xd7   : > { %p7384_p12 = scmp.ne.s32.totalorder %s7376_s0, 0 }
  0xd9   : > { %992 = sbr.rel (%p7384_p12) target bundleno = 2585 (0xa19), region = 124 }
  0xe0   : > { %s994_s24 = sand.u32 1, %s5855_s3   ;;  %p7385_p13 = scmp.ne.s32.totalorder %s7369_s2, 0 }
  0xe1   : > { %s4137_s15 = sshll.u32 %s994_s24, 7  ;;  %s995_s30 = scalar_lea.sflag [#allocation4], %s994_s24 }
  0xe2   : > { %s6320_s13 = scalar_lea.vmem [#allocation3], %s4137_s15 }
  0xe3   : > { %5830 = dma.done.wait (%p7385_p13), %s995_s30, 2048  }
  0xe4   : > { %5832 = vsyncadd (%p7385_p13), %s995_s30, 4294965248  ;;  %s1003_s10 = sand.u32 1, %s6052_s29   ;;  %s6327_s19 = scalar_lea.vmem [#allocation6], %s4137_s15 }
  0xe5   : > { %s1004_s27 = scalar_lea.sflag [#allocation7], %s1003_s10 }
  0xe6   : > { %5834 = dma.done.wait (%p7385_p13), %s1004_s27, 4096  }
  0xe7   : > { %5836 = vsyncadd (%p7385_p13), %s1004_s27, 4294963200  ;;  %s6333_s0 = scalar_lea.vmem [#allocation8], %s4137_s15  ;;  %s1022_s22 = scalar_lea.sflag [#allocation10], %s1003_s10 }
  0xe8   : > { %s6335_s11 = scalar_lea.vmem [#allocation9], %s4137_s15 }
  0xe9   : > { %5838 = dma.done.wait (%p7385_p13), %s1022_s22, 4096  }
  0xea   : > { %5840 = vsyncadd (%p7385_p13), %s1022_s22, 4294963200  ;;  %s6341_s26 = scalar_lea.vmem [#allocation11], %s4137_s15  ;;  %s1040_s18 = scalar_lea.sflag [#allocation13], %s994_s24 }
  0xeb   : > { %7386 = sst [smem:[#allocation27_spill]] %s6341_s26  ;;  %s6343_s5 = scalar_lea.vmem [#allocation12], %s4137_s15 }
  0xec   : > { %5842 = dma.done.wait (%p7385_p13), %s1040_s18, 2048  }
  0xed   : > { %5844 = vsyncadd (%p7385_p13), %s1040_s18, 4294965248  ;;  %p1209_p9 = scmp.lt.s32.totalorder %s5863_s28, 3  ;;  %p1246_p2 = scmp.eq.s32.totalorder %s5863_s28, 0 }
  0xee   : > { %s7388_s1 = sld [smem:[#allocation38_spill]]  ;;  %s7389_s15 = sld [smem:[#allocation41_spill]]  ;;  %vm1255_vm0 = vcmask (%p1246_p2), 64512   ;;  %v5881_v2 = vmov (%p1246_p2), 0.0   ;;  %vm5882_vm1 = vmmov (%p1246_p2), 0  }
  0xef   : > { %s6352_s16 = scalar_select %p1209_p9, %s5863_s28, 3 }
  0xf0   : > { %s7392_s6 = sld [smem:[#allocation47_spill]]  ;;  %s7393_s29 = sld [smem:[#allocation48_spill]]  ;;  %4530 = vmatprep.subr.mxu0 (%p1246_p2), %v5881_v2  ;;  %4532 = vmatprep.mubr.msk.f32.mxu0 (%p1246_p2), %vm5882_vm1, %v5881_v2 }
  0xf1   : > { %s4268_s12 = sshll.u32 %s6352_s16, 7  ;;  %s4145_s7 = sshll.u32 %s6352_s16, 2 }
  0xf2   : > { %s4146_s2 = sshll.u32 %s6352_s16, 3  ;;  %s7395_s22 = sld [smem:[#allocation52_spill]] }
  0xf3   : > { %s7396_s23 = sld [smem:[#allocation53_spill]]  ;;  %s7397_s3 = sld [smem:[#allocation36_spill]] (%p1246_p2) }
  0xf4   : > { %s6362_s20 = scalar_lea.vmem %s7388_s1, %s4268_s12  ;;  %s6368_s30 = scalar_lea.vmem %s7389_s15, %s4145_s7 }
  0xf5   : > { %s7394_s15 = sld [smem:[#allocation50_spill]]  ;;  %1251 = sbr.rel (!%p1246_p2) target bundleno = 471 (0x1d7), region = 152 }
  0xf6   : > { %s6382_s14 = scalar_lea.vmem %s7392_s6, %s4146_s2  ;;  %s1233_s4 = scalar_lea.vmem %s7393_s29, %s6352_s16 }
  0xf7   : > { %s7398_s6 = sld [smem:[#allocation28_spill]] (%p1246_p2)  ;;  %s7399_s7 = sld [smem:[#allocation29_spill]] (%p1246_p2) }
  0xf8   : > { %s1239_s18 = scalar_lea.vmem %s7395_s22, %s6352_s16 }
  0xf9   : > { %s6399_s9 = scalar_lea.vmem %s7396_s23, %s4268_s12  ;;  %v1254_v0 = vld [vmem:[%s7397_s3] sm:$0xff] (%p1246_p2) }
  0xfa   : > { %4531 = vmatpush3.msra.mxu0 (%p1246_p2), %v1254_v0 }
  0xfb   : > { %s1236_s26 = scalar_lea.vmem %s7394_s15, %s6352_s16  ;;  %s7400_s15 = sld [smem:[#allocation37_spill]] (%p1246_p2) }
  0xfd   : > { %v1253_v1 = vld [vmem:[%s7398_s6] sm:$0xff] }
  0xfe   : > { %4533 = vmatmul.mubr.msk.f32.vlgmr.msra.gmra.mrb[0].mxu0 %vm1255_vm0, %v1253_v1  ;;  %v1252_v3 = vld [vmem:[%s7399_s7] sm:$0xff] }
 0x101   : > { %v4151_v5 = vld [vmem:[%s7400_s15] ss:$0 sm:$0xff] }
 0x1d1   : > { %v1325_v4 = vpop.f32.mrb[0].mxu0 }
 0x1d2   : > { %v1329_v6 = vadd.f32 %v1325_v4, %v1252_v3  ;;  %v4534_v7 = vpop.f32.mrb[1].mxu0 }
 0x1d4   : > { %v1337_v8 = vadd.f32 %v4151_v5, %v1329_v6 }
 0x1d6   : > { %1338 = vst [vmem:[#allocation14] sm:$0xff] %v1337_v8 }
 0x1d7 PF: > { %vm1427_vm2 = vcmask 1043456   ;;  %s7401_s22 = sld [smem:[#allocation33_spill]]  ;;  %vm1402_vm3 = vcmask 64512   ;;  %s7402_s23 = sld [smem:[#allocation34_spill]]  ;;  %v1807_v22 = vld [vmem:[%s6320_s13] sm:$0xff]  ;;  %v1808_v23 = vld [vmem:[%s6320_s13 + $0x8] sm:$0xff] }
 0x1d8   : > { %v5007_v24 = vpack.c.bf16 %v1808_v23, %v1807_v22  ;;  %v1809_v25 = vld [vmem:[%s6320_s13 + $0x10] sm:$0xff]  ;;  %v1810_v26 = vld [vmem:[%s6320_s13 + $0x18] sm:$0xff]  ;;  %v1811_v30 = vld [vmem:[%s6320_s13 + $0x20] sm:$0xff]  ;;  %s7403_s17 = sld [smem:[#allocation31_spill]]  ;;  %vm2169_vm4 = vcmask 31744   ;;  %s7407_s25 = sld [smem:[#allocation42_spill]] }
 0x1d9   : > { %v5011_v28 = vpack.c.bf16 %v1810_v26, %v1809_v25  ;;  %v1812_v31 = vld [vmem:[%s6320_s13 + $0x28] sm:$0xff]  ;;  %v1813_v35 = vld [vmem:[%s6320_s13 + $0x30] sm:$0xff]  ;;  %v1814_v36 = vld [vmem:[%s6320_s13 + $0x38] sm:$0xff]  ;;  %s7409_s8 = sld [smem:[#allocation44_spill]]  ;;  %s7412_s7 = sld [smem:[#allocation30_spill]]  ;;  %vm5885_vm5 = vmmov 0  }
 0x1da   : > { %v5015_v34 = vpack.c.bf16 %v1812_v31, %v1811_v30  ;;  %v5019_v38 = vpack.c.bf16 %v1814_v36, %v1813_v35  ;;  %v1815_v40 = vld [vmem:[%s6320_s13 + $0x40] sm:$0xff]  ;;  %v1816_v41 = vld [vmem:[%s6320_s13 + $0x48] sm:$0xff]  ;;  %v1817_v43 = vld [vmem:[%s6320_s13 + $0x50] sm:$0xff]  ;;  %s7413_s24 = sld [smem:[#allocation35_spill]]  ;;  %s7414_s15 = sld [smem:[#allocation27_spill]] }
 0x1db   : > { %v5023_v42 = vpack.c.bf16 %v1816_v41, %v1815_v40  ;;  %v1818_v44 = vld [vmem:[%s6320_s13 + $0x58] sm:$0xff]  ;;  %v1819_v46 = vld [vmem:[%s6320_s13 + $0x60] sm:$0xff]  ;;  %v1820_v47 = vld [vmem:[%s6320_s13 + $0x68] sm:$0xff]  ;;  %s7415_s27 = sld [smem:[#allocation28_spill]] }
 0x1dc   : > { %v5027_v45 = vpack.c.bf16 %v1818_v44, %v1817_v43  ;;  %v5031_v48 = vpack.c.bf16 %v1820_v47, %v1819_v46  ;;  %v1821_v49 = vld [vmem:[%s6320_s13 + $0x70] sm:$0xff]  ;;  %v1822_v50 = vld [vmem:[%s6320_s13 + $0x78] sm:$0xff]  ;;  %v1791_v52 = vld [vmem:[%s6362_s20] sm:$0xff]  ;;  %s7405_s13 = sld [smem:[#allocation40_spill]] }
 0x1dd   : > { %v1344_v9 = vld [vmem:[#allocation14] sm:$0xff]  ;;  %v5388_v14 = vld [vmem:[%s7401_s22 + $0x8] sm:$0xff]   ;;  %v5390_v16 = vld [vmem:[%s7401_s22 + $0x10] sm:$0xff]   ;;  %v5035_v51 = vpack.c.bf16 %v1822_v50, %v1821_v49 }
 0x1de   : > { %v1345_v10 = vpack.c.bf16 %v1344_v9, %v1344_v9  ;;  %v5386_v11 = vld [vmem:[%s7401_s22] sm:$0xff]   ;;  %v5389_v15 = vld [vmem:[%s7402_s23 + $0x8] sm:$0xff]   ;;  %v5391_v17 = vld [vmem:[%s7402_s23 + $0x10] sm:$0xff]   ;;  %s7408_s2 = scalar_lea.vmem %s7407_s25, %s6352_s16 }
 0x1df   : > { %v5387_v12 = vld [vmem:[%s7402_s23] sm:$0xff]   ;;  %4537 = vmatprep.mubr.msk.bf16.mxu0 %vm1402_vm3, %v5386_v11  ;;  %v5392_v18 = vld [vmem:[%s7401_s22 + $0x18] sm:$0xff]   ;;  %v5396_v27 = vld [vmem:[%s7401_s22 + $0x28] sm:$0xff]   ;;  %s7410_s6 = scalar_lea.vmem %s7409_s8, %s6352_s16 }
 0x1e0   : > { %5287 = vmatprep.subr.msk.bf16.mxu0 %vm1427_vm2, %v1345_v10  ;;  %5288 = vmatprep.subr.msk.bf16.mxu1 %vm1427_vm2, %v1345_v10  ;;  %v1429_v13 = vsel %vm1427_vm2, %v1345_v10, 0  ;;  %v5393_v19 = vld [vmem:[%s7402_s23 + $0x18] sm:$0xff]   ;;  %v5394_v20 = vld [vmem:[%s7401_s22 + $0x20] sm:$0xff]   ;;  %v5397_v29 = vld [vmem:[%s7402_s23 + $0x28] sm:$0xff]  }
 0x1e1   : > { %4536 = vmatpush3.bf16.msra.mxu0 %v1429_v13  ;;  %4554 = vmatpush3.bf16.msra.mxu1 %v1429_v13  ;;  %v5395_v21 = vld [vmem:[%s7402_s23 + $0x20] sm:$0xff]   ;;  %v5398_v32 = vld [vmem:[%s7401_s22 + $0x30] sm:$0xff]   ;;  %v5400_v37 = vld [vmem:[%s7401_s22 + $0x38] sm:$0xff]  }
 0x1e2   : > { %4555 = vmatprep.mubr.msk.bf16.mxu1 %vm1402_vm3, %v5387_v12  ;;  %5008 = vmatprep.subr.bf16.mxu0 %v5007_v24  ;;  %v5399_v33 = vld [vmem:[%s7402_s23 + $0x30] sm:$0xff]   ;;  %v5401_v39 = vld [vmem:[%s7402_s23 + $0x38] sm:$0xff]   ;;  %v1792_v53 = vld [vmem:[%s6362_s20 + $0x8] sm:$0xff] }
 0x1e3   : > { %v5039_v54 = vpack.c.bf16 %v1792_v53, %v1791_v52  ;;  %v1793_v55 = vld [vmem:[%s6362_s20 + $0x10] sm:$0xff]  ;;  %v1794_v56 = vld [vmem:[%s6362_s20 + $0x18] sm:$0xff]  ;;  %v6507_v59 = vld [vmem:[%s7403_s17] ss:$0 sm:$0xff] }
 0x1e4   : > { %4538 = vmatmul.mubr.msk.bf16.vlgmr.msra.gmra.mrb[0].mxu0 %vm1402_vm3, %v5388_v14  ;;  %4556 = vmatmul.mubr.msk.bf16.vlgmr.msra.gmra.mrb[0].mxu1 %vm1402_vm3, %v5389_v15  ;;  %v5043_v2 = vpack.c.bf16 %v1794_v56, %v1793_v55  ;;  %v1795_v7 = vld [vmem:[%s6362_s20 + $0x20] sm:$0xff]  ;;  %v1796_v8 = vld [vmem:[%s6362_s20 + $0x28] sm:$0xff]  ;;  %v1801_v40 = vld [vmem:[%s6362_s20 + $0x50] sm:$0xff] }
 0x1e5   : > { %4541 = vmatprep.mubr.msk.bf16.mxu0 %vm1402_vm3, %v5390_v16  ;;  %4559 = vmatprep.mubr.msk.bf16.mxu1 %vm1402_vm3, %v5391_v17  ;;  %v5047_v14 = vpack.c.bf16 %v1796_v8, %v1795_v7  ;;  %v1797_v16 = vld [vmem:[%s6362_s20 + $0x30] sm:$0xff]  ;;  %v1798_v17 = vld [vmem:[%s6362_s20 + $0x38] sm:$0xff]  ;;  %v1800_v35 = vld [vmem:[%s6362_s20 + $0x48] sm:$0xff] }
 0x1e6   : > { %5010 = vmatpush3.bf16.msra.mxu0 %v5007_v24  ;;  %v1802_v41 = vld [vmem:[%s6362_s20 + $0x58] sm:$0xff]  ;;  %v1805_v8 = vld [vmem:[%s6362_s20 + $0x70] sm:$0xff] }
 0x1e7   : > { %5012 = vmatprep.subr.bf16.mxu0 %v5011_v28  ;;  %v5059_v53 = vpack.c.bf16 %v1802_v41, %v1801_v40  ;;  %v2168_v41 = vld [vmem:[%s6368_s30] sm:$0xf]  ;;  %s7404_s30 = sld [smem:[#allocation32_spill]] }
 0x1ea   : > { %5014 = vmatpush3.bf16.msra.mxu0 %v5011_v28  ;;  %v5051_v28 = vpack.c.bf16 %v1798_v17, %v1797_v16 }
 0x1eb   : > { %5016 = vmatprep.subr.bf16.mxu0 %v5015_v34 }
 0x1ec   : > { %4542 = vmatmul.mubr.msk.bf16.gmra.mrb[4].mxu0 %vm1402_vm3, %v5392_v18  ;;  %4560 = vmatmul.mubr.msk.bf16.gmra.mrb[4].mxu1 %vm1402_vm3, %v5393_v19 }
 0x1ed   : > { %4545 = vmatprep.mubr.msk.bf16.mxu0 %vm1402_vm3, %v5394_v20  ;;  %4563 = vmatprep.mubr.msk.bf16.mxu1 %vm1402_vm3, %v5395_v21 }
 0x1ee   : > { %5018 = vmatpush3.bf16.msra.mxu0 %v5015_v34  ;;  %v1799_v34 = vld [vmem:[%s6362_s20 + $0x40] sm:$0xff] }
 0x1ef   : > { %5020 = vmatprep.subr.bf16.mxu0 %v5019_v38 }
 0x1f2   : > { %5022 = vmatpush3.bf16.msra.mxu0 %v5019_v38 }
 0x1f3   : > { %5024 = vmatprep.subr.bf16.mxu0 %v5023_v42 }
 0x1f4   : > { %4546 = vmatmul.mubr.msk.bf16.gmra.mrb[8].mxu0 %vm1402_vm3, %v5396_v27  ;;  %4564 = vmatmul.mubr.msk.bf16.gmra.mrb[8].mxu1 %vm1402_vm3, %v5397_v29 }
 0x1f5   : > { %4549 = vmatprep.mubr.msk.bf16.mxu0 %vm1402_vm3, %v5398_v32  ;;  %4567 = vmatprep.mubr.msk.bf16.mxu1 %vm1402_vm3, %v5399_v33 }
 0x1f6   : > { %5026 = vmatpush3.bf16.msra.mxu0 %v5023_v42 }
 0x1f7   : > { %5028 = vmatprep.subr.bf16.mxu0 %v5027_v45 }
 0x1fa   : > { %5030 = vmatpush3.bf16.msra.mxu0 %v5027_v45 }
 0x1fb   : > { %5032 = vmatprep.subr.bf16.mxu0 %v5031_v48 }
 0x1fc   : > { %4550 = vmatmul.mubr.msk.bf16.gmra.mrb[12].mxu0 %vm1402_vm3, %v5400_v37  ;;  %4568 = vmatmul.mubr.msk.bf16.gmra.mrb[12].mxu1 %vm1402_vm3, %v5401_v39  ;;  %v5055_v39 = vpack.c.bf16 %v1800_v35, %v1799_v34 }
 0x1fe   : > { %5034 = vmatpush3.bf16.msra.mxu0 %v5031_v48 }
 0x1ff   : > { %5036 = vmatprep.subr.bf16.mxu0 %v5035_v51 }
 0x202   : > { %5038 = vmatpush3.bf16.msra.mxu0 %v5035_v51 }
 0x203   : > { %5040 = vmatprep.subr.bf16.mxu0 %v5039_v54 }
 0x2b7   : > { %v6502_v57 = vpop.f32.mrb[0].mxu0  ;;  %v4557_v58 = vpop.f32.mrb[0].mxu1 }
 0x2b8   : > { %v1707_v60 = vsub.f32 %v6502_v57, %v4557_v58  ;;  %v6510_v61 = vpop.f32.mrb[1].mxu0  ;;  %v1642_v62 = vpop.f32.mrb[1].mxu1 }
 0x2b9   : > { %v1705_v63 = vsub.f32 %v6510_v61, %v1642_v62  ;;  %v6513_v0 = vpop.f32.mrb[2].mxu0  ;;  %v4558_v1 = vpop.f32.mrb[2].mxu1  ;;  %4603 = vmatprep.mubr.f32.mxu0 %v1642_v62 }
 0x2ba   : > { %v1708_v3 = vsub.f32 %v6513_v0, %v4558_v1  ;;  %v6516_v4 = vpop.f32.mrb[3].mxu0  ;;  %v1645_v5 = vpop.f32.mrb[3].mxu1  ;;  %v6519_v6 = vmul.f32 %v6507_v59, %v1707_v60 }
 0x2bb   : > { %v1706_v9 = vsub.f32 %v6516_v4, %v1645_v5  ;;  %4604 = vmatmul.mubr.f32.vlgmr.msra.gmra.mrb[16].mxu0 %v1645_v5  ;;  %v6525_v10 = vmul.f32 %v6507_v59, %v1705_v63  ;;  %v1803_v63 = vld [vmem:[%s6362_s20 + $0x60] sm:$0xff] }
 0x2bc   : > { %4606 = vmatprep.mubr.f32.mxu0 %v4557_v58  ;;  %5042 = vmatpush3.bf16.msra.mxu0 %v5039_v54  ;;  %v1745_v11 = vmul.f32 %v6519_v6, %v6519_v6  ;;  %v6530_v12 = vmul.f32 %v6507_v59, %v1708_v3 }
 0x2bd   : > { %5044 = vmatprep.subr.bf16.mxu0 %v5043_v2  ;;  %v1743_v13 = vmul.f32 %v6525_v10, %v6525_v10  ;;  %v6535_v15 = vmul.f32 %v6507_v59, %v1706_v9  ;;  %v1806_v9 = vld [vmem:[%s6362_s20 + $0x78] sm:$0xff] }
 0x2be   : > { %1763 = vadd.xlane.f32.xlu1 %v1745_v11  ;;  %v1746_v23 = vmul.f32 %v6530_v12, %v6530_v12 }
 0x2bf   : > { %v6539_v18 = vpop.f32.mrb[4].mxu0  ;;  %v4561_v19 = vpop.f32.mrb[4].mxu1  ;;  %4607 = vmatmul.mubr.f32.gmra.mrb[18].mxu0 %v4558_v1  ;;  %1759 = vadd.xlane.f32.xlu0 %v1743_v13  ;;  %v1744_v27 = vmul.f32 %v6535_v15, %v6535_v15  ;;  %v1804_v1 = vld [vmem:[%s6362_s20 + $0x68] sm:$0xff]  ;;  %s7406_s20 = scalar_lea.vmem %s7405_s13, %s6352_s16 }
 0x2c0   : > { %v1711_v20 = vsub.f32 %v6539_v18, %v4561_v19  ;;  %v6542_v21 = vpop.f32.mrb[5].mxu0  ;;  %v1658_v22 = vpop.f32.mrb[5].mxu1  ;;  %5046 = vmatpush3.bf16.msra.mxu0 %v5043_v2  ;;  %v5063_v7 = vpack.c.bf16 %v1804_v1, %v1803_v63  ;;  %v2521_v1 = vld [vmem:[%s6327_s19 + $0x20] sm:$0xff] }
 0x2c1   : > { %v1709_v24 = vsub.f32 %v6542_v21, %v1658_v22  ;;  %v6547_v25 = vpop.f32.mrb[6].mxu0  ;;  %v4562_v26 = vpop.f32.mrb[6].mxu1  ;;  %4609 = vmatprep.mubr.f32.mxu0 %v1658_v22  ;;  %5048 = vmatprep.subr.bf16.mxu0 %v5047_v14 }
 0x2c2   : > { %v1712_v29 = vsub.f32 %v6547_v25, %v4562_v26  ;;  %v6552_v30 = vpop.f32.mrb[7].mxu0  ;;  %v1661_v31 = vpop.f32.mrb[7].mxu1  ;;  %1765 = vadd.xlane.f32.xlu1 %v1746_v23  ;;  %v6566_v38 = vmul.f32 %v6507_v59, %v1711_v20 }
 0x2c3   : > { %v1710_v32 = vsub.f32 %v6552_v30, %v1661_v31  ;;  %4610 = vmatmul.mubr.f32.gmra.mrb[20].mxu0 %v1661_v31  ;;  %1761 = vadd.xlane.f32.xlu0 %v1744_v27  ;;  %v6556_v33 = vmul.f32 %v6507_v59, %v1709_v24  ;;  %v5067_v27 = vpack.c.bf16 %v1806_v9, %v1805_v8  ;;  %v2523_v8 = vld [vmem:[%s6327_s19 + $0x30] sm:$0xff]  ;;  %v2524_v9 = vld [vmem:[%s6327_s19 + $0x38] sm:$0xff] }
 0x2c4   : > { %4612 = vmatprep.mubr.f32.mxu0 %v4561_v19  ;;  %5050 = vmatpush3.bf16.msra.mxu0 %v5047_v14  ;;  %v6575_v45 = vmul.f32 %v6507_v59, %v1712_v29  ;;  %v1749_v52 = vmul.f32 %v6566_v38, %v6566_v38 }
 0x2c5   : > { %5052 = vmatprep.subr.bf16.mxu0 %v5051_v28  ;;  %v1747_v36 = vmul.f32 %v6556_v33, %v6556_v33  ;;  %v6563_v37 = vmul.f32 %v6507_v59, %v1710_v32 }
 0x2c6   : > { %v1750_v60 = vmul.f32 %v6575_v45, %v6575_v45 }
 0x2c7   : > { %v6570_v42 = vpop.f32.mrb[8].mxu0  ;;  %v4565_v43 = vpop.f32.mrb[8].mxu1  ;;  %4613 = vmatmul.mubr.f32.gmra.mrb[22].mxu0 %v4562_v26  ;;  %1767 = vadd.xlane.f32.xlu0 %v1747_v36  ;;  %v1748_v44 = vmul.f32 %v6563_v37, %v6563_v37 }
 0x2c8   : > { %v1715_v46 = vsub.f32 %v6570_v42, %v4565_v43  ;;  %v6578_v47 = vpop.f32.mrb[9].mxu0  ;;  %v1674_v48 = vpop.f32.mrb[9].mxu1  ;;  %5054 = vmatpush3.bf16.msra.mxu0 %v5051_v28 }
 0x2c9   : > { %v1713_v49 = vsub.f32 %v6578_v47, %v1674_v48  ;;  %v6581_v50 = vpop.f32.mrb[10].mxu0  ;;  %v4566_v51 = vpop.f32.mrb[10].mxu1  ;;  %4615 = vmatprep.mubr.f32.mxu0 %v1674_v48  ;;  %1769 = vadd.xlane.f32.xlu1 %v1748_v44 }
 0x2ca   : > { %v1716_v54 = vsub.f32 %v6581_v50, %v4566_v51  ;;  %v6586_v55 = vpop.f32.mrb[11].mxu0  ;;  %v1677_v56 = vpop.f32.mrb[11].mxu1  ;;  %5056 = vmatprep.subr.bf16.mxu0 %v5055_v39  ;;  %v6602_v5 = vmul.f32 %v6507_v59, %v1715_v46 }
 0x2cb   : > { %v1714_v58 = vsub.f32 %v6586_v55, %v1677_v56  ;;  %4616 = vmatmul.mubr.f32.gmra.mrb[24].mxu0 %v1677_v56  ;;  %1771 = vadd.xlane.f32.xlu0 %v1749_v52  ;;  %v6592_v62 = vmul.f32 %v6507_v59, %v1713_v49  ;;  %v2163_v49 = vld [vmem:[%s7404_s30 + $0x58] sm:$0xff]  ;;  %v2166_v52 = vld [vmem:[%s7404_s30 + $0x70] sm:$0xff] }
 0x2cc   : > { %4618 = vmatprep.mubr.f32.mxu0 %v4565_v43  ;;  %5058 = vmatpush3.bf16.msra.mxu0 %v5055_v39  ;;  %v6609_v16 = vmul.f32 %v6507_v59, %v1716_v54  ;;  %v1753_v26 = vmul.f32 %v6602_v5, %v6602_v5  ;;  %v2517_v54 = vld [vmem:[%s6327_s19] sm:$0xff] }
 0x2cd   : > { %1773 = vadd.xlane.f32.xlu1 %v1750_v60  ;;  %5060 = vmatprep.subr.bf16.mxu0 %v5059_v53  ;;  %v1751_v2 = vmul.f32 %v6592_v62, %v6592_v62  ;;  %v6599_v3 = vmul.f32 %v6507_v59, %v1714_v58  ;;  %v2519_v58 = vld [vmem:[%s6327_s19 + $0x10] sm:$0xff]  ;;  %v2520_v60 = vld [vmem:[%s6327_s19 + $0x18] sm:$0xff] }
 0x2ce   : > { %v1754_v34 = vmul.f32 %v6609_v16, %v6609_v16  ;;  %v5075_v63 = vpack.c.bf16 %v2520_v60, %v2519_v58 }
 0x2cf   : > { %v4551_v11 = vpop.f32.mrb[12].mxu0  ;;  %v4569_v13 = vpop.f32.mrb[12].mxu1  ;;  %4619 = vmatmul.mubr.f32.gmra.mrb[26].mxu0 %v4566_v51  ;;  %1775 = vadd.xlane.f32.xlu0 %v1751_v2  ;;  %v1752_v14 = vmul.f32 %v6599_v3, %v6599_v3  ;;  %v2165_v51 = vld [vmem:[%s7404_s30 + $0x68] sm:$0xff] }
 0x2d0   : > { %v1719_v17 = vsub.f32 %v4551_v11, %v4569_v13  ;;  %v1513_v19 = vpop.f32.mrb[13].mxu0  ;;  %v1690_v20 = vpop.f32.mrb[13].mxu1  ;;  %5062 = vmatpush3.bf16.msra.mxu0 %v5059_v53  ;;  %v2167_v53 = vld [vmem:[%s7404_s30 + $0x78] sm:$0xff]  ;;  %v2522_v2 = vld [vmem:[%s6327_s19 + $0x28] sm:$0xff] }
 0x2d1   : > { %v1717_v22 = vsub.f32 %v1513_v19, %v1690_v20  ;;  %v4552_v23 = vpop.f32.mrb[14].mxu0  ;;  %v4570_v24 = vpop.f32.mrb[14].mxu1  ;;  %4621 = vmatprep.mubr.f32.mxu0 %v1690_v20  ;;  %1777 = vadd.xlane.f32.xlu1 %v1752_v14  ;;  %v2526_v14 = vld [vmem:[%s6327_s19 + $0x48] sm:$0xff]  ;;  %v2528_v20 = vld [vmem:[%s6327_s19 + $0x58] sm:$0xff] }
 0x2d2   : > { %v1720_v28 = vsub.f32 %v4552_v23, %v4570_v24  ;;  %v1516_v29 = vpop.f32.mrb[15].mxu0  ;;  %v1693_v31 = vpop.f32.mrb[15].mxu1  ;;  %5064 = vmatprep.subr.bf16.mxu0 %v5063_v7  ;;  %v6624_v40 = vmul.f32 %v6507_v59, %v1719_v17 }
 0x2d3   : > { %v1718_v32 = vsub.f32 %v1516_v29, %v1693_v31  ;;  %4622 = vmatmul.mubr.f32.gmra.mrb[28].mxu0 %v1693_v31  ;;  %1779 = vadd.xlane.f32.xlu0 %v1753_v26  ;;  %v6616_v35 = vmul.f32 %v6507_v59, %v1717_v22 }
 0x2d4   : > { %4624 = vmatprep.mubr.f32.mxu0 %v4569_v13  ;;  %5066 = vmatpush3.bf16.msra.mxu0 %v5063_v7  ;;  %v6630_v44 = vmul.f32 %v6507_v59, %v1720_v28  ;;  %v1757_v46 = vmul.f32 %v6624_v40, %v6624_v40  ;;  %v5079_v7 = vpack.c.bf16 %v2522_v2, %v2521_v1  ;;  %v2525_v13 = vld [vmem:[%s6327_s19 + $0x40] sm:$0xff]  ;;  %v2532_v28 = vld [vmem:[%s6327_s19 + $0x78] sm:$0xff] }
 0x2d5   : > { %1781 = vadd.xlane.f32.xlu1 %v1754_v34  ;;  %5068 = vmatprep.subr.bf16.mxu0 %v5067_v27  ;;  %v1755_v36 = vmul.f32 %v6616_v35, %v6616_v35  ;;  %v6621_v39 = vmul.f32 %v6507_v59, %v1718_v32  ;;  %v2153_v59 = vld [vmem:[%s7404_s30 + $0x8] sm:$0xff]  ;;  %v5087_v17 = vpack.c.bf16 %v2526_v14, %v2525_v13 }
 0x2d6   : > { %v1758_v48 = vmul.f32 %v6630_v44, %v6630_v44 }
 0x2d7   : > { %4625 = vmatmul.mubr.f32.gmra.mrb[30].mxu0 %v4570_v24  ;;  %1783 = vadd.xlane.f32.xlu0 %v1755_v36  ;;  %v1756_v43 = vmul.f32 %v6621_v39, %v6621_v39  ;;  %v2530_v24 = vld [vmem:[%s6327_s19 + $0x68] sm:$0xff] }
 0x2d8   : > { %5070 = vmatpush3.bf16.msra.mxu0 %v5067_v27  ;;  %4659 = vmatprep.mubr.f32.mxu0 %v6510_v61  ;;  %v2154_v61 = vld [vmem:[%s7404_s30 + $0x10] sm:$0xff] }
 0x2d9   : > { %1785 = vadd.xlane.f32.xlu1 %v1756_v43  ;;  %4683 = vmatprep.subr.msk.mxu0 %vm1427_vm2, %v2168_v41  ;;  %v2531_v27 = vld [vmem:[%s6327_s19 + $0x70] sm:$0xff] }
 0x2db   : > { %4660 = vmatmul.mubr.f32.vlgmr.msra.gmra.mrb[16].mxu0 %v6516_v4  ;;  %1787 = vadd.xlane.f32.xlu0 %v1757_v46  ;;  %v2156_v4 = vld [vmem:[%s7404_s30 + $0x20] sm:$0xff] }
 0x2dc   : > { %4662 = vmatprep.mubr.f32.mxu0 %v6502_v57  ;;  %4684 = vmatpush3.msk.msra.mxu0 %vm1427_vm2, %v2168_v41  ;;  %v2152_v57 = vld [vmem:[%s7404_s30] sm:$0xff] }
 0x2dd   : > { %1789 = vadd.xlane.f32.xlu1 %v1758_v48  ;;  %v6735_v46 = vld [vmem:[%s7406_s20] ss:$0 sm:$0xff] }
 0x2df   : > { %4663 = vmatmul.mubr.f32.gmra.mrb[18].mxu0 %v6513_v0  ;;  %v2155_v0 = vld [vmem:[%s7404_s30 + $0x18] sm:$0xff] }
 0x2e0   : > { %4665 = vmatprep.mubr.f32.mxu0 %v6542_v21  ;;  %v2158_v21 = vld [vmem:[%s7404_s30 + $0x30] sm:$0xff] }
 0x2e3   : > { %4666 = vmatmul.mubr.f32.gmra.mrb[20].mxu0 %v6552_v30  ;;  %v2160_v30 = vld [vmem:[%s7404_s30 + $0x40] sm:$0xff] }
 0x2e4   : > { %4668 = vmatprep.mubr.f32.mxu0 %v6539_v18  ;;  %v2157_v18 = vld [vmem:[%s7404_s30 + $0x28] sm:$0xff] }
 0x2e7   : > { %4669 = vmatmul.mubr.f32.gmra.mrb[22].mxu0 %v6547_v25  ;;  %v2159_v25 = vld [vmem:[%s7404_s30 + $0x38] sm:$0xff] }
 0x2e8   : > { %4671 = vmatprep.mubr.f32.mxu0 %v6578_v47  ;;  %v2162_v47 = vld [vmem:[%s7404_s30 + $0x50] sm:$0xff] }
 0x2eb   : > { %4672 = vmatmul.mubr.f32.gmra.mrb[24].mxu0 %v6586_v55  ;;  %v2518_v55 = vld [vmem:[%s6327_s19 + $0x8] sm:$0xff] }
 0x2ec   : > { %4674 = vmatprep.mubr.f32.mxu0 %v6570_v42  ;;  %v2161_v42 = vld [vmem:[%s7404_s30 + $0x48] sm:$0xff]  ;;  %v5071_v56 = vpack.c.bf16 %v2518_v55, %v2517_v54 }
 0x2ee   : > { %5072 = vmatprep.subr.bf16.mxu1 %v5071_v56 }
 0x2ef   : > { %4675 = vmatmul.mubr.f32.gmra.mrb[26].mxu0 %v6581_v50  ;;  %v2164_v50 = vld [vmem:[%s7404_s30 + $0x60] sm:$0xff]  ;;  %5074 = vmatpush3.bf16.msra.mxu1 %v5071_v56 }
 0x2f0   : > { %4677 = vmatprep.mubr.f32.mxu0 %v1513_v19  ;;  %5076 = vmatprep.subr.bf16.mxu1 %v5075_v63  ;;  %v2527_v19 = vld [vmem:[%s6327_s19 + $0x50] sm:$0xff] }
 0x2f1   : > { %v5091_v22 = vpack.c.bf16 %v2528_v20, %v2527_v19 }
 0x2f3   : > { %4678 = vmatmul.mubr.f32.gmra.mrb[28].mxu0 %v1516_v29  ;;  %5078 = vmatpush3.bf16.msra.mxu1 %v5075_v63  ;;  %v5099_v29 = vpack.c.bf16 %v2532_v28, %v2531_v27 }
 0x2f4   : > { %4680 = vmatprep.mubr.f32.mxu0 %v4551_v11  ;;  %5080 = vmatprep.subr.bf16.mxu1 %v5079_v7  ;;  %v5083_v11 = vpack.c.bf16 %v2524_v9, %v2523_v8 }
 0x2f7   : > { %4681 = vmatmul.mubr.f32.gmra.mrb[30].mxu0 %v4552_v23  ;;  %5082 = vmatpush3.bf16.msra.mxu1 %v5079_v7  ;;  %v2529_v23 = vld [vmem:[%s6327_s19 + $0x60] sm:$0xff]  ;;  %s7417_s19 = sld [smem:[#allocation24_spill]] }
 0x2f8   : > { %4685 = vmatprep.mubr.msk.f32.mxu0 %vm2169_vm4, %v2152_v57  ;;  %5084 = vmatprep.subr.bf16.mxu1 %v5083_v11  ;;  %v5095_v26 = vpack.c.bf16 %v2530_v24, %v2529_v23 }
 0x2fb   : > { %4686 = vmatmul.mubr.msk.f32.vlgmr.msra.gmra.mrb[16].mxu0 %vm2169_vm4, %v2153_v59  ;;  %5086 = vmatpush3.bf16.msra.mxu1 %v5083_v11 }
 0x2fc   : > { %4688 = vmatprep.mubr.msk.f32.mxu0 %vm2169_vm4, %v2154_v61  ;;  %5088 = vmatprep.subr.bf16.mxu1 %v5087_v17 }
 0x2fd   : > { %p5325_p10 = scmp.eq.s32.totalorder %s7417_s19, 3 }
 0x2ff   : > { %4689 = vmatmul.mubr.msk.f32.gmra.mrb[18].mxu0 %vm2169_vm4, %v2155_v0  ;;  %5090 = vmatpush3.bf16.msra.mxu1 %v5087_v17  ;;  %v6744_v0 = vld [vmem:[%s7408_s2] ss:$0 sm:$0xff] }
 0x300   : > { %4691 = vmatprep.mubr.msk.f32.mxu0 %vm2169_vm4, %v2156_v4  ;;  %5092 = vmatprep.subr.bf16.mxu1 %v5091_v22 }
 0x303   : > { %4692 = vmatmul.mubr.msk.f32.gmra.mrb[20].mxu0 %vm2169_vm4, %v2157_v18  ;;  %5094 = vmatpush3.bf16.msra.mxu1 %v5091_v22 }
 0x304   : > { %4694 = vmatprep.mubr.msk.f32.mxu0 %vm2169_vm4, %v2158_v21  ;;  %5096 = vmatprep.subr.bf16.mxu1 %v5095_v26 }
 0x307   : > { %4695 = vmatmul.mubr.msk.f32.gmra.mrb[22].mxu0 %vm2169_vm4, %v2159_v25  ;;  %5098 = vmatpush3.bf16.msra.mxu1 %v5095_v26 }
 0x308   : > { %4697 = vmatprep.mubr.msk.f32.mxu0 %vm2169_vm4, %v2160_v30  ;;  %5100 = vmatprep.subr.bf16.mxu1 %v5099_v29 }
 0x30b   : > { %4698 = vmatmul.mubr.msk.f32.gmra.mrb[24].mxu0 %vm2169_vm4, %v2161_v42  ;;  %5102 = vmatpush3.bf16.msra.mxu1 %v5099_v29 }
 0x30c   : > { %4700 = vmatprep.mubr.msk.f32.mxu0 %vm2169_vm4, %v2162_v47 }
 0x30f   : > { %4701 = vmatmul.mubr.msk.f32.gmra.mrb[26].mxu0 %vm2169_vm4, %v2163_v49 }
 0x310   : > { %4703 = vmatprep.mubr.msk.f32.mxu0 %vm2169_vm4, %v2164_v50 }
 0x313   : > { %4704 = vmatmul.mubr.msk.f32.gmra.mrb[28].mxu0 %vm2169_vm4, %v2165_v51 }
 0x314   : > { %4706 = vmatprep.mubr.msk.f32.mxu0 %vm2169_vm4, %v2166_v52 }
 0x317   : > { %4707 = vmatmul.mubr.msk.f32.gmra.mrb[30].mxu0 %vm2169_vm4, %v2167_v53 }
 0x34b   : > { %v1764_v32 = vpop.xlane.xlu1 %1763 }
 0x34c   : > { %v1760_v31 = vpop.xlane.xlu0 %1759  ;;  %v2122_v47 = vmul.f32 %v6735_v46, %v1764_v32 }
 0x34d   : > { %v2120_v57 = vmul.f32 %v6735_v46, %v1760_v31 }
 0x34f   : > { %v1766_v36 = vpop.xlane.xlu1 %1765 }
 0x350   : > { %v1762_v34 = vpop.xlane.xlu0 %1761  ;;  %v2123_v30 = vmul.f32 %v6735_v46, %v1766_v36 }
 0x351   : > { %v2121_v48 = vmul.f32 %v6735_v46, %v1762_v34 }
 0x354   : > { %v1768_v43 = vpop.xlane.xlu0 %1767 }
 0x355   : > { %v2124_v1 = vmul.f32 %v6735_v46, %v1768_v43 }
 0x356   : > { %v1770_v41 = vpop.xlane.xlu1 %1769 }
 0x357   : > { %v2125_v58 = vmul.f32 %v6735_v46, %v1770_v41 }
 0x358   : > { %v1772_v4 = vpop.xlane.xlu0 %1771 }
 0x359   : > { %v2126_v20 = vmul.f32 %v6735_v46, %v1772_v4 }
 0x35a   : > { %v1774_v59 = vpop.xlane.xlu1 %1773 }
 0x35b   : > { %v2127_v17 = vmul.f32 %v6735_v46, %v1774_v59 }
 0x35c   : > { %v1776_v60 = vpop.xlane.xlu0 %1775 }
 0x35d   : > { %v2128_v41 = vmul.f32 %v6735_v46, %v1776_v60 }
 0x35e   : > { %v1778_v54 = vpop.xlane.xlu1 %1777 }
 0x35f   : > { %v2129_v34 = vmul.f32 %v6735_v46, %v1778_v54 }
 0x360   : > { %v1780_v26 = vpop.xlane.xlu0 %1779 }
 0x361   : > { %v2130_v54 = vmul.f32 %v6735_v46, %v1780_v26 }
 0x362   : > { %v1782_v22 = vpop.xlane.xlu1 %1781 }
 0x3ce   : > { %v4687_v61 = vpop.f32.mrb[16].mxu0 }
 0x3cf   : > { %v5239_v18 = vadd.f32 %v4687_v61, %v2121_v48  ;;  %v2287_v21 = vpop.f32.mrb[17].mxu0 }
 0x3d0   : > { %v5240_v25 = vadd.f32 %v2287_v21, %v2120_v57  ;;  %v1786_v21 = vpop.xlane.xlu1 %1785 }
 0x3d1   : > { %v6748_v42 = vadd.f32 %v5239_v18, %v6744_v0 }
 0x3d2   : > { %v6752_v49 = vadd.f32 %v5240_v25, %v6744_v0  ;;  %v4690_v50 = vpop.f32.mrb[18].mxu0 }
 0x3d3   : > { %v4205_v51 = vmul.f32 -1.442695, %v6748_v42  ;;  %v5241_v52 = vadd.f32 %v4690_v50, %v2123_v30  ;;  %v2297_v53 = vpop.f32.mrb[19].mxu0  ;;  %v2131_v50 = vmul.f32 %v6735_v46, %v1782_v22 }
 0x3d4   : > { %v4204_v55 = vmul.f32 -1.442695, %v6752_v49  ;;  %v5242_v56 = vadd.f32 %v2297_v53, %v2122_v47 }
 0x3d5   : > { %5402 = vpow2.f32 %v4205_v51  ;;  %v6758_v63 = vadd.f32 %v5241_v52, %v6744_v0  ;;  %v1784_v51 = vpop.xlane.xlu0 %1783 }
 0x3d6   : > { %5404 = vpow2.f32 %v4204_v55  ;;  %v6762_v2 = vadd.f32 %v5242_v56, %v6744_v0  ;;  %v4693_v7 = vpop.f32.mrb[20].mxu0  ;;  %v2132_v22 = vmul.f32 %v6735_v46, %v1784_v51 }
 0x3d7   : > { %v4207_v8 = vmul.f32 -1.442695, %v6758_v63  ;;  %v5243_v9 = vadd.f32 %v4693_v7, %v2125_v58  ;;  %v2307_v11 = vpop.f32.mrb[21].mxu0 }
 0x3d8   : > { %v4206_v13 = vmul.f32 -1.442695, %v6762_v2  ;;  %v5244_v14 = vadd.f32 %v2307_v11, %v2124_v1 }
 0x3d9   : > { %5406 = vpow2.f32 %v4207_v8  ;;  %v6768_v19 = vadd.f32 %v5243_v9, %v6744_v0 }
 0x3da   : > { %5408 = vpow2.f32 %v4206_v13  ;;  %v6772_v23 = vadd.f32 %v5244_v14, %v6744_v0  ;;  %v4696_v24 = vpop.f32.mrb[22].mxu0  ;;  %v2133_v14 = vmul.f32 %v6735_v46, %v1786_v21 }
 0x3db   : > { %v4209_v27 = vmul.f32 -1.442695, %v6768_v19  ;;  %v5245_v28 = vadd.f32 %v4696_v24, %v2127_v17  ;;  %v2317_v29 = vpop.f32.mrb[23].mxu0  ;;  %v1790_v24 = vpop.xlane.xlu1 %1789 }
 0x3dc   : > { %v4208_v31 = vmul.f32 -1.442695, %v6772_v23  ;;  %v5246_v32 = vadd.f32 %v2317_v29, %v2126_v20  ;;  %v1788_v29 = vpop.xlane.xlu0 %1787 }
 0x3dd   : > { %5410 = vpow2.f32 %v4209_v27  ;;  %v6778_v36 = vadd.f32 %v5245_v28, %v6744_v0  ;;  %v2134_v21 = vmul.f32 %v6735_v46, %v1788_v29 }
 0x3de   : > { %5412 = vpow2.f32 %v4208_v31  ;;  %v6782_v43 = vadd.f32 %v5246_v32, %v6744_v0  ;;  %v4699_v48 = vpop.f32.mrb[24].mxu0 }
 0x3df   : > { %v5403_v57 = vpop.eup %5402  ;;  %v4211_v59 = vmul.f32 -1.442695, %v6778_v36  ;;  %v5247_v61 = vadd.f32 %v4699_v48, %v2129_v34  ;;  %v2327_v4 = vpop.f32.mrb[25].mxu0 }
 0x3e0   : > { %v5405_v18 = vpop.eup %5404  ;;  %v2454_v25 = vadd.f32 1.0, %v5403_v57  ;;  %v4210_v30 = vmul.f32 -1.442695, %v6782_v43  ;;  %v5248_v47 = vadd.f32 %v2327_v4, %v2128_v41 }
 0x3e1   : > { %v2453_v52 = vadd.f32 1.0, %v5405_v18  ;;  %5414 = vpow2.f32 %v4211_v59  ;;  %v6788_v53 = vadd.f32 %v5247_v61, %v6744_v0  ;;  %v2135_v61 = vmul.f32 %v6735_v46, %v1790_v24 }
 0x3e2   : > { %5416 = vrcp.f32 %v2454_v25  ;;  %v6792_v55 = vadd.f32 %v5248_v47, %v6744_v0  ;;  %v4702_v56 = vpop.f32.mrb[26].mxu0 }
 0x3e3   : > { %v5407_v58 = vpop.eup %5406  ;;  %5418 = vrcp.f32 %v2453_v52  ;;  %v4213_v60 = vmul.f32 -1.442695, %v6788_v53  ;;  %v5249_v1 = vadd.f32 %v4702_v56, %v2131_v50  ;;  %v2337_v7 = vpop.f32.mrb[27].mxu0 }
 0x3e4   : > { %v5409_v8 = vpop.eup %5408  ;;  %v2456_v9 = vadd.f32 1.0, %v5407_v58  ;;  %5420 = vpow2.f32 %v4210_v30  ;;  %v4212_v11 = vmul.f32 -1.442695, %v6792_v55  ;;  %v5250_v13 = vadd.f32 %v2337_v7, %v2130_v54 }
 0x3e5   : > { %v2455_v17 = vadd.f32 1.0, %v5409_v8  ;;  %5422 = vpow2.f32 %v4213_v60  ;;  %v6798_v20 = vadd.f32 %v5249_v1, %v6744_v0 }
 0x3e6   : > { %5424 = vrcp.f32 %v2456_v9  ;;  %v6802_v26 = vadd.f32 %v5250_v13, %v6744_v0  ;;  %v4705_v27 = vpop.f32.mrb[28].mxu0 }
 0x3e7   : > { %v5411_v28 = vpop.eup %5410  ;;  %5426 = vrcp.f32 %v2455_v17  ;;  %v4215_v31 = vmul.f32 -1.442695, %v6798_v20  ;;  %v5251_v32 = vadd.f32 %v4705_v27, %v2133_v14  ;;  %v2347_v34 = vpop.f32.mrb[29].mxu0 }
 0x3e8   : > { %v5413_v41 = vpop.eup %5412  ;;  %v2458_v48 = vadd.f32 1.0, %v5411_v28  ;;  %5428 = vpow2.f32 %v4212_v11  ;;  %v4214_v57 = vmul.f32 -1.442695, %v6802_v26  ;;  %v5252_v59 = vadd.f32 %v2347_v34, %v2132_v22 }
 0x3e9   : > { %v2457_v4 = vadd.f32 1.0, %v5413_v41  ;;  %5430 = vpow2.f32 %v4215_v31  ;;  %v6808_v18 = vadd.f32 %v5251_v32, %v6744_v0 }
 0x3ea   : > { %5432 = vrcp.f32 %v2458_v48  ;;  %v6812_v25 = vadd.f32 %v5252_v59, %v6744_v0  ;;  %v4708_v30 = vpop.f32.mrb[30].mxu0 }
 0x3eb   : > { %v5415_v47 = vpop.eup %5414  ;;  %5434 = vrcp.f32 %v2457_v4  ;;  %v4217_v50 = vmul.f32 -1.442695, %v6808_v18  ;;  %v5253_v51 = vadd.f32 %v4708_v30, %v2135_v61  ;;  %v2357_v52 = vpop.f32.mrb[31].mxu0 }
 0x3ec   : > { %v5417_v54 = vpop.eup %5416  ;;  %v2460_v56 = vadd.f32 1.0, %v5415_v47  ;;  %5436 = vpow2.f32 %v4214_v57  ;;  %v4216_v58 = vmul.f32 -1.442695, %v6812_v25  ;;  %v5254_v60 = vadd.f32 %v2357_v52, %v2134_v21 }
 0x3ed   : > { %v5419_v1 = vpop.eup %5418  ;;  %5438 = vpow2.f32 %v4217_v50  ;;  %v6817_v46 = vadd.f32 %v5253_v51, %v6744_v0  ;;  %v2502_v13 = vmul.f32 %v5417_v54, %v6748_v42 }
 0x3ee   : > { %v5421_v7 = vpop.eup %5420  ;;  %v6820_v8 = vadd.f32 %v5254_v60, %v6744_v0  ;;  %v2501_v9 = vmul.f32 %v5419_v1, %v6752_v49  ;;  %5440 = vpow2.f32 %v4216_v58 }
 0x3ef   : > { %v5423_v11 = vpop.eup %5422  ;;  %v2459_v14 = vadd.f32 1.0, %v5421_v7  ;;  %v4219_v17 = vmul.f32 -1.442695, %v6817_v46  ;;  %5442 = vrcp.f32 %v2460_v56 }
 0x3f0   : > { %v5425_v22 = vpop.eup %5424  ;;  %v2462_v24 = vadd.f32 1.0, %v5423_v11  ;;  %v4218_v27 = vmul.f32 -1.442695, %v6820_v8  ;;  %4741 = vmatprep.mubr.f32.mxu1 %v2501_v9 }
 0x3f1   : > { %v5427_v28 = vpop.eup %5426  ;;  %5444 = vrcp.f32 %v2459_v14  ;;  %4742 = vmatmul.mubr.f32.vlgmr.msra.gmra.mrb[16].mxu1 %v2502_v13  ;;  %v2504_v42 = vmul.f32 %v5425_v22, %v6758_v63 }
 0x3f2   : > { %v5429_v0 = vpop.eup %5428  ;;  %5446 = vrcp.f32 %v2462_v24  ;;  %v2503_v49 = vmul.f32 %v5427_v28, %v6762_v2  ;;  %v2798_v24 = vld [vmem:[%s6343_s5 + $0x8] sm:$0xff] }
 0x3f3   : > { %v5431_v29 = vpop.eup %5430  ;;  %v2461_v31 = vadd.f32 1.0, %v5429_v0  ;;  %5448 = vpow2.f32 %v4219_v17 }
 0x3f4   : > { %v5433_v32 = vpop.eup %5432  ;;  %v2464_v34 = vadd.f32 1.0, %v5431_v29  ;;  %5450 = vpow2.f32 %v4218_v27  ;;  %4744 = vmatprep.mubr.f32.mxu1 %v2503_v49  ;;  %v2800_v27 = vld [vmem:[%s6343_s5 + $0x18] sm:$0xff]  ;;  %v2803_v49 = vld [vmem:[%s6343_s5 + $0x30] sm:$0xff] }
 0x3f5   : > { %v5435_v41 = vpop.eup %5434  ;;  %5452 = vrcp.f32 %v2461_v31  ;;  %4745 = vmatmul.mubr.f32.gmra.mrb[18].mxu1 %v2504_v42  ;;  %v2506_v4 = vmul.f32 %v5433_v32, %v6768_v19  ;;  %v2804_v29 = vld [vmem:[%s6343_s5 + $0x38] sm:$0xff]  ;;  %v2805_v42 = vld [vmem:[%s6343_s5 + $0x40] sm:$0xff]  ;;  %v2806_v32 = vld [vmem:[%s6343_s5 + $0x48] sm:$0xff] }
 0x3f6   : > { %v5437_v48 = vpop.eup %5436  ;;  %v2505_v57 = vmul.f32 %v5435_v41, %v6772_v23  ;;  %5454 = vrcp.f32 %v2464_v34  ;;  %v5115_v31 = vpack.c.bf16 %v2804_v29, %v2803_v49  ;;  %v5119_v34 = vpack.c.bf16 %v2806_v32, %v2805_v42  ;;  %v2807_v41 = vld [vmem:[%s6343_s5 + $0x50] sm:$0xff] }
 0x3f7   : > { %v5439_v59 = vpop.eup %5438  ;;  %v2463_v61 = vadd.f32 1.0, %v5437_v48  ;;  %v2808_v48 = vld [vmem:[%s6343_s5 + $0x58] sm:$0xff] }
 0x3f8   : > { %v2466_v2 = vadd.f32 1.0, %v5439_v59  ;;  %4747 = vmatprep.mubr.f32.mxu1 %v2505_v57  ;;  %v5441_v21 = vpop.eup %5440  ;;  %v5123_v57 = vpack.c.bf16 %v2808_v48, %v2807_v41  ;;  %v2809_v59 = vld [vmem:[%s6343_s5 + $0x60] sm:$0xff] }
 0x3f9   : > { %5456 = vrcp.f32 %v2463_v61  ;;  %4748 = vmatmul.mubr.f32.gmra.mrb[20].mxu1 %v2506_v4  ;;  %v5443_v63 = vpop.eup %5442  ;;  %v2465_v30 = vadd.f32 1.0, %v5441_v21  ;;  %v2810_v61 = vld [vmem:[%s6343_s5 + $0x68] sm:$0xff]  ;;  %v2812_v21 = vld [vmem:[%s6343_s5 + $0x78] sm:$0xff] }
 0x3fa   : > { %5458 = vrcp.f32 %v2466_v2  ;;  %v2508_v23 = vmul.f32 %v5443_v63, %v6778_v36  ;;  %v5127_v4 = vpack.c.bf16 %v2810_v61, %v2809_v59  ;;  %v2811_v2 = vld [vmem:[%s6343_s5 + $0x70] sm:$0xff] }
 0x3fb   : > { %v5445_v47 = vpop.eup %5444  ;;  %5460 = vrcp.f32 %v2465_v30  ;;  %v5131_v63 = vpack.c.bf16 %v2812_v21, %v2811_v2  ;;  %v6861_v30 = vld [vmem:[%s7410_s6] ss:$0 sm:$0xff] }
 0x3fc   : > { %v5447_v50 = vpop.eup %5446  ;;  %v2507_v51 = vmul.f32 %v5445_v47, %v6782_v43 }
 0x3fd   : > { %v5449_v52 = vpop.eup %5448  ;;  %v2510_v1 = vmul.f32 %v5447_v50, %v6788_v53 }
 0x3fe   : > { %v5451_v54 = vpop.eup %5450  ;;  %v2468_v56 = vadd.f32 1.0, %v5449_v52  ;;  %4750 = vmatprep.mubr.f32.mxu1 %v2507_v51 }
 0x3ff   : > { %v5453_v19 = vpop.eup %5452  ;;  %v2467_v58 = vadd.f32 1.0, %v5451_v54  ;;  %4751 = vmatmul.mubr.f32.gmra.mrb[22].mxu1 %v2508_v23 }
 0x400   : > { %5462 = vrcp.f32 %v2468_v56  ;;  %v2509_v60 = vmul.f32 %v5453_v19, %v6792_v55  ;;  %v5455_v7 = vpop.eup %5454 }
 0x401   : > { %5464 = vrcp.f32 %v2467_v58  ;;  %v2512_v11 = vmul.f32 %v5455_v7, %v6798_v20  ;;  %v2797_v20 = vld [vmem:[%s6343_s5] sm:$0xff] }
 0x402   : > { %4753 = vmatprep.mubr.f32.mxu1 %v2509_v60 }
 0x403   : > { %v5457_v9 = vpop.eup %5456  ;;  %4754 = vmatmul.mubr.f32.gmra.mrb[24].mxu1 %v2510_v1 }
 0x404   : > { %v2511_v43 = vmul.f32 %v5457_v9, %v6802_v26  ;;  %v5459_v36 = vpop.eup %5458 }
 0x405   : > { %v5461_v13 = vpop.eup %5460  ;;  %v2514_v53 = vmul.f32 %v5459_v36, %v6808_v18  ;;  %v2799_v18 = vld [vmem:[%s6343_s5 + $0x10] sm:$0xff] }
 0x406   : > { %4756 = vmatprep.mubr.f32.mxu1 %v2511_v43  ;;  %v2513_v55 = vmul.f32 %v5461_v13, %v6812_v25  ;;  %v5103_v25 = vpack.c.bf16 %v2798_v24, %v2797_v20  ;;  %v5107_v28 = vpack.c.bf16 %v2800_v27, %v2799_v18 }
 0x407   : > { %4757 = vmatmul.mubr.f32.gmra.mrb[26].mxu1 %v2512_v11 }
 0x408   : > { %4759 = vmatprep.mubr.f32.mxu1 %v2513_v55  ;;  %5104 = vmatprep.subr.bf16.mxu1 %v5103_v25 }
 0x409   : > { %5106 = vmatpush3.bf16.msra.mxu1 %v5103_v25 }
 0x40a   : > { %v5463_v14 = vpop.eup %5462  ;;  %5108 = vmatprep.subr.bf16.mxu1 %v5107_v28 }
 0x40b   : > { %v5465_v17 = vpop.eup %5464  ;;  %4760 = vmatmul.mubr.f32.gmra.mrb[28].mxu1 %v2514_v53  ;;  %v2516_v22 = vmul.f32 %v5463_v14, %v6817_v46  ;;  %v2802_v46 = vld [vmem:[%s6343_s5 + $0x28] sm:$0xff] }
 0x40c   : > { %v2515_v26 = vmul.f32 %v5465_v17, %v6820_v8  ;;  %v2801_v8 = vld [vmem:[%s6343_s5 + $0x20] sm:$0xff] }
 0x40d   : > { %5110 = vmatpush3.bf16.msra.mxu1 %v5107_v28  ;;  %v5111_v0 = vpack.c.bf16 %v2802_v46, %v2801_v8 }
 0x40e   : > { %4762 = vmatprep.mubr.f32.mxu1 %v2515_v26 }
 0x40f   : > { %4763 = vmatmul.mubr.f32.gmra.mrb[30].mxu1 %v2516_v22  ;;  %5112 = vmatprep.subr.bf16.mxu1 %v5111_v0 }
 0x411   : > { %5114 = vmatpush3.bf16.msra.mxu1 %v5111_v0 }
 0x412   : > { %5116 = vmatprep.subr.bf16.mxu1 %v5115_v31 }
 0x415   : > { %5118 = vmatpush3.bf16.msra.mxu1 %v5115_v31 }
 0x416   : > { %5120 = vmatprep.subr.bf16.mxu1 %v5119_v34 }
 0x419   : > { %5122 = vmatpush3.bf16.msra.mxu1 %v5119_v34 }
 0x41a   : > { %5124 = vmatprep.subr.bf16.mxu1 %v5123_v57 }
 0x41d   : > { %5126 = vmatpush3.bf16.msra.mxu1 %v5123_v57 }
 0x41e   : > { %5128 = vmatprep.subr.bf16.mxu1 %v5127_v4 }
 0x421   : > { %5130 = vmatpush3.bf16.msra.mxu1 %v5127_v4 }
 0x422   : > { %5132 = vmatprep.subr.bf16.mxu1 %v5131_v63 }
 0x425   : > { %5134 = vmatpush3.bf16.msra.mxu1 %v5131_v63 }
 0x4c4   : > { %v4743_v47 = vpop.f32.mrb[16].mxu1 }
 0x4c5   : > { %v6864_v50 = vadd.f32 %v4743_v47, %v6861_v30  ;;  %v2606_v51 = vpop.f32.mrb[17].mxu1 }
 0x4c6   : > { %v6867_v52 = vadd.f32 %v6861_v30, %v2606_v51 }
 0x4c7   : > { %v4222_v23 = vmul.f32 -1.442695, %v6864_v50 }
 0x4c8   : > { %v4221_v54 = vmul.f32 -1.442695, %v6867_v52  ;;  %v4746_v56 = vpop.f32.mrb[18].mxu1 }
 0x4c9   : > { %5466 = vpow2.f32 %v4222_v23  ;;  %v6872_v19 = vadd.f32 %v4746_v56, %v6861_v30  ;;  %v2616_v58 = vpop.f32.mrb[19].mxu1 }
 0x4ca   : > { %5468 = vpow2.f32 %v4221_v54  ;;  %v6875_v60 = vadd.f32 %v6861_v30, %v2616_v58 }
 0x4cb   : > { %v4224_v1 = vmul.f32 -1.442695, %v6872_v19 }
 0x4cc   : > { %v4223_v7 = vmul.f32 -1.442695, %v6875_v60  ;;  %v4749_v9 = vpop.f32.mrb[20].mxu1 }
 0x4cd   : > { %5470 = vpow2.f32 %v4224_v1  ;;  %v6880_v43 = vadd.f32 %v4749_v9, %v6861_v30  ;;  %v2626_v36 = vpop.f32.mrb[21].mxu1 }
 0x4ce   : > { %5472 = vpow2.f32 %v4223_v7  ;;  %v6883_v11 = vadd.f32 %v6861_v30, %v2626_v36 }
 0x4cf   : > { %v4226_v13 = vmul.f32 -1.442695, %v6880_v43 }
 0x4d0   : > { %v4225_v55 = vmul.f32 -1.442695, %v6883_v11 }
 0x4d1   : > { %5474 = vpow2.f32 %v4226_v13 }
 0x4d2   : > { %5476 = vpow2.f32 %v4225_v55  ;;  %v4752_v53 = vpop.f32.mrb[22].mxu1 }
 0x4d3   : > { %v5467_v14 = vpop.eup %5466  ;;  %v6888_v17 = vadd.f32 %v4752_v53, %v6861_v30  ;;  %v2636_v26 = vpop.f32.mrb[23].mxu1 }
 0x4d4   : > { %v5469_v22 = vpop.eup %5468  ;;  %v2734_v20 = vadd.f32 1.0, %v5467_v14  ;;  %v6891_v24 = vadd.f32 %v6861_v30, %v2636_v26 }
 0x4d5   : > { %v2733_v25 = vadd.f32 1.0, %v5469_v22  ;;  %v4228_v18 = vmul.f32 -1.442695, %v6888_v17 }
 0x4d6   : > { %5478 = vrcp.f32 %v2734_v20  ;;  %v4227_v27 = vmul.f32 -1.442695, %v6891_v24  ;;  %v4755_v28 = vpop.f32.mrb[24].mxu1 }
 0x4d7   : > { %v5471_v8 = vpop.eup %5470  ;;  %5480 = vrcp.f32 %v2733_v25  ;;  %v6896_v46 = vadd.f32 %v4755_v28, %v6861_v30  ;;  %v2646_v0 = vpop.f32.mrb[25].mxu1 }
 0x4d8   : > { %v5473_v49 = vpop.eup %5472  ;;  %v2736_v29 = vadd.f32 1.0, %v5471_v8  ;;  %5482 = vpow2.f32 %v4228_v18  ;;  %v6899_v31 = vadd.f32 %v6861_v30, %v2646_v0 }
 0x4d9   : > { %v2735_v42 = vadd.f32 1.0, %v5473_v49  ;;  %5484 = vpow2.f32 %v4227_v27  ;;  %v4230_v32 = vmul.f32 -1.442695, %v6896_v46 }
 0x4da   : > { %5486 = vrcp.f32 %v2736_v29  ;;  %v4229_v34 = vmul.f32 -1.442695, %v6899_v31  ;;  %v4758_v41 = vpop.f32.mrb[26].mxu1 }
 0x4db   : > { %v5475_v48 = vpop.eup %5474  ;;  %5488 = vrcp.f32 %v2735_v42  ;;  %v6904_v57 = vadd.f32 %v4758_v41, %v6861_v30  ;;  %v2656_v59 = vpop.f32.mrb[27].mxu1 }
 0x4dc   : > { %v5477_v61 = vpop.eup %5476  ;;  %v2738_v4 = vadd.f32 1.0, %v5475_v48  ;;  %5490 = vpow2.f32 %v4230_v32  ;;  %v6907_v2 = vadd.f32 %v6861_v30, %v2656_v59 }
 0x4dd   : > { %v2737_v21 = vadd.f32 1.0, %v5477_v61  ;;  %5492 = vpow2.f32 %v4229_v34  ;;  %v4232_v63 = vmul.f32 -1.442695, %v6904_v57 }
 0x4de   : > { %5494 = vrcp.f32 %v2738_v4  ;;  %v4231_v47 = vmul.f32 -1.442695, %v6907_v2  ;;  %v4761_v51 = vpop.f32.mrb[28].mxu1 }
 0x4df   : > { %5496 = vrcp.f32 %v2737_v21  ;;  %v6912_v23 = vadd.f32 %v4761_v51, %v6861_v30  ;;  %v2666_v54 = vpop.f32.mrb[29].mxu1 }
 0x4e0   : > { %v5479_v56 = vpop.eup %5478  ;;  %5498 = vpow2.f32 %v4232_v63  ;;  %v6915_v58 = vadd.f32 %v6861_v30, %v2666_v54 }
 0x4e1   : > { %v5481_v1 = vpop.eup %5480  ;;  %5500 = vpow2.f32 %v4231_v47  ;;  %v4234_v7 = vmul.f32 -1.442695, %v6912_v23  ;;  %v6923_v14 = vmul.f32 %v5479_v56, %v6864_v50 }
 0x4e2   : > { %v5483_v9 = vpop.eup %5482  ;;  %v6919_v36 = vmul.f32 %v5481_v1, %v6867_v52  ;;  %v4233_v13 = vmul.f32 -1.442695, %v6915_v58  ;;  %v4764_v55 = vpop.f32.mrb[30].mxu1 }
 0x4e3   : > { %v5485_v53 = vpop.eup %5484  ;;  %v2740_v26 = vadd.f32 1.0, %v5483_v9  ;;  %5502 = vpow2.f32 %v4234_v7  ;;  %v6926_v22 = vadd.f32 %v4764_v55, %v6861_v30  ;;  %v2676_v20 = vpop.f32.mrb[31].mxu1 }
 0x4e4   : > { %v5487_v25 = vpop.eup %5486  ;;  %v2739_v18 = vadd.f32 1.0, %v5485_v53  ;;  %5504 = vpow2.f32 %v4233_v13  ;;  %v6929_v27 = vadd.f32 %v6861_v30, %v2676_v20  ;;  %4797 = vmatprep.mubr.f32.mxu1 %v6919_v36 }
 0x4e5   : > { %v5489_v52 = vpop.eup %5488  ;;  %5506 = vrcp.f32 %v2740_v26  ;;  %v4236_v28 = vmul.f32 -1.442695, %v6926_v22  ;;  %4798 = vmatmul.mubr.f32.vlgmr.msra.gmra.mrb[32].mxu1 %v6923_v14  ;;  %v6939_v29 = vmul.f32 %v5487_v25, %v6872_v19 }
 0x4e6   : > { %v5491_v50 = vpop.eup %5490  ;;  %v6935_v8 = vmul.f32 %v5489_v52, %v6875_v60  ;;  %5508 = vrcp.f32 %v2739_v18  ;;  %v4235_v0 = vmul.f32 -1.442695, %v6929_v27 }
 0x4e7   : > { %v5493_v49 = vpop.eup %5492  ;;  %v2742_v30 = vadd.f32 1.0, %v5491_v50  ;;  %5510 = vpow2.f32 %v4236_v28  ;;  %v3078_v50 = vld [vmem:[%s6399_s9 + $0x8] sm:$0xff] }
 0x4e8   : > { %v5495_v42 = vpop.eup %5494  ;;  %v2741_v32 = vadd.f32 1.0, %v5493_v49  ;;  %5512 = vpow2.f32 %v4235_v0  ;;  %4800 = vmatprep.mubr.f32.mxu1 %v6935_v8  ;;  %v3080_v49 = vld [vmem:[%s6399_s9 + $0x18] sm:$0xff] }
 0x4e9   : > { %v5497_v34 = vpop.eup %5496  ;;  %5514 = vrcp.f32 %v2742_v30  ;;  %4801 = vmatmul.mubr.f32.gmra.mrb[34].mxu1 %v6939_v29  ;;  %v6947_v19 = vmul.f32 %v5495_v42, %v6880_v43  ;;  %v3082_v42 = vld [vmem:[%s6399_s9 + $0x28] sm:$0xff] }
 0x4ea   : > { %v5499_v60 = vpop.eup %5498  ;;  %v6944_v41 = vmul.f32 %v5497_v34, %v6883_v11  ;;  %5516 = vrcp.f32 %v2741_v32  ;;  %v3083_v34 = vld [vmem:[%s6399_s9 + $0x30] sm:$0xff] }
 0x4eb   : > { %v5501_v48 = vpop.eup %5500  ;;  %v2744_v59 = vadd.f32 1.0, %v5499_v60  ;;  %v3084_v60 = vld [vmem:[%s6399_s9 + $0x38] sm:$0xff] }
 0x4ec   : > { %v2743_v61 = vadd.f32 1.0, %v5501_v48  ;;  %4803 = vmatprep.mubr.f32.mxu1 %v6944_v41  ;;  %v5147_v48 = vpack.c.bf16 %v3084_v60, %v3083_v34 }
 0x4ed   : > { %v5503_v4 = vpop.eup %5502  ;;  %5518 = vrcp.f32 %v2744_v59  ;;  %4804 = vmatmul.mubr.f32.gmra.mrb[36].mxu1 %v6947_v19  ;;  %v3085_v59 = vld [vmem:[%s6399_s9 + $0x40] sm:$0xff] }
 0x4ee   : > { %v5505_v21 = vpop.eup %5504  ;;  %5520 = vrcp.f32 %v2743_v61  ;;  %v2746_v63 = vadd.f32 1.0, %v5503_v4  ;;  %v3086_v61 = vld [vmem:[%s6399_s9 + $0x48] sm:$0xff] }
 0x4ef   : > { %v5507_v47 = vpop.eup %5506  ;;  %v2745_v51 = vadd.f32 1.0, %v5505_v21  ;;  %v5151_v4 = vpack.c.bf16 %v3086_v61, %v3085_v59  ;;  %v3087_v21 = vld [vmem:[%s6399_s9 + $0x50] sm:$0xff] }
 0x4f0   : > { %v5509_v11 = vpop.eup %5508  ;;  %5522 = vrcp.f32 %v2746_v63  ;;  %v6955_v1 = vmul.f32 %v5507_v47, %v6888_v17  ;;  %v3088_v63 = vld [vmem:[%s6399_s9 + $0x58] sm:$0xff] }
 0x4f1   : > { %v5511_v54 = vpop.eup %5510  ;;  %v6952_v56 = vmul.f32 %v5509_v11, %v6891_v24  ;;  %5524 = vrcp.f32 %v2745_v51  ;;  %v5155_v47 = vpack.c.bf16 %v3088_v63, %v3087_v21  ;;  %v3089_v51 = vld [vmem:[%s6399_s9 + $0x60] sm:$0xff]  ;;  %v3090_v11 = vld [vmem:[%s6399_s9 + $0x68] sm:$0xff] }
 0x4f2   : > { %v5513_v43 = vpop.eup %5512  ;;  %v2748_v7 = vadd.f32 1.0, %v5511_v54  ;;  %v5159_v54 = vpack.c.bf16 %v3090_v11, %v3089_v51 }
 0x4f3   : > { %v5515_v9 = vpop.eup %5514  ;;  %v2747_v13 = vadd.f32 1.0, %v5513_v43  ;;  %4806 = vmatprep.mubr.f32.mxu1 %v6952_v56  ;;  %v3091_v43 = vld [vmem:[%s6399_s9 + $0x70] sm:$0xff] }
 0x4f4   : > { %v5517_v55 = vpop.eup %5516  ;;  %5526 = vrcp.f32 %v2748_v7  ;;  %4807 = vmatmul.mubr.f32.gmra.mrb[38].mxu1 %v6955_v1  ;;  %v6963_v24 = vmul.f32 %v5515_v9, %v6896_v46  ;;  %v3092_v7 = vld [vmem:[%s6399_s9 + $0x78] sm:$0xff] }
 0x4f5   : > { %v6960_v53 = vmul.f32 %v5517_v55, %v6899_v31  ;;  %5528 = vrcp.f32 %v2747_v13  ;;  %v5163_v9 = vpack.c.bf16 %v3092_v7, %v3091_v43  ;;  %v5883_v13 = vmov 0   ;;  %v7012_v55 = vld [vmem:[%s1239_s18] ss:$0 sm:$0xff] }
 0x4f6   : > { %5385 = vset.pattern.permute.xlu1 %v5883_v13  ;;  %5384 = vset.pattern.permute.xlu0 %v5883_v13 }
 0x4f7   : > { %v5519_v26 = vpop.eup %5518  ;;  %4809 = vmatprep.mubr.f32.mxu1 %v6960_v53 }
 0x4f8   : > { %v5521_v17 = vpop.eup %5520  ;;  %4810 = vmatmul.mubr.f32.gmra.mrb[40].mxu1 %v6963_v24  ;;  %v6971_v18 = vmul.f32 %v5519_v26, %v6904_v57 }
 0x4f9   : > { %v6968_v20 = vmul.f32 %v5521_v17, %v6907_v2 }
 0x4fa   : > { %v5523_v25 = vpop.eup %5522 }
 0x4fb   : > { %v5525_v31 = vpop.eup %5524  ;;  %4812 = vmatprep.mubr.f32.mxu1 %v6968_v20  ;;  %v6979_v2 = vmul.f32 %v5523_v25, %v6912_v23  ;;  %v3077_v23 = vld [vmem:[%s6399_s9] sm:$0xff] }
 0x4fc   : > { %v6975_v46 = vmul.f32 %v5525_v31, %v6915_v58  ;;  %4813 = vmatmul.mubr.f32.gmra.mrb[42].mxu1 %v6971_v18  ;;  %v5135_v0 = vpack.c.bf16 %v3078_v50, %v3077_v23 }
 0x4fe   : > { %v5527_v52 = vpop.eup %5526  ;;  %4815 = vmatprep.mubr.f32.mxu1 %v6975_v46  ;;  %5136 = vmatprep.subr.bf16.mxu1 %v5135_v0 }
 0x4ff   : > { %v5529_v28 = vpop.eup %5528  ;;  %v6987_v58 = vmul.f32 %v5527_v52, %v6926_v22  ;;  %5138 = vmatpush3.bf16.msra.mxu1 %v5135_v0  ;;  %v3081_v22 = vld [vmem:[%s6399_s9 + $0x20] sm:$0xff] }
 0x500   : > { %v6983_v57 = vmul.f32 %v5529_v28, %v6929_v27  ;;  %4816 = vmatmul.mubr.f32.gmra.mrb[44].mxu1 %v6979_v2  ;;  %v3079_v27 = vld [vmem:[%s6399_s9 + $0x10] sm:$0xff]  ;;  %v5143_v32 = vpack.c.bf16 %v3082_v42, %v3081_v22 }
 0x501   : > { %v5139_v30 = vpack.c.bf16 %v3080_v49, %v3079_v27 }
 0x502   : > { %4818 = vmatprep.mubr.f32.mxu1 %v6983_v57 }
 0x503   : > { %5140 = vmatprep.subr.bf16.mxu1 %v5139_v30 }
 0x504   : > { %4819 = vmatmul.mubr.f32.gmra.mrb[46].mxu1 %v6987_v58 }
 0x505   : > { %5142 = vmatpush3.bf16.msra.mxu1 %v5139_v30 }
 0x506   : > { %5144 = vmatprep.subr.bf16.mxu1 %v5143_v32 }
 0x509   : > { %5146 = vmatpush3.bf16.msra.mxu1 %v5143_v32 }
 0x50a   : > { %5148 = vmatprep.subr.bf16.mxu1 %v5147_v48 }
 0x50d   : > { %5150 = vmatpush3.bf16.msra.mxu1 %v5147_v48 }
 0x50e   : > { %5152 = vmatprep.subr.bf16.mxu1 %v5151_v4 }
 0x511   : > { %5154 = vmatpush3.bf16.msra.mxu1 %v5151_v4 }
 0x512   : > { %5156 = vmatprep.subr.bf16.mxu1 %v5155_v47 }
 0x515   : > { %5158 = vmatpush3.bf16.msra.mxu1 %v5155_v47 }
 0x516   : > { %5160 = vmatprep.subr.bf16.mxu1 %v5159_v54 }
 0x519   : > { %5162 = vmatpush3.bf16.msra.mxu1 %v5159_v54 }
 0x51a   : > { %5164 = vmatprep.subr.bf16.mxu1 %v5163_v9 }
 0x51d   : > { %5166 = vmatpush3.bf16.msra.mxu1 %v5163_v9 }
 0x5b8   : > { %v4799_v26 = vpop.f32.mrb[32].mxu1 }
 0x5b9   : > { %v7015_v17 = vadd.f32 %v4799_v26, %v7012_v55  ;;  %v2886_v25 = vpop.f32.mrb[33].mxu1 }
 0x5ba   : > { %v7018_v31 = vadd.f32 %v7012_v55, %v2886_v25 }
 0x5bb   : > { %v4239_v52 = vmul.f32 -1.442695, %v7015_v17 }
 0x5bc   : > { %v4238_v28 = vmul.f32 -1.442695, %v7018_v31  ;;  %v4802_v23 = vpop.f32.mrb[34].mxu1 }
 0x5bd   : > { %5530 = vpow2.f32 %v4239_v52  ;;  %v7023_v50 = vadd.f32 %v4802_v23, %v7012_v55  ;;  %v2896_v0 = vpop.f32.mrb[35].mxu1 }
 0x5be   : > { %5532 = vpow2.f32 %v4238_v28  ;;  %v7026_v27 = vadd.f32 %v7012_v55, %v2896_v0 }
 0x5bf   : > { %v4241_v49 = vmul.f32 -1.442695, %v7023_v50 }
 0x5c0   : > { %v4240_v30 = vmul.f32 -1.442695, %v7026_v27  ;;  %v4805_v22 = vpop.f32.mrb[36].mxu1 }
 0x5c1   : > { %5534 = vpow2.f32 %v4241_v49  ;;  %v7031_v42 = vadd.f32 %v4805_v22, %v7012_v55  ;;  %v2906_v32 = vpop.f32.mrb[37].mxu1 }
 0x5c2   : > { %5536 = vpow2.f32 %v4240_v30  ;;  %v7034_v34 = vadd.f32 %v7012_v55, %v2906_v32 }
 0x5c3   : > { %v4243_v60 = vmul.f32 -1.442695, %v7031_v42 }
 0x5c4   : > { %v4242_v48 = vmul.f32 -1.442695, %v7034_v34 }
 0x5c5   : > { %5538 = vpow2.f32 %v4243_v60 }
 0x5c6   : > { %5540 = vpow2.f32 %v4242_v48 }
 0x5c7   : > { %v5531_v59 = vpop.eup %5530  ;;  %v4808_v61 = vpop.f32.mrb[38].mxu1 }
 0x5c8   : > { %v5533_v4 = vpop.eup %5532  ;;  %v3014_v21 = vadd.f32 1.0, %v5531_v59  ;;  %v7039_v63 = vadd.f32 %v4808_v61, %v7012_v55  ;;  %v2916_v47 = vpop.f32.mrb[39].mxu1 }
 0x5c9   : > { %v3013_v51 = vadd.f32 1.0, %v5533_v4  ;;  %v7042_v11 = vadd.f32 %v7012_v55, %v2916_v47 }
 0x5ca   : > { %5542 = vrcp.f32 %v3014_v21  ;;  %v4245_v54 = vmul.f32 -1.442695, %v7039_v63 }
 0x5cb   : > { %v5535_v43 = vpop.eup %5534  ;;  %5544 = vrcp.f32 %v3013_v51  ;;  %v4244_v7 = vmul.f32 -1.442695, %v7042_v11  ;;  %v4811_v9 = vpop.f32.mrb[40].mxu1 }
 0x5cc   : > { %v5537_v13 = vpop.eup %5536  ;;  %v3016_v26 = vadd.f32 1.0, %v5535_v43  ;;  %5546 = vpow2.f32 %v4245_v54  ;;  %v7047_v25 = vadd.f32 %v4811_v9, %v7012_v55  ;;  %v2926_v52 = vpop.f32.mrb[41].mxu1 }
 0x5cd   : > { %v3015_v28 = vadd.f32 1.0, %v5537_v13  ;;  %5548 = vpow2.f32 %v4244_v7  ;;  %v7050_v23 = vadd.f32 %v7012_v55, %v2926_v52 }
 0x5ce   : > { %5550 = vrcp.f32 %v3016_v26  ;;  %v4247_v0 = vmul.f32 -1.442695, %v7047_v25 }
 0x5cf   : > { %v5539_v49 = vpop.eup %5538  ;;  %5552 = vrcp.f32 %v3015_v28  ;;  %v4246_v30 = vmul.f32 -1.442695, %v7050_v23  ;;  %v4814_v22 = vpop.f32.mrb[42].mxu1 }
 0x5d0   : > { %v5541_v32 = vpop.eup %5540  ;;  %v3018_v60 = vadd.f32 1.0, %v5539_v49  ;;  %5554 = vpow2.f32 %v4247_v0  ;;  %v7055_v48 = vadd.f32 %v4814_v22, %v7012_v55  ;;  %v2936_v59 = vpop.f32.mrb[43].mxu1 }
 0x5d1   : > { %v3017_v61 = vadd.f32 1.0, %v5541_v32  ;;  %5556 = vpow2.f32 %v4246_v30  ;;  %v7058_v4 = vadd.f32 %v7012_v55, %v2936_v59 }
 0x5d2   : > { %5558 = vrcp.f32 %v3018_v60  ;;  %v4249_v21 = vmul.f32 -1.442695, %v7055_v48 }
 0x5d3   : > { %5560 = vrcp.f32 %v3017_v61  ;;  %v4248_v47 = vmul.f32 -1.442695, %v7058_v4  ;;  %v4817_v51 = vpop.f32.mrb[44].mxu1 }
 0x5d4   : > { %v5543_v54 = vpop.eup %5542  ;;  %5562 = vpow2.f32 %v4249_v21  ;;  %v7063_v43 = vadd.f32 %v4817_v51, %v7012_v55  ;;  %v2946_v7 = vpop.f32.mrb[45].mxu1 }
 0x5d5   : > { %v5545_v9 = vpop.eup %5544  ;;  %5564 = vpow2.f32 %v4248_v47  ;;  %v7066_v13 = vadd.f32 %v7012_v55, %v2946_v7  ;;  %v3062_v49 = vmul.f32 %v5543_v54, %v7015_v17 }
 0x5d6   : > { %v5547_v26 = vpop.eup %5546  ;;  %v3061_v52 = vmul.f32 %v5545_v9, %v7018_v31  ;;  %v4251_v28 = vmul.f32 -1.442695, %v7063_v43 }
 0x5d7   : > { %v5549_v0 = vpop.eup %5548  ;;  %v3020_v30 = vadd.f32 1.0, %v5547_v26  ;;  %v4250_v22 = vmul.f32 -1.442695, %v7066_v13  ;;  %v4820_v32 = vpop.f32.mrb[46].mxu1 }
 0x5d8   : > { %v5551_v60 = vpop.eup %5550  ;;  %v3019_v59 = vadd.f32 1.0, %v5549_v0  ;;  %5566 = vpow2.f32 %v4251_v28  ;;  %v7073_v61 = vadd.f32 %v4820_v32, %v7012_v55  ;;  %v2956_v21 = vpop.f32.mrb[47].mxu1  ;;  %4853 = vmatprep.mubr.f32.mxu1 %v3061_v52 }
 0x5d9   : > { %v5553_v47 = vpop.eup %5552  ;;  %5568 = vrcp.f32 %v3020_v30  ;;  %v7076_v31 = vadd.f32 %v7012_v55, %v2956_v21  ;;  %4854 = vmatmul.mubr.f32.vlgmr.msra.gmra.mrb[48].mxu1 %v3062_v49  ;;  %v3064_v9 = vmul.f32 %v5551_v60, %v7023_v50 }
 0x5da   : > { %v5555_v51 = vpop.eup %5554  ;;  %v3063_v17 = vmul.f32 %v5553_v47, %v7026_v27  ;;  %5570 = vrcp.f32 %v3019_v59  ;;  %v4253_v54 = vmul.f32 -1.442695, %v7073_v61 }
 0x5db   : > { %v5557_v7 = vpop.eup %5556  ;;  %v3022_v26 = vadd.f32 1.0, %v5555_v51  ;;  %5572 = vpow2.f32 %v4250_v22  ;;  %v4252_v28 = vmul.f32 -1.442695, %v7076_v31 }
 0x5dc   : > { %v5559_v52 = vpop.eup %5558  ;;  %v3021_v0 = vadd.f32 1.0, %v5557_v7  ;;  %5574 = vpow2.f32 %v4253_v54  ;;  %4856 = vmatprep.mubr.f32.mxu1 %v3063_v17 }
 0x5dd   : > { %v5561_v55 = vpop.eup %5560  ;;  %5576 = vrcp.f32 %v3022_v26  ;;  %4857 = vmatmul.mubr.f32.gmra.mrb[50].mxu1 %v3064_v9  ;;  %v3066_v32 = vmul.f32 %v5559_v52, %v7031_v42 }
 0x5de   : > { %v5563_v49 = vpop.eup %5562  ;;  %v3065_v27 = vmul.f32 %v5561_v55, %v7034_v34  ;;  %5578 = vrcp.f32 %v3021_v0 }
 0x5df   : > { %v5565_v30 = vpop.eup %5564  ;;  %v3024_v59 = vadd.f32 1.0, %v5563_v49  ;;  %5580 = vpow2.f32 %v4252_v28 }
 0x5e0   : > { %v3023_v50 = vadd.f32 1.0, %v5565_v30  ;;  %4859 = vmatprep.mubr.f32.mxu1 %v3065_v27 }
 0x5e1   : > { %5582 = vrcp.f32 %v3024_v59  ;;  %4860 = vmatmul.mubr.f32.gmra.mrb[52].mxu1 %v3066_v32 }
 0x5e2   : > { %v5567_v22 = vpop.eup %5566  ;;  %5584 = vrcp.f32 %v3023_v50 }
 0x5e3   : > { %v5569_v60 = vpop.eup %5568  ;;  %v3026_v21 = vadd.f32 1.0, %v5567_v22 }
 0x5e4   : > { %v5571_v47 = vpop.eup %5570  ;;  %v3068_v34 = vmul.f32 %v5569_v60, %v7039_v63 }
 0x5e5   : > { %v5573_v51 = vpop.eup %5572  ;;  %v3067_v17 = vmul.f32 %v5571_v47, %v7042_v11  ;;  %5586 = vrcp.f32 %v3026_v21 }
 0x5e6   : > { %v5575_v54 = vpop.eup %5574  ;;  %v3025_v7 = vadd.f32 1.0, %v5573_v51  ;;  %v5884_v51 = vmov 0.0  }
 0x5e7   : > { %v5577_v9 = vpop.eup %5576  ;;  %v3028_v42 = vadd.f32 1.0, %v5575_v54  ;;  %4862 = vmatprep.mubr.f32.mxu1 %v3067_v17  ;;  %4877 = vmatprep.subr.bf16.mxu0 %v5884_v51 }
 0x5e8   : > { %v5579_v26 = vpop.eup %5578  ;;  %5588 = vrcp.f32 %v3025_v7  ;;  %4863 = vmatmul.mubr.f32.gmra.mrb[54].mxu1 %v3068_v34  ;;  %v3070_v0 = vmul.f32 %v5577_v9, %v7047_v25  ;;  %4893 = vmatprep.mubr.msk.bf16.mxu0 %vm5885_vm5, %v5884_v51 }
 0x5e9   : > { %v5581_v28 = vpop.eup %5580  ;;  %v3069_v52 = vmul.f32 %v5579_v26, %v7050_v23  ;;  %5590 = vrcp.f32 %v3028_v42 }
 0x5ea   : > { %v3027_v55 = vadd.f32 1.0, %v5581_v28 }
 0x5eb   : > { %v5583_v49 = vpop.eup %5582  ;;  %4865 = vmatprep.mubr.f32.mxu1 %v3069_v52  ;;  %v3764_v52 = vld [vmem:[%s7412_s7] sm:$0xff] }
 0x5ec   : > { %v5585_v11 = vpop.eup %5584  ;;  %5592 = vrcp.f32 %v3027_v55  ;;  %4866 = vmatmul.mubr.f32.gmra.mrb[56].mxu1 %v3070_v0  ;;  %v3072_v27 = vmul.f32 %v5583_v49, %v7055_v48  ;;  %v3423_v0 = vld [vmem:[%s6335_s11] sm:$0xff]  ;;  %v3424_v55 = vld [vmem:[%s6335_s11 + $0x8] sm:$0xff]  ;;  %v5886_v49 = vmov 0.0|0.0  }
 0x5ed   : > { %v3071_v63 = vmul.f32 %v5585_v11, %v7058_v4  ;;  %5167 = vmatprep.subr.bf16.mxu1 %v5886_v49  ;;  %v5168_v11 = vpack.c.bf16 %v3424_v55, %v3423_v0 }
 0x5ef   : > { %4868 = vmatprep.mubr.f32.mxu1 %v3071_v63  ;;  %v5587_v30 = vpop.eup %5586  ;;  %v3425_v63 = vld [vmem:[%s6335_s11 + $0x10] sm:$0xff]  ;;  %5169 = vmatpush3.bf16.msra.mxu1 %v5168_v11 }
 0x5f0   : > { %4869 = vmatmul.mubr.f32.gmra.mrb[58].mxu1 %v3072_v27  ;;  %v3074_v23 = vmul.f32 %v5587_v30, %v7063_v43  ;;  %v3426_v27 = vld [vmem:[%s6335_s11 + $0x18] sm:$0xff]  ;;  %5170 = vmatprep.subr.bf16.mxu1 %v5886_v49 }
 0x5f1   : > { %v5171_v30 = vpack.c.bf16 %v3426_v27, %v3425_v63 }
 0x5f2   : > { %v5589_v32 = vpop.eup %5588 }
 0x5f3   : > { %v3073_v59 = vmul.f32 %v5589_v32, %v7066_v13  ;;  %v5591_v25 = vpop.eup %5590  ;;  %v3427_v32 = vld [vmem:[%s6335_s11 + $0x20] sm:$0xff]  ;;  %5172 = vmatpush3.bf16.msra.mxu1 %v5171_v30 }
 0x5f4   : > { %v3076_v60 = vmul.f32 %v5591_v25, %v7073_v61  ;;  %5173 = vmatprep.subr.bf16.mxu1 %v5886_v49  ;;  %v3429_v25 = vld [vmem:[%s6335_s11 + $0x30] sm:$0xff] }
 0x5f5   : > { %4871 = vmatprep.mubr.f32.mxu1 %v3073_v59  ;;  %v3428_v59 = vld [vmem:[%s6335_s11 + $0x28] sm:$0xff] }
 0x5f6   : > { %v5593_v50 = vpop.eup %5592  ;;  %4872 = vmatmul.mubr.f32.gmra.mrb[60].mxu1 %v3074_v23  ;;  %v5174_v23 = vpack.c.bf16 %v3428_v59, %v3427_v32 }
 0x5f7   : > { %v3075_v22 = vmul.f32 %v5593_v50, %v7076_v31  ;;  %v3430_v50 = vld [vmem:[%s6335_s11 + $0x38] sm:$0xff] }
 0x5f8   : > { %5175 = vmatpush3.bf16.msra.mxu1 %v5174_v23 }
 0x5f9   : > { %4874 = vmatprep.mubr.f32.mxu1 %v3075_v22  ;;  %v5177_v22 = vpack.c.bf16 %v3430_v50, %v3429_v25  ;;  %5176 = vmatprep.subr.bf16.mxu1 %v5886_v49 }
 0x5fa   : > { %4875 = vmatmul.mubr.f32.gmra.mrb[62].mxu1 %v3076_v60  ;;  %v3431_v60 = vld [vmem:[%s6335_s11 + $0x40] sm:$0xff] }
 0x5fb   : > { %4929 = vmatprep.mubr.msk.f32.mxu1 %vm5885_vm5, %v5884_v51 }
 0x5fc   : > { %5178 = vmatpush3.bf16.msra.mxu1 %v5177_v22 }
 0x5fd   : > { %5179 = vmatprep.subr.bf16.mxu1 %v5886_v49 }
 0x6ac   : > { %v4855_v4 = vpop.f32.mrb[48].mxu1 }
 0x6ad   : > { %3245 = vperm.xlu1 %5385, %v4855_v4   ;;  %v3159_v48 = vpop.f32.mrb[49].mxu1  ;;  %v3432_v4 = vld [vmem:[%s6335_s11 + $0x48] sm:$0xff] }
 0x6ae   : > { %3240 = vperm.xlu0 %5384, %v3159_v48   ;;  %v5180_v48 = vpack.c.bf16 %v3432_v4, %v3431_v60 }
 0x6b0   : > { %v4858_v21 = vpop.f32.mrb[50].mxu1  ;;  %5181 = vmatpush3.bf16.msra.mxu1 %v5180_v48 }
 0x6b1   : > { %3255 = vperm.xlu1 %5385, %v4858_v21   ;;  %v3169_v47 = vpop.f32.mrb[51].mxu1  ;;  %v3433_v21 = vld [vmem:[%s6335_s11 + $0x50] sm:$0xff]  ;;  %5182 = vmatprep.subr.bf16.mxu1 %v5886_v49 }
 0x6b4   : > { %v4861_v13 = vpop.f32.mrb[52].mxu1 }
 0x6b5   : > { %3250 = vperm.xlu1 %5385, %v3169_v47   ;;  %v3179_v43 = vpop.f32.mrb[53].mxu1  ;;  %v3434_v47 = vld [vmem:[%s6335_s11 + $0x58] sm:$0xff] }
 0x6b9   : > { %3265 = vperm.xlu1 %5385, %v4861_v13   ;;  %v5183_v13 = vpack.c.bf16 %v3434_v47, %v3433_v21 }
 0x6bb   : > { %v4864_v17 = vpop.f32.mrb[54].mxu1  ;;  %5184 = vmatpush3.bf16.msra.mxu1 %v5183_v13 }
 0x6bc   : > { %v3189_v31 = vpop.f32.mrb[55].mxu1  ;;  %5185 = vmatprep.subr.bf16.mxu1 %v5886_v49 }
 0x6bd   : > { %3260 = vperm.xlu1 %5385, %v3179_v43   ;;  %v3435_v43 = vld [vmem:[%s6335_s11 + $0x60] sm:$0xff] }
 0x6bf   : > { %v4867_v61 = vpop.f32.mrb[56].mxu1 }
 0x6c0   : > { %3285 = vperm.xlu0 %5384, %v4867_v61   ;;  %v3199_v54 = vpop.f32.mrb[57].mxu1  ;;  %v3437_v61 = vld [vmem:[%s6335_s11 + $0x70] sm:$0xff] }
 0x6c1   : > { %3275 = vperm.xlu1 %5385, %v4864_v17   ;;  %v3436_v17 = vld [vmem:[%s6335_s11 + $0x68] sm:$0xff] }
 0x6c3   : > { %v4870_v34 = vpop.f32.mrb[58].mxu1 }
 0x6c4   : > { %3295 = vperm.xlu0 %5384, %v4870_v34   ;;  %v3209_v7 = vpop.f32.mrb[59].mxu1 }
 0x6c5   : > { %3270 = vperm.xlu1 %5385, %v3189_v31   ;;  %v5186_v31 = vpack.c.bf16 %v3436_v17, %v3435_v43 }
 0x6c7   : > { %5187 = vmatpush3.bf16.msra.mxu1 %v5186_v31 }
 0x6c8   : > { %5188 = vmatprep.subr.bf16.mxu1 %v5886_v49 }
 0x6c9   : > { %v4873_v9 = vpop.f32.mrb[60].mxu1  ;;  %3280 = vperm.xlu1 %5385, %v3199_v54   ;;  %v3438_v54 = vld [vmem:[%s6335_s11 + $0x78] sm:$0xff] }
 0x6ca   : > { %3305 = vperm.xlu0 %5384, %v4873_v9   ;;  %v3219_v42 = vpop.f32.mrb[61].mxu1  ;;  %v5189_v34 = vpack.c.bf16 %v3438_v54, %v3437_v61 }
 0x6cc   : > { %5190 = vmatpush3.bf16.msra.mxu1 %v5189_v34 }
 0x6cd   : > { %v4876_v26 = vpop.f32.mrb[62].mxu1  ;;  %3290 = vperm.xlu1 %5385, %v3209_v7   ;;  %4967 = vmatprep.subr.mxu1 %v5884_v51 }
 0x6ce   : > { %3315 = vperm.xlu0 %5384, %v4876_v26   ;;  %v3229_v28 = vpop.f32.mrb[63].mxu1 }
 0x6d1   : > { %3300 = vperm.xlu1 %5385, %v3219_v42  }
 0x6d5   : > { %3310 = vperm.xlu1 %5385, %v3229_v28  }
 0x6d9   : > { %3767 = vperm.xlu1 %5385, %v3764_v52  }
 0x72c   : > { %v3246_v7 = vpop.permute.xlu1 %3245 }
 0x72d   : > { %v3319_v9 = vmul.f32 %v3246_v7, %v6535_v15  ;;  %v3241_v42 = vpop.permute.xlu0 %3240 }
 0x72e   : > { %v3318_v26 = vmul.f32 %v3241_v42, %v6525_v10  ;;  %v3412_v42 = vld [vmem:[%s6333_s0 + $0x28] sm:$0xff] }
 0x72f   : > { %v3335_v28 = vadd.f32 %v3319_v9, %v6923_v14  ;;  %v3411_v9 = vld [vmem:[%s6333_s0 + $0x20] sm:$0xff] }
 0x730   : > { %v3334_v52 = vadd.f32 %v3318_v26, %v6919_v36  ;;  %v3256_v0 = vpop.permute.xlu1 %3255  ;;  %v5198_v26 = vpack.c.bf16 %v3412_v42, %v3411_v9  ;;  %v4257_v42 = vld [vmem:[%s1236_s26] ss:$0 sm:$0xff] }
 0x731   : > { %v3321_v11 = vmul.f32 %v3256_v0, %v6530_v12 }
 0x732   : > { %v3352_v55 = vpack.c.bf16 %v3335_v28, %v3334_v52  ;;  %v3413_v28 = vld [vmem:[%s6333_s0 + $0x30] sm:$0xff]  ;;  %v3414_v52 = vld [vmem:[%s6333_s0 + $0x38] sm:$0xff] }
 0x733   : > { %v3337_v30 = vadd.f32 %v3321_v11, %v6939_v29  ;;  %v5201_v0 = vpack.c.bf16 %v3414_v52, %v3413_v28  ;;  %v3416_v11 = vld [vmem:[%s6333_s0 + $0x48] sm:$0xff] }
 0x734   : > { %4878 = vmatpush3.bf16.msra.mxu0 %v3352_v55  ;;  %v3251_v63 = vpop.permute.xlu1 %3250  ;;  %v3415_v55 = vld [vmem:[%s6333_s0 + $0x40] sm:$0xff] }
 0x735   : > { %v3320_v27 = vmul.f32 %v3251_v63, %v6519_v6  ;;  %4879 = vmatprep.subr.bf16.mxu0 %v5884_v51  ;;  %v5204_v63 = vpack.c.bf16 %v3416_v11, %v3415_v55  ;;  %v5598_v55 = vld [vmem:[%s7403_s17] ss:$0 sm:$0xff] }
 0x737   : > { %v3336_v15 = vadd.f32 %v3320_v27, %v6935_v8  ;;  %v3417_v27 = vld [vmem:[%s6333_s0 + $0x50] sm:$0xff] }
 0x738   : > { %v3266_v32 = vpop.permute.xlu1 %3265 }
 0x739   : > { %v3353_v10 = vpack.c.bf16 %v3337_v30, %v3336_v15  ;;  %v3323_v14 = vmul.f32 %v3266_v32, %v6563_v37  ;;  %v3418_v30 = vld [vmem:[%s6333_s0 + $0x58] sm:$0xff]  ;;  %v3419_v32 = vld [vmem:[%s6333_s0 + $0x60] sm:$0xff] }
 0x73a   : > { %v5207_v15 = vpack.c.bf16 %v3418_v30, %v3417_v27 }
 0x73b   : > { %4880 = vmatpush3.bf16.msra.mxu0 %v3353_v10  ;;  %v3339_v59 = vadd.f32 %v3323_v14, %v6947_v19  ;;  %v3420_v10 = vld [vmem:[%s6333_s0 + $0x68] sm:$0xff] }
 0x73c   : > { %v3261_v36 = vpop.permute.xlu1 %3260  ;;  %4881 = vmatprep.subr.bf16.mxu0 %v5884_v51  ;;  %v5210_v14 = vpack.c.bf16 %v3420_v10, %v3419_v32 }
 0x73d   : > { %v3322_v12 = vmul.f32 %v3261_v36, %v6556_v33  ;;  %v3421_v36 = vld [vmem:[%s6333_s0 + $0x70] sm:$0xff] }
 0x73f   : > { %v3338_v6 = vadd.f32 %v3322_v12, %v6944_v41  ;;  %v3286_v23 = vpop.permute.xlu0 %3285  ;;  %v3422_v12 = vld [vmem:[%s6333_s0 + $0x78] sm:$0xff] }
 0x740   : > { %v3276_v25 = vpop.permute.xlu1 %3275  ;;  %v3327_v60 = vmul.f32 %v3286_v23, %v6599_v3  ;;  %v3580_v23 = vld [vmem:[%s6382_s14] sm:$0xff] }
 0x741   : > { %v3354_v50 = vpack.c.bf16 %v3339_v59, %v3338_v6  ;;  %v3325_v29 = vmul.f32 %v3276_v25, %v6575_v45  ;;  %v5213_v59 = vpack.c.bf16 %v3422_v12, %v3421_v36  ;;  %v7195_v6 = vld [vmem:[#allocation14] sm:$0xff] }
 0x742   : > { %v3343_v45 = vadd.f32 %v3327_v60, %v6963_v24 }
 0x743   : > { %4882 = vmatpush3.bf16.msra.mxu0 %v3354_v50  ;;  %v3296_v8 = vpop.permute.xlu0 %3295  ;;  %v3341_v33 = vadd.f32 %v3325_v29, %v6955_v1 }
 0x744   : > { %v3271_v22 = vpop.permute.xlu1 %3270  ;;  %4883 = vmatprep.subr.bf16.mxu0 %v5884_v51  ;;  %v3329_v47 = vmul.f32 %v3296_v8, %v6609_v16  ;;  %v3579_v8 = vld [vmem:[%s7415_s27] sm:$0xff] }
 0x745   : > { %v3324_v37 = vmul.f32 %v3271_v22, %v6566_v38 }
 0x747   : > { %v3340_v19 = vadd.f32 %v3324_v37, %v6952_v56  ;;  %v3345_v56 = vadd.f32 %v3329_v47, %v6971_v18 }
 0x748   : > { %v3281_v4 = vpop.permute.xlu1 %3280 }
 0x749   : > { %v3355_v41 = vpack.c.bf16 %v3341_v33, %v3340_v19  ;;  %v3326_v48 = vmul.f32 %v3281_v4, %v6592_v62  ;;  %v3306_v21 = vpop.permute.xlu0 %3305  ;;  %v3670_v33 = vld [vmem:[%s7414_s15] sm:$0xff]  ;;  %v3671_v19 = vld [vmem:[%s7414_s15 + $0x8] sm:$0xff] }
 0x74a   : > { %v3331_v1 = vmul.f32 %v3306_v21, %v6621_v39  ;;  %v5216_v4 = vpack.c.bf16 %v3671_v19, %v3670_v33 }
 0x74b   : > { %v3342_v13 = vadd.f32 %v3326_v48, %v6960_v53  ;;  %4884 = vmatpush3.bf16.msra.mxu0 %v3355_v41  ;;  %v3672_v41 = vld [vmem:[%s7414_s15 + $0x10] sm:$0xff]  ;;  %v3673_v48 = vld [vmem:[%s7414_s15 + $0x18] sm:$0xff] }
 0x74c   : > { %v3291_v43 = vpop.permute.xlu1 %3290  ;;  %4885 = vmatprep.subr.bf16.mxu0 %v5884_v51  ;;  %v3347_v31 = vadd.f32 %v3331_v1, %v6979_v2  ;;  %v3351_v2 = vld [vmem:[%s7413_s24] sm:$0xf]  ;;  %v5219_v21 = vpack.c.bf16 %v3673_v48, %v3672_v41 }
 0x74d   : > { %v3356_v38 = vpack.c.bf16 %v3343_v45, %v3342_v13  ;;  %v3328_v3 = vmul.f32 %v3291_v43, %v6602_v5  ;;  %v3316_v17 = vpop.permute.xlu0 %3315  ;;  %v3675_v45 = vld [vmem:[%s7414_s15 + $0x28] sm:$0xff]  ;;  %v3676_v13 = vld [vmem:[%s7414_s15 + $0x30] sm:$0xff]  ;;  %v3677_v43 = vld [vmem:[%s7414_s15 + $0x38] sm:$0xff] }
 0x74e   : > { %v3333_v5 = vmul.f32 %v3316_v17, %v6630_v44  ;;  %v3408_v44 = vld [vmem:[%s6333_s0 + $0x8] sm:$0xff]  ;;  %v3681_v17 = vld [vmem:[%s7414_s15 + $0x58] sm:$0xff] }
 0x74f   : > { %v3344_v62 = vadd.f32 %v3328_v3, %v6968_v20  ;;  %4886 = vmatpush3.bf16.msra.mxu0 %v3356_v38  ;;  %v5225_v38 = vpack.c.bf16 %v3677_v43, %v3676_v13  ;;  %v3678_v3 = vld [vmem:[%s7414_s15 + $0x40] sm:$0xff] }
 0x750   : > { %v3301_v24 = vpop.permute.xlu1 %3300  ;;  %4887 = vmatprep.subr.bf16.mxu0 %v5884_v51  ;;  %v3349_v54 = vadd.f32 %v3333_v5, %v6987_v58  ;;  %v3409_v58 = vld [vmem:[%s6333_s0 + $0x10] sm:$0xff] }
 0x751   : > { %v3357_v16 = vpack.c.bf16 %v3345_v56, %v3344_v62  ;;  %v3330_v53 = vmul.f32 %v3301_v24, %v6616_v35  ;;  %v3407_v35 = vld [vmem:[%s6333_s0] sm:$0xff]  ;;  %v3679_v56 = vld [vmem:[%s7414_s15 + $0x48] sm:$0xff]  ;;  %v3680_v62 = vld [vmem:[%s7414_s15 + $0x50] sm:$0xff] }
 0x752   : > { %v5228_v1 = vpack.c.bf16 %v3679_v56, %v3678_v3  ;;  %v5231_v24 = vpack.c.bf16 %v3681_v17, %v3680_v62  ;;  %v3684_v5 = vld [vmem:[%s7414_s15 + $0x70] sm:$0xff] }
 0x753   : > { %v3346_v18 = vadd.f32 %v3330_v53, %v6975_v46  ;;  %4888 = vmatpush3.bf16.msra.mxu0 %v3357_v16  ;;  %v3682_v16 = vld [vmem:[%s7414_s15 + $0x60] sm:$0xff]  ;;  %v3683_v53 = vld [vmem:[%s7414_s15 + $0x68] sm:$0xff] }
 0x754   : > { %v3311_v39 = vpop.permute.xlu1 %3310  ;;  %4889 = vmatprep.subr.bf16.mxu0 %v5884_v51 }
 0x755   : > { %v3358_v20 = vpack.c.bf16 %v3347_v31, %v3346_v18  ;;  %v3332_v61 = vmul.f32 %v3311_v39, %v6624_v40  ;;  %v5192_v40 = vpack.c.bf16 %v3408_v44, %v3407_v35  ;;  %v5234_v31 = vpack.c.bf16 %v3683_v53, %v3682_v16  ;;  %v3685_v18 = vld [vmem:[%s7414_s15 + $0x78] sm:$0xff]  ;;  %v4255_v35 = vld [vmem:[%s1233_s4] ss:$0 sm:$0xff]  ;;  %s5887_s4 = smov [#allocation14]  }
 0x756   : > { %v5237_v39 = vpack.c.bf16 %v3685_v18, %v3684_v5  ;;  %s3781_s3 = sshll.u32 %s5887_s4, 4  ;;  %s3782_s3 = int_to_ptr.vmem [resolvable:$true] %s3781_s3 }
 0x757   : > { %v3348_v34 = vadd.f32 %v3332_v61, %v6983_v57  ;;  %4890 = vmatpush3.bf16.msra.mxu0 %v3358_v20  ;;  %v3410_v57 = vld [vmem:[%s6333_s0 + $0x18] sm:$0xff]  ;;  %s5779_s26 = scalar_lea.vmem %s3782_s3, 128  ;;  %p5786_p8 = scmp.lt.s32.totalorder %s3782_s3, %s3782_s3 }
 0x758   : > { %4891 = vmatprep.subr.bf16.mxu0 %v5884_v51  ;;  %v5195_v7 = vpack.c.bf16 %v3410_v57, %v3409_v58  ;;  %v3768_v9 = vpop.permute.xlu1 %3767  ;;  %p5780_p3 = scmp.ne.s32.totalorder %s3782_s3, %s5779_s26  ;;  %p5787_p0 = scmp.lt.s32.totalorder %s5779_s26, %s5779_s26 }
 0x759   : > { %v3359_v46 = vpack.c.bf16 %v3349_v54, %v3348_v34 }
 0x75a   : > { %p5781_p7 = pnand %p5780_p3, %p5325_p10  ;;  %p5788_p6 = por %p5787_p0, %p5786_p8 }
 0x75b   : > { %4892 = vmatpush3.bf16.msra.mxu0 %v3359_v46 }
 0x75c   : > { %5191 = vmatprep.subr.bf16.mxu0 %v5886_v49  ;;  %p5782_p4 = pneg %p5781_p7 }
 0x75e   : > { %4894 = vmatmul.mubr.bf16.vlgmr.msra.gmra.mrb[32].mxu0 %v3351_v2  ;;  %p5789_p5 = pnand %p5788_p6, %p5782_p4 }
 0x75f   : > { %5193 = vmatpush3.bf16.msra.mxu0 %v5192_v40  ;;  %4964 = vmatprep.mubr.msk.f32.mxu0 %vm5885_vm5, %v5884_v51 }
 0x760   : > { %5194 = vmatprep.subr.bf16.mxu0 %v5886_v49 }
 0x763   : > { %5196 = vmatpush3.bf16.msra.mxu0 %v5195_v7 }
 0x764   : > { %5197 = vmatprep.subr.bf16.mxu0 %v5886_v49 }
 0x767   : > { %5199 = vmatpush3.bf16.msra.mxu0 %v5198_v26 }
 0x768   : > { %5200 = vmatprep.subr.bf16.mxu0 %v5886_v49 }
 0x76b   : > { %5202 = vmatpush3.bf16.msra.mxu0 %v5201_v0 }
 0x76c   : > { %5203 = vmatprep.subr.bf16.mxu0 %v5886_v49 }
 0x76f   : > { %5205 = vmatpush3.bf16.msra.mxu0 %v5204_v63 }
 0x770   : > { %5206 = vmatprep.subr.bf16.mxu0 %v5886_v49 }
 0x773   : > { %5208 = vmatpush3.bf16.msra.mxu0 %v5207_v15 }
 0x774   : > { %5209 = vmatprep.subr.bf16.mxu0 %v5886_v49 }
 0x777   : > { %5211 = vmatpush3.bf16.msra.mxu0 %v5210_v14 }
 0x778   : > { %5212 = vmatprep.subr.bf16.mxu0 %v5886_v49 }
 0x77b   : > { %5214 = vmatpush3.bf16.msra.mxu0 %v5213_v59 }
 0x77e   : > { %4965 = vmatmul.mubr.f32.vlgmr.msra.gmra.mrb[36].mxu0 %v7195_v6 }
 0x831   : > { %v7199_v25 = vpop.f32.mrb[32].mxu0 }
 0x832   : > { %v4895_v50 = vpop.f32.mrb[33].mxu0  ;;  %4930 = vmatmul.mubr.f32.vlgmr.msra.gmra.mrb[64].mxu1 %v7199_v25  ;;  %v3770_v26 = vmul.f32 %v3768_v9, %v7199_v25 }
 0x833   : > { %v3397_v29 = vpop.f32.mrb[34].mxu0  ;;  %4968 = vmatpush3.msra.mxu1 %v3580_v23  ;;  %4969 = vmatprep.mubr.msk.f32.mxu1 %vm5885_vm5, %v5884_v51 }
 0x834   : > { %v4896_v22 = vpop.f32.mrb[35].mxu0  ;;  %5215 = vmatprep.subr.bf16.mxu1 %v5886_v49  ;;  %v3771_v11 = vmul.f32 %v5598_v55, %v3770_v26 }
 0x836   : > { %4970 = vmatmul.mubr.msk.f32.vlgmr.msra.gmra.mrb[66].mxu1 %vm1402_vm3, %v3579_v8 }
 0x837   : > { %5004 = vmatprep.mubr.msk.f32.mxu1 %vm5885_vm5, %v5884_v51  ;;  %5217 = vmatpush3.bf16.msra.mxu1 %v5216_v4  ;;  %v3674_v51 = vld [vmem:[%s7414_s15 + $0x20] sm:$0xff] }
 0x838   : > { %5218 = vmatprep.subr.bf16.mxu1 %v5886_v49  ;;  %v5222_v47 = vpack.c.bf16 %v3675_v45, %v3674_v51 }
 0x83b   : > { %5220 = vmatpush3.bf16.msra.mxu1 %v5219_v21 }
 0x83c   : > { %5221 = vmatprep.subr.bf16.mxu1 %v5886_v49 }
 0x83f   : > { %5223 = vmatpush3.bf16.msra.mxu1 %v5222_v47 }
 0x840   : > { %5224 = vmatprep.subr.bf16.mxu1 %v5886_v49 }
 0x843   : > { %5226 = vmatpush3.bf16.msra.mxu1 %v5225_v38 }
 0x844   : > { %5227 = vmatprep.subr.bf16.mxu1 %v5886_v49 }
 0x847   : > { %5229 = vmatpush3.bf16.msra.mxu1 %v5228_v1 }
 0x848   : > { %5230 = vmatprep.subr.bf16.mxu1 %v5886_v49 }
 0x84b   : > { %5232 = vmatpush3.bf16.msra.mxu1 %v5231_v24 }
 0x84c   : > { %5233 = vmatprep.subr.bf16.mxu1 %v5886_v49 }
 0x84f   : > { %5235 = vmatpush3.bf16.msra.mxu1 %v5234_v31 }
 0x850   : > { %5236 = vmatprep.subr.bf16.mxu1 %v5886_v49 }
 0x851   : > { %v3575_v37 = vpop.f32.mrb[36].mxu0 }
 0x852   : > { %v4966_v60 = vpop.f32.mrb[37].mxu0 }
 0x853   : > { %5238 = vmatpush3.bf16.msra.mxu1 %v5237_v39 }
 0x905   : > { %v3505_v20 = vpop.f32.mrb[64].mxu1 }
 0x906   : > { %v4931_v61 = vpop.f32.mrb[65].mxu1  ;;  %v3576_v54 = vadd.f32 %v3575_v37, %v3505_v20 }
 0x909   : > { %v3650_v34 = vpop.f32.mrb[66].mxu1 }
 0x90a   : > { %v3654_v44 = vadd.f32 %v3650_v34, %v3576_v54  ;;  %v4971_v46 = vpop.f32.mrb[67].mxu1 }
 0x90c   : > { %v3662_v2 = vadd.f32 %v4255_v35, %v3654_v44 }
 0x90e   : > { %v4256_v40 = vmul.f32 -1.442695, %v3662_v2 }
 0x910   : > { %5594 = vpow2.f32 %v4256_v40 }
 0x91a   : > { %v5595_v58 = vpop.eup %5594 }
 0x91b   : > { %v3666_v57 = vadd.f32 1.0, %v5595_v58 }
 0x91d   : > { %5596 = vrcp.f32 %v3666_v57 }
 0x927   : > { %v5597_v49 = vpop.eup %5596 }
 0x928   : > { %v3669_v7 = vmul.f32 %v5597_v49, %v3662_v2 }
 0x92a   : > { %5005 = vmatmul.mubr.f32.vlgmr.msra.gmra.mrb[68].mxu1 %v3669_v7 }
 0x9fd   : > { %v3759_v28 = vpop.f32.mrb[68].mxu1 }
 0x9fe   : > { %v3760_v52 = vadd.f32 %v4257_v42, %v3759_v28  ;;  %v5006_v0 = vpop.f32.mrb[69].mxu1 }
 0xa00   : > { %v3763_v63 = vadd.f32 %v3760_v52, %v7195_v6 }
 0xa02   : > { %v3772_v27 = vadd.f32 %v3771_v11, %v3763_v63 }
 0xa04   : > { %3773 = vst [vmem:[#allocation14] sm:$0xff] %v3772_v27 }
 0xa05   : > { %5792 = shalt.err (!%p5789_p5)
}
 0xa06   : > { %s7419_s5 = sld [smem:[#allocation54_spill]] }
 0xa0c   : > { %s5793_s12 = scalar_lea.hbm %s7419_s5, 128 }
 0xa0d   : > { %p5794_p1 = scmp.ne.s32.totalorder %s7419_s5, %s5793_s12  ;;  %p5799_p13 = scmp.lt.u32.totalorder %s5793_s12, %s7419_s5 }
 0xa0f   : > { %p5795_p11 = pnand %p5794_p1, %p5325_p10 }
 0xa11   : > { %p5796_p12 = pneg %p5795_p11 }
 0xa13   : > { %p5801_p9 = pnand %p5799_p13, %p5796_p12 }
 0xa15   : > { %5804 = shalt.err (!%p5801_p9)
}
 0xa16   : > { %5302 = dma.vmem_to_hbm [thread:$0]  (%p5325_p10), %s3782_s3, 128, %s7419_s5, [#allocation5]  }
 0xa17   : > { %5846 = dma.done.wait (%p5325_p10), [#allocation5], 128  }
 0xa18   : > { %5848 = vsyncadd (%p5325_p10), [#allocation5], 4294967168 }
 0xa19 PF: > { %s7420_s24 = sld [smem:[#allocation23_spill]]  ;;  %s7421_s27 = sld [smem:[#allocation20_spill]] }
 0xa1a   : > { %s7422_s3 = sld [smem:[#allocation21_spill]]  ;;  %s7423_s7 = sld [smem:[#allocation26_spill]] }
 0xa1b   : > { %s7424_s28 = sld [smem:[#allocation22_spill]]  ;;  %s7425_s8 = sld [smem:[#allocation25_spill]] }
 0xa1f   : > { %s49_s4 = sadd.s32 1, %s7420_s24  }
 0xa20   : > { %p46_p2 = scmp.ge.s32.totalorder %s49_s4, 6  }
 0xa22   :  { %48 = sbr.rel (!%p46_p2) target bundleno = 39 (0x27), region = 276 }
 0xa29   :  { %3794 = vsyncpa [#allocation4], 1 }
 0xa2a   :  { %3796 = vsyncpa [#allocation4 + $0x1], 1 }
 0xa2b   :  { %3797 = vsyncpa [#allocation7], 1 }
 0xa2c   :  { %3799 = vsyncpa [#allocation7 + $0x1], 1 }
 0xa2d   :  { %3800 = vsyncpa [#allocation10], 1 }
 0xa2e   :  { %3802 = vsyncpa [#allocation10 + $0x1], 1 }
 0xa2f   :  { %3803 = vsyncpa [#allocation13], 1 }
 0xa30   :  { %3805 = vsyncpa [#allocation13 + $0x1], 1 }
 0xa31   :  { %3806 = vsyncpa [#allocation5], 1 }
 0xa32   :  { %3808 = vsyncpa [#allocation5 + $0x1], 1 }

</bundles_post_ra>
